<compile_context>
chip_gen: v5e
topology: v5e:2x2
jax: 0.10.0
libtpu: 0.0.40
codegen_flags: <defaults>
</compile_context>

<pallas_src>
import math
import jax
import jax.numpy as jnp
from jax.experimental import pallas as pl
from jax.experimental.pallas import tpu as pltpu


# ----------------------------------------------------------------------------
# Small helpers
# ----------------------------------------------------------------------------
def _round_up(n, m):
    return ((n + m - 1) // m) * m


def _vmem_limit_bytes():
    # v5e/v6e have 128 MiB VMEM, v7x 64 MiB per TensorCore; leave headroom for the compiler.
    cap = 64 * 1024 * 1024
    try:
        info = pltpu.get_tpu_info()
        cap = int(getattr(info, "vmem_capacity_bytes", cap))
    except Exception:
        pass
    return int(min(cap * 3 // 4, 112 * 1024 * 1024))


def _pick_tile(n, max_t):
    """Tile for a lane-dense axis: a multiple of 128 dividing n, capped at max_t.
    Small / awkward n -> the full axis (block == full dim is always legal)."""
    if n < 256 or n % 128 != 0:
        return n
    cap = min(max_t, n)
    if n >= 2048:
        cap = min(cap, n // 2)      # keep >= 2 blocks so megacore (v7x) can split 'parallel' axes
    cap = max(128, (cap // 128) * 128)
    t = cap
    while t >= 128:
        if n % t == 0:
            return t
        t -= 128
    return n


# ----------------------------------------------------------------------------
# Pallas kernels
# ----------------------------------------------------------------------------
def _conv_epilogue_store(zr, zi, to, or_ref, oi_ref, s1, s2):
    # Store lane-dense (Cp, tm) outputs + accumulate per-channel BN stats of |z| in f32.
    or_ref[to] = zr
    oi_ref[to] = zi
    mag2 = zr * zr + zi * zi
    mag = mag2 * jax.lax.rsqrt(mag2 + 1e-20)        # |z| via one EUP rsqrt, no sqrt/divide
    s1 = s1 + jnp.sum(mag, axis=1, keepdims=True)
    s2 = s2 + jnp.sum(mag2, axis=1, keepdims=True)  # sum(|z|^2) exactly
    return s1, s2


def conv_taps_cplx_kernel(pr_ref, pi_ref, w_ref, b_ref, or_ref, oi_ref, st_ref):
    # Complex conv3d on one lane-dense M tile; full T window resident, 3 temporal taps are
    # shifted VMEM views.  pr/pi: (T+2, K9, tm) bf16, w: (3, Cp, K9) bf16, b: (Cp, 1) f32,
    # or/oi: (To, Cp, tm) f32, st: (1, 2, Cp, 1) packed per-tile BN stats of |z|.
    b = b_ref[...]
    w0, w1, w2 = w_ref[0], w_ref[1], w_ref[2]
    To = or_ref.shape[0]
    s1 = jnp.zeros_like(b)
    s2 = jnp.zeros_like(b)
    for to in range(To):                            # static unroll over the (small) time axis
        zr = (jnp.dot(w0, pr_ref[to], preferred_element_type=jnp.float32)
              + jnp.dot(w1, pr_ref[to + 1], preferred_element_type=jnp.float32)
              + jnp.dot(w2, pr_ref[to + 2], preferred_element_type=jnp.float32) + b)
        zi = (jnp.dot(w0, pi_ref[to], preferred_element_type=jnp.float32)
              + jnp.dot(w1, pi_ref[to + 1], preferred_element_type=jnp.float32)
              + jnp.dot(w2, pi_ref[to + 2], preferred_element_type=jnp.float32) + b)
        s1, s2 = _conv_epilogue_store(zr, zi, to, or_ref, oi_ref, s1, s2)
    st_ref[0, 0] = s1
    st_ref[0, 1] = s2


def conv_taps_real_kernel(pr_ref, w_ref, b_ref, or_ref, oi_ref, st_ref):
    # Preproc layer: imaginary input is identically zero, so Im(conv) == bias broadcast.
    b = b_ref[...]
    w0, w1, w2 = w_ref[0], w_ref[1], w_ref[2]
    To, Cp, tm = or_ref.shape
    zi = jnp.broadcast_to(b, (Cp, tm))              # hoisted out of the loop (no per-iter bcast)
    s1 = jnp.zeros_like(b)
    s2 = jnp.zeros_like(b)
    for to in range(To):
        zr = (jnp.dot(w0, pr_ref[to], preferred_element_type=jnp.float32)
              + jnp.dot(w1, pr_ref[to + 1], preferred_element_type=jnp.float32)
              + jnp.dot(w2, pr_ref[to + 2], preferred_element_type=jnp.float32) + b)
        s1, s2 = _conv_epilogue_store(zr, zi, to, or_ref, oi_ref, s1, s2)
    st_ref[0, 0] = s1
    st_ref[0, 1] = s2


def bn_relu_recombine_kernel(r_ref, i_ref, a_ref, c_ref, ar_ref, ai_ref):
    # BN(|z|) (scale/shift precomputed per channel) -> ReLU -> recombine with angle(z), bf16 out.
    r = r_ref[0]                                    # (Cp, tn) f32
    im = i_ref[0]
    mag2 = r * r + im * im
    inv = jax.lax.rsqrt(mag2 + 1e-20)               # 1/|z|
    mag = mag2 * inv                                # |z|
    m_act = jnp.maximum(mag * a_ref[...] + c_ref[...], 0.0)
    scale = m_act * inv
    ar_ref[0] = (r * scale).astype(ar_ref.dtype)
    ai_ref[0] = (im * scale).astype(ai_ref.dtype)


def readout_kernel(xr_ref, xi_ref, w_ref, b_ref, out_ref, cr_ref, ci_ref, accr_ref, acci_ref):
    # ComplexLinear(last=True): tiled reduction over features, shared real weight/bias for Re/Im.
    g = pl.program_id(0)

    @pl.when(g == 0)
    def _():
        accr_ref[...] = jnp.zeros_like(accr_ref)
        acci_ref[...] = jnp.zeros_like(acci_ref)

    w = w_ref[...]                                  # (1, tf) f32
    xr = xr_ref[...].astype(jnp.float32)            # (B, tf)
    xi = xi_ref[...].astype(jnp.float32)
    accr_ref[...] += jnp.sum(xr * w, axis=1, keepdims=True)
    acci_ref[...] += jnp.sum(xi * w, axis=1, keepdims=True)

    @pl.when(g == pl.num_programs(0) - 1)
    def _():
        zr = accr_ref[...] + b_ref[...]
        zi = acci_ref[...] + b_ref[...]
        cr_ref[...] = zr
        ci_ref[...] = zi
        out_ref[...] = jnp.sqrt(zr * zr + zi * zi)  # output = magnitude


# ----------------------------------------------------------------------------
# Wrappers (thin JAX glue, hot paths in Pallas)
# ----------------------------------------------------------------------------
def _im2col_hw_tmajor(a, k=3, pad=1, sh=2, sw=2):
    # a: (T, C, B, H, W) -> patches (T+2, K9=C*9, M=B*Ho*Wo), bf16 passthrough.
    # Only the 9 spatial taps are materialized (~2.5x, not 27x); the temporal taps are handled
    # in-kernel as shifted views along the leading (T+2) axis.
    T, C, B, H, W = a.shape
    ap = jnp.pad(a, ((pad, pad), (0, 0), (0, 0), (pad, pad), (pad, pad)))
    Ho = (H + 2 * pad - k) // sh + 1
    Wo = (W + 2 * pad - k) // sw + 1
    cols = []
    for kh in range(k):
        for kw in range(k):
            cols.append(ap[:, :, :,
                           kh:kh + (Ho - 1) * sh + 1:sh,
                           kw:kw + (Wo - 1) * sw + 1:sw])
    p = jnp.stack(cols, axis=2)                     # (T+2, C, 9, B, Ho, Wo)
    p = p.reshape(T + 2 * pad, C * k * k, B * Ho * Wo)
    return p, Ho, Wo


def _prep_weight(w, b, cp):
    # torch layout (Cout, Cin, kT, kH, kW) -> (kT, Cp, Cin*kH*kW) bf16, (Cp, 1) f32 bias.
    cout, cin, kt, kh, kw = w.shape
    wt = jnp.transpose(w, (2, 0, 1, 3, 4)).reshape(kt, cout, cin * kh * kw)
    wt = jnp.pad(wt, ((0, 0), (0, cp - cout), (0, 0))).astype(jnp.bfloat16)
    bt = jnp.pad(b.reshape(cout, 1), ((0, cp - cout), (0, 0))).astype(jnp.float32)
    return wt, bt


def complex_conv3d(a_r, a_i, w, b, max_tm=4096):
    """Complex conv3d, kernel 3, stride (1,2,2), pad 1, on time-major bf16 activations
    (T, Cin, B, H, W).  a_i=None means the imaginary part is exactly zero (preproc layer).
    Returns zr, zi as (To, Cp, M=B*Ho*Wo) f32 plus packed per-tile BN stats of |z|."""
    pr, Ho, Wo = _im2col_hw_tmajor(a_r)
    Tp, K9, M = pr.shape
    To = Tp - 2
    Cout = w.shape[0]
    Cp = _round_up(Cout, 8)                         # sublane-fill the channel axis
    wt, bt = _prep_weight(w, b, Cp)

    groups = 1 if a_i is None else 2
    vlim = _vmem_limit_bytes()
    # Double-buffered footprint per M column: bf16 inputs + f32 outputs.
    per_col = 2 * groups * Tp * K9 * 2 + 2 * 2 * To * Cp * 4
    cap = max(128, ((int(vlim * 0.6) // per_col) // 128) * 128)
    tm = _pick_tile(M, min(max_tm, cap))
    G = M // tm

    p_spec = pl.BlockSpec((Tp, K9, tm), lambda g: (0, 0, g))
    w_spec = pl.BlockSpec((3, Cp, K9), lambda g: (0, 0, 0))
    b_spec = pl.BlockSpec((Cp, 1), lambda g: (0, 0))
    out_shape = (jax.ShapeDtypeStruct((To, Cp, M), jnp.float32),
                 jax.ShapeDtypeStruct((To, Cp, M), jnp.float32),
                 jax.ShapeDtypeStruct((G, 2, Cp, 1), jnp.float32))
    out_specs = (pl.BlockSpec((To, Cp, tm), lambda g: (0, 0, g)),
                 pl.BlockSpec((To, Cp, tm), lambda g: (0, 0, g)),
                 pl.BlockSpec((1, 2, Cp, 1), lambda g: (g, 0, 0, 0)))
    cparams = pltpu.CompilerParams(dimension_semantics=("parallel",),
                                   vmem_limit_bytes=vlim)

    if a_i is None:
        zr, zi, st = pl.pallas_call(
            conv_taps_real_kernel, out_shape=out_shape, grid=(G,),
            in_specs=[p_spec, w_spec, b_spec], out_specs=out_specs,
            compiler_params=cparams,
        )(pr, wt, bt)
    else:
        pi, _, _ = _im2col_hw_tmajor(a_i)
        zr, zi, st = pl.pallas_call(
            conv_taps_cplx_kernel, out_shape=out_shape, grid=(G,),
            in_specs=[p_spec, p_spec, w_spec, b_spec], out_specs=out_specs,
            compiler_params=cparams,
        )(pr, pi, wt, bt)
    return zr, zi, st, (Ho, Wo, Cp)


def complex_bn_relu(zr, zi, stats, gamma, beta, eps=1e-3, max_tn=8192):
    """BatchNorm3d(track_running_stats=False, eps=1e-3) on |z| -> ReLU -> recombine with angle(z).
    Batch stats come from the conv-epilogue side outputs (exact: tiles always cover M exactly)."""
    To, Cp, M = zr.shape
    C = gamma.shape[0]
    n = jnp.float32(To * M)
    s = jnp.sum(stats[:, 0, :, 0], axis=0)          # (Cp,)
    ss = jnp.sum(stats[:, 1, :, 0], axis=0)         # (Cp,)
    mean = s / n
    var = jnp.maximum(ss / n - mean * mean, 0.0)    # biased variance, like torch BN
    invstd = jax.lax.rsqrt(var + eps)
    g_p = jnp.pad(gamma.astype(jnp.float32), (0, Cp - C), constant_values=1.0)
    b_p = jnp.pad(beta.astype(jnp.float32), (0, Cp - C))
    a = (g_p * invstd).reshape(Cp, 1)
    c = (b_p - mean * g_p * invstd).reshape(Cp, 1)

    tn = _pick_tile(M, max_tn)
    G = M // tn
    ar, ai = pl.pallas_call(
        bn_relu_recombine_kernel,
        out_shape=(jax.ShapeDtypeStruct((To, Cp, M), jnp.bfloat16),
                   jax.ShapeDtypeStruct((To, Cp, M), jnp.bfloat16)),
        grid=(To, G),
        in_specs=[pl.BlockSpec((1, Cp, tn), lambda t, g: (t, 0, g)),
                  pl.BlockSpec((1, Cp, tn), lambda t, g: (t, 0, g)),
                  pl.BlockSpec((Cp, 1), lambda t, g: (0, 0)),
                  pl.BlockSpec((Cp, 1), lambda t, g: (0, 0))],
        out_specs=(pl.BlockSpec((1, Cp, tn), lambda t, g: (t, 0, g)),
                   pl.BlockSpec((1, Cp, tn), lambda t, g: (t, 0, g))),
        compiler_params=pltpu.CompilerParams(
            dimension_semantics=("parallel", "parallel"),
            vmem_limit_bytes=_vmem_limit_bytes()),
    )(zr, zi, a, c)
    return ar, ai


def complex_readout(xr, xi, w, b, max_tf=32768):
    # xr, xi: (B, F) bf16.  Shared real weight/bias on Re and Im; output = magnitude.
    B, F_ = xr.shape
    Fp = _round_up(max(F_, 128), 128)
    wf = w.reshape(1, F_).astype(jnp.float32)
    if Fp != F_:                                    # zero-padded weights -> result unchanged
        xr = jnp.pad(xr, ((0, 0), (0, Fp - F_)))
        xi = jnp.pad(xi, ((0, 0), (0, Fp - F_)))
        wf = jnp.pad(wf, ((0, 0), (0, Fp - F_)))
    bf = b.reshape(1, 1).astype(jnp.float32)
    tf_ = _pick_tile(Fp, max_tf)
    G = Fp // tf_
    out, cr, ci = pl.pallas_call(
        readout_kernel,
        out_shape=(jax.ShapeDtypeStruct((B, 1), jnp.float32),
                   jax.ShapeDtypeStruct((B, 1), jnp.float32),
                   jax.ShapeDtypeStruct((B, 1), jnp.float32)),
        grid=(G,),
        in_specs=[pl.BlockSpec((B, tf_), lambda g: (0, g)),
                  pl.BlockSpec((B, tf_), lambda g: (0, g)),
                  pl.BlockSpec((1, tf_), lambda g: (0, g)),
                  pl.BlockSpec((1, 1), lambda g: (0, 0))],
        out_specs=(pl.BlockSpec((B, 1), lambda g: (0, 0)),
                   pl.BlockSpec((B, 1), lambda g: (0, 0)),
                   pl.BlockSpec((B, 1), lambda g: (0, 0))),
        scratch_shapes=[pltpu.VMEM((B, 1), jnp.float32),
                        pltpu.VMEM((B, 1), jnp.float32)],
        compiler_params=pltpu.CompilerParams(dimension_semantics=("arbitrary",),
                                             vmem_limit_bytes=_vmem_limit_bytes()),
    )(xr, xi, wf, bf)
    return out, (cr, ci)


# ----------------------------------------------------------------------------
# FC module forward
# ----------------------------------------------------------------------------
def fc_forward(params, x, m, testmode=False):
    # init_phase == 'ideal'
    # TODO(synk): exact cf.initialize_phases unavailable; approximated as phase = pi*(m>0.5),
    # i.e. real = x*cos(phase) = where(m>0.5, -x, x) and imag = x*sin(phase) = 0 exactly.
    B = x.shape[0]
    xr = jnp.where(m > 0.5, -x, x).astype(jnp.bfloat16)
    a_r = jnp.transpose(xr, (2, 1, 0, 3, 4))        # time-major (T, C, B, H, W)
    a_i = None                                      # imaginary input of the first conv is 0

    layer_keys = (("w0", "b0", "g1", "be1"),
                  ("w1", "b1", "g2", "be2"),
                  ("w2", "b2", "g3", "be3"))
    for wk, bk, gk, bek in layer_keys:
        zr, zi, st, (Ho, Wo, Cp) = complex_conv3d(a_r, a_i, params[wk], params[bk])
        ar, ai = complex_bn_relu(zr, zi, st, params[gk], params[bek])
        C = params[wk].shape[0]
        To = ar.shape[0]
        a_r = ar.reshape(To, Cp, B, Ho, Wo)[:, :C]  # drop sublane-padding channels
        a_i = ai.reshape(To, Cp, B, Ho, Wo)[:, :C]

    # readout (ComplexLinear, last=True): flatten per batch in torch (C, T, H, W) order.
    def to_bf(z):
        return jnp.transpose(z, (2, 1, 0, 3, 4)).reshape(B, -1)

    out, complex_out = complex_readout(to_bf(a_r), to_bf(a_i), params["rw"], params["rb"])

    jv_penalty = jnp.array([1.0], jnp.float32)
    if testmode:
        return out, None, None
    return out, jv_penalty


def init_params(key, in_channels, dims, T, H, W):
    ks = jax.random.split(key, 8)
    d2 = dims * 2
    F_ = d2 * T * (H // 8) * (W // 8)

    def w_init(k, shape, fan_in):
        bound = 1.0 / math.sqrt(fan_in)
        return jax.random.uniform(k, shape, jnp.float32, -bound, bound)

    return {
        "w0": w_init(ks[0], (dims, in_channels, 3, 3, 3), in_channels * 27),
        "b0": w_init(ks[1], (dims,), in_channels * 27),
        "w1": w_init(ks[2], (d2, dims, 3, 3, 3), dims * 27),
        "b1": w_init(ks[3], (d2,), dims * 27),
        "w2": w_init(ks[4], (d2, d2, 3, 3, 3), d2 * 27),
        "b2": w_init(ks[5], (d2,), d2 * 27),
        "g1": jnp.ones((dims,), jnp.float32), "be1": jnp.zeros((dims,), jnp.float32),
        "g2": jnp.ones((d2,), jnp.float32), "be2": jnp.zeros((d2,), jnp.float32),
        "g3": jnp.ones((d2,), jnp.float32), "be3": jnp.zeros((d2,), jnp.float32),
        "rw": w_init(ks[6], (F_, 1), F_),
        "rb": w_init(ks[7], (1,), F_),
    }


if __name__ == "__main__":
    key = jax.random.PRNGKey(0)
    B, Cin, T, H, W = 2, 3, 4, 16, 16               # small shapes; spatial 16 -> 8 -> 4 -> 2
    dims = 4

    kx, km, kp = jax.random.split(key, 3)
    x = jax.random.uniform(kx, (B, Cin, T, H, W), jnp.float32)
    m = (jax.random.uniform(km, (B, 1, T, H, W)) > 0.8).astype(jnp.float32)
    params = init_params(kp, Cin, dims, T, H, W)

    fwd = jax.jit(fc_forward)
    out, jv = fwd(params, x, m)
    jax.block_until_ready((out, jv))
    assert out.shape == (B, 1) and bool(jnp.all(jnp.isfinite(out)))
    print("KERNEL_OK")
</pallas_src>

<mosaic_0001>
module attributes {stable_mosaic.version = 11 : i64} {
  func.func @conv_taps_real_kernel(%arg0: i32, %arg1: memref<6x27x128xbf16, #tpu.memory_space<vmem>>, %arg2: memref<3x8x27xbf16, #tpu.memory_space<vmem>>, %arg3: memref<8x1xf32, #tpu.memory_space<vmem>>, %arg4: memref<4x8x128xf32, #tpu.memory_space<vmem>>, %arg5: memref<4x8x128xf32, #tpu.memory_space<vmem>>, %arg6: memref<1x2x8x1xf32, #tpu.memory_space<vmem>>) attributes {dimension_semantics = [#tpu.dimension_semantics<parallel>], iteration_bounds = array<i64: 1>, scalar_prefetch = 0 : i64, scratch_operands = 0 : i64, tpu.core_type = #tpu.core_type<tc>, window_params = [{transform_indices = @transform_0, window_bounds = array<i64: 6, 27, 128>}, {pipeline_mode = #tpu.pipeline_mode<synchronous>, transform_indices = @transform_1, window_bounds = array<i64: 3, 8, 27>}, {pipeline_mode = #tpu.pipeline_mode<synchronous>, transform_indices = @transform_2, window_bounds = array<i64: 8, 1>}, {transform_indices = @transform_3, window_bounds = array<i64: 4, 8, 128>}, {transform_indices = @transform_4, window_bounds = array<i64: 4, 8, 128>}, {transform_indices = @transform_5, window_bounds = array<i64: 1, 2, 8, 1>}]} {
    %c0 = arith.constant 0 : index
    %c0_0 = arith.constant 0 : index
    %0 = vector.load %arg3[%c0, %c0_0] : memref<8x1xf32, #tpu.memory_space<vmem>>, vector<8x1xf32>
    %c0_1 = arith.constant 0 : index
    %c0_2 = arith.constant 0 : index
    %c0_3 = arith.constant 0 : index
    %1 = vector.load %arg2[%c0_1, %c0_2, %c0_3] : memref<3x8x27xbf16, #tpu.memory_space<vmem>>, vector<1x8x27xbf16>
    %2 = vector.shape_cast %1 : vector<1x8x27xbf16> to vector<8x27xbf16>
    %c1 = arith.constant 1 : index
    %c0_4 = arith.constant 0 : index
    %c0_5 = arith.constant 0 : index
    %3 = vector.load %arg2[%c1, %c0_4, %c0_5] : memref<3x8x27xbf16, #tpu.memory_space<vmem>>, vector<1x8x27xbf16>
    %4 = vector.shape_cast %3 : vector<1x8x27xbf16> to vector<8x27xbf16>
    %c2 = arith.constant 2 : index
    %c0_6 = arith.constant 0 : index
    %c0_7 = arith.constant 0 : index
    %5 = vector.load %arg2[%c2, %c0_6, %c0_7] : memref<3x8x27xbf16, #tpu.memory_space<vmem>>, vector<1x8x27xbf16>
    %6 = vector.shape_cast %5 : vector<1x8x27xbf16> to vector<8x27xbf16>
    %7 = vector.shape_cast %0 : vector<8x1xf32> to vector<8x1xf32>
    %8 = vector.broadcast %7 : vector<8x1xf32> to vector<8x128xf32>
    %cst = arith.constant 0.000000e+00 : f32
    %9 = vector.broadcast %cst : f32 to vector<8x1xf32>
    %cst_8 = arith.constant 0.000000e+00 : f32
    %10 = vector.broadcast %cst_8 : f32 to vector<8x1xf32>
    %c0_9 = arith.constant 0 : index
    %c0_10 = arith.constant 0 : index
    %c0_11 = arith.constant 0 : index
    %11 = vector.load %arg1[%c0_9, %c0_10, %c0_11] : memref<6x27x128xbf16, #tpu.memory_space<vmem>>, vector<1x27x128xbf16>
    %12 = vector.shape_cast %11 : vector<1x27x128xbf16> to vector<27x128xbf16>
    %cst_12 = arith.constant dense<0.000000e+00> : vector<8x128xf32>
    %13 = tpu.matmul %2, %12, %cst_12 {dimension_numbers = #tpu.dot_dimension_numbers<[1], [0], [0], [1], [0, 0, 1, 1], [], []>} : vector<8x27xbf16>, vector<27x128xbf16>, vector<8x128xf32> -> vector<8x128xf32>
    %c1_13 = arith.constant 1 : index
    %c0_14 = arith.constant 0 : index
    %c0_15 = arith.constant 0 : index
    %14 = vector.load %arg1[%c1_13, %c0_14, %c0_15] : memref<6x27x128xbf16, #tpu.memory_space<vmem>>, vector<1x27x128xbf16>
    %15 = vector.shape_cast %14 : vector<1x27x128xbf16> to vector<27x128xbf16>
    %cst_16 = arith.constant dense<0.000000e+00> : vector<8x128xf32>
    %16 = tpu.matmul %4, %15, %cst_16 {dimension_numbers = #tpu.dot_dimension_numbers<[1], [0], [0], [1], [0, 0, 1, 1], [], []>} : vector<8x27xbf16>, vector<27x128xbf16>, vector<8x128xf32> -> vector<8x128xf32>
    %17 = arith.addf %13, %16 : vector<8x128xf32>
    %c2_17 = arith.constant 2 : index
    %c0_18 = arith.constant 0 : index
    %c0_19 = arith.constant 0 : index
    %18 = vector.load %arg1[%c2_17, %c0_18, %c0_19] : memref<6x27x128xbf16, #tpu.memory_space<vmem>>, vector<1x27x128xbf16>
    %19 = vector.shape_cast %18 : vector<1x27x128xbf16> to vector<27x128xbf16>
    %cst_20 = arith.constant dense<0.000000e+00> : vector<8x128xf32>
    %20 = tpu.matmul %6, %19, %cst_20 {dimension_numbers = #tpu.dot_dimension_numbers<[1], [0], [0], [1], [0, 0, 1, 1], [], []>} : vector<8x27xbf16>, vector<27x128xbf16>, vector<8x128xf32> -> vector<8x128xf32>
    %21 = arith.addf %17, %20 : vector<8x128xf32>
    %22 = vector.broadcast %0 : vector<8x1xf32> to vector<8x128xf32>
    %23 = arith.addf %21, %22 : vector<8x128xf32>
    %c0_21 = arith.constant 0 : index
    %c0_22 = arith.constant 0 : index
    %c0_23 = arith.constant 0 : index
    %24 = vector.load %arg4[%c0_21, %c0_22, %c0_23] : memref<4x8x128xf32, #tpu.memory_space<vmem>>, vector<1x8x128xf32>
    %25 = vector.shape_cast %24 : vector<1x8x128xf32> to vector<8x128xf32>
    %26 = vector.shape_cast %23 : vector<8x128xf32> to vector<1x8x128xf32>
    tpu.vector_store %arg4[%c0_21, %c0_22, %c0_23], %26 {strides = array<i32>} : memref<4x8x128xf32, #tpu.memory_space<vmem>>, vector<1x8x128xf32>,
    %c0_24 = arith.constant 0 : index
    %c0_25 = arith.constant 0 : index
    %c0_26 = arith.constant 0 : index
    %27 = vector.load %arg5[%c0_24, %c0_25, %c0_26] : memref<4x8x128xf32, #tpu.memory_space<vmem>>, vector<1x8x128xf32>
    %28 = vector.shape_cast %27 : vector<1x8x128xf32> to vector<8x128xf32>
    %29 = vector.shape_cast %8 : vector<8x128xf32> to vector<1x8x128xf32>
    tpu.vector_store %arg5[%c0_24, %c0_25, %c0_26], %29 {strides = array<i32>} : memref<4x8x128xf32, #tpu.memory_space<vmem>>, vector<1x8x128xf32>,
    %30 = arith.mulf %23, %23 : vector<8x128xf32>
    %31 = arith.mulf %8, %8 : vector<8x128xf32>
    %32 = arith.addf %30, %31 : vector<8x128xf32>
    %cst_27 = arith.constant 9.99999968E-21 : f32
    %33 = vector.broadcast %cst_27 : f32 to vector<8x128xf32>
    %34 = arith.addf %32, %33 : vector<8x128xf32>
    %35 = math.rsqrt %34 : vector<8x128xf32>
    %36 = arith.mulf %32, %35 : vector<8x128xf32>
    %cst_28 = arith.constant dense<0.000000e+00> : vector<8xf32>
    %37 = vector.multi_reduction <add>, %36, %cst_28 [1] : vector<8x128xf32> to vector<8xf32>
    %38 = vector.shape_cast %37 : vector<8xf32> to vector<8x1xf32>
    %39 = arith.addf %9, %38 : vector<8x1xf32>
    %cst_29 = arith.constant dense<0.000000e+00> : vector<8xf32>
    %40 = vector.multi_reduction <add>, %32, %cst_29 [1] : vector<8x128xf32> to vector<8xf32>
    %41 = vector.shape_cast %40 : vector<8xf32> to vector<8x1xf32>
    %42 = arith.addf %10, %41 : vector<8x1xf32>
    %c1_30 = arith.constant 1 : index
    %c0_31 = arith.constant 0 : index
    %c0_32 = arith.constant 0 : index
    %43 = vector.load %arg1[%c1_30, %c0_31, %c0_32] : memref<6x27x128xbf16, #tpu.memory_space<vmem>>, vector<1x27x128xbf16>
    %44 = vector.shape_cast %43 : vector<1x27x128xbf16> to vector<27x128xbf16>
    %cst_33 = arith.constant dense<0.000000e+00> : vector<8x128xf32>
    %45 = tpu.matmul %2, %44, %cst_33 {dimension_numbers = #tpu.dot_dimension_numbers<[1], [0], [0], [1], [0, 0, 1, 1], [], []>} : vector<8x27xbf16>, vector<27x128xbf16>, vector<8x128xf32> -> vector<8x128xf32>
    %c2_34 = arith.constant 2 : index
    %c0_35 = arith.constant 0 : index
    %c0_36 = arith.constant 0 : index
    %46 = vector.load %arg1[%c2_34, %c0_35, %c0_36] : memref<6x27x128xbf16, #tpu.memory_space<vmem>>, vector<1x27x128xbf16>
    %47 = vector.shape_cast %46 : vector<1x27x128xbf16> to vector<27x128xbf16>
    %cst_37 = arith.constant dense<0.000000e+00> : vector<8x128xf32>
    %48 = tpu.matmul %4, %47, %cst_37 {dimension_numbers = #tpu.dot_dimension_numbers<[1], [0], [0], [1], [0, 0, 1, 1], [], []>} : vector<8x27xbf16>, vector<27x128xbf16>, vector<8x128xf32> -> vector<8x128xf32>
    %49 = arith.addf %45, %48 : vector<8x128xf32>
    %c3 = arith.constant 3 : index
    %c0_38 = arith.constant 0 : index
    %c0_39 = arith.constant 0 : index
    %50 = vector.load %arg1[%c3, %c0_38, %c0_39] : memref<6x27x128xbf16, #tpu.memory_space<vmem>>, vector<1x27x128xbf16>
    %51 = vector.shape_cast %50 : vector<1x27x128xbf16> to vector<27x128xbf16>
    %cst_40 = arith.constant dense<0.000000e+00> : vector<8x128xf32>
    %52 = tpu.matmul %6, %51, %cst_40 {dimension_numbers = #tpu.dot_dimension_numbers<[1], [0], [0], [1], [0, 0, 1, 1], [], []>} : vector<8x27xbf16>, vector<27x128xbf16>, vector<8x128xf32> -> vector<8x128xf32>
    %53 = arith.addf %49, %52 : vector<8x128xf32>
    %54 = vector.broadcast %0 : vector<8x1xf32> to vector<8x128xf32>
    %55 = arith.addf %53, %54 : vector<8x128xf32>
    %c1_41 = arith.constant 1 : index
    %c0_42 = arith.constant 0 : index
    %c0_43 = arith.constant 0 : index
    %56 = vector.load %arg4[%c1_41, %c0_42, %c0_43] : memref<4x8x128xf32, #tpu.memory_space<vmem>>, vector<1x8x128xf32>
    %57 = vector.shape_cast %56 : vector<1x8x128xf32> to vector<8x128xf32>
    %58 = vector.shape_cast %55 : vector<8x128xf32> to vector<1x8x128xf32>
    tpu.vector_store %arg4[%c1_41, %c0_42, %c0_43], %58 {strides = array<i32>} : memref<4x8x128xf32, #tpu.memory_space<vmem>>, vector<1x8x128xf32>,
    %c1_44 = arith.constant 1 : index
    %c0_45 = arith.constant 0 : index
    %c0_46 = arith.constant 0 : index
    %59 = vector.load %arg5[%c1_44, %c0_45, %c0_46] : memref<4x8x128xf32, #tpu.memory_space<vmem>>, vector<1x8x128xf32>
    %60 = vector.shape_cast %59 : vector<1x8x128xf32> to vector<8x128xf32>
    %61 = vector.shape_cast %8 : vector<8x128xf32> to vector<1x8x128xf32>
    tpu.vector_store %arg5[%c1_44, %c0_45, %c0_46], %61 {strides = array<i32>} : memref<4x8x128xf32, #tpu.memory_space<vmem>>, vector<1x8x128xf32>,
    %62 = arith.mulf %55, %55 : vector<8x128xf32>
    %63 = arith.mulf %8, %8 : vector<8x128xf32>
    %64 = arith.addf %62, %63 : vector<8x128xf32>
    %cst_47 = arith.constant 9.99999968E-21 : f32
    %65 = vector.broadcast %cst_47 : f32 to vector<8x128xf32>
    %66 = arith.addf %64, %65 : vector<8x128xf32>
    %67 = math.rsqrt %66 : vector<8x128xf32>
    %68 = arith.mulf %64, %67 : vector<8x128xf32>
    %cst_48 = arith.constant dense<0.000000e+00> : vector<8xf32>
    %69 = vector.multi_reduction <add>, %68, %cst_48 [1] : vector<8x128xf32> to vector<8xf32>
    %70 = vector.shape_cast %69 : vector<8xf32> to vector<8x1xf32>
    %71 = arith.addf %39, %70 : vector<8x1xf32>
    %cst_49 = arith.constant dense<0.000000e+00> : vector<8xf32>
    %72 = vector.multi_reduction <add>, %64, %cst_49 [1] : vector<8x128xf32> to vector<8xf32>
    %73 = vector.shape_cast %72 : vector<8xf32> to vector<8x1xf32>
    %74 = arith.addf %42, %73 : vector<8x1xf32>
    %c2_50 = arith.constant 2 : index
    %c0_51 = arith.constant 0 : index
    %c0_52 = arith.constant 0 : index
    %75 = vector.load %arg1[%c2_50, %c0_51, %c0_52] : memref<6x27x128xbf16, #tpu.memory_space<vmem>>, vector<1x27x128xbf16>
    %76 = vector.shape_cast %75 : vector<1x27x128xbf16> to vector<27x128xbf16>
    %cst_53 = arith.constant dense<0.000000e+00> : vector<8x128xf32>
    %77 = tpu.matmul %2, %76, %cst_53 {dimension_numbers = #tpu.dot_dimension_numbers<[1], [0], [0], [1], [0, 0, 1, 1], [], []>} : vector<8x27xbf16>, vector<27x128xbf16>, vector<8x128xf32> -> vector<8x128xf32>
    %c3_54 = arith.constant 3 : index
    %c0_55 = arith.constant 0 : index
    %c0_56 = arith.constant 0 : index
    %78 = vector.load %arg1[%c3_54, %c0_55, %c0_56] : memref<6x27x128xbf16, #tpu.memory_space<vmem>>, vector<1x27x128xbf16>
    %79 = vector.shape_cast %78 : vector<1x27x128xbf16> to vector<27x128xbf16>
    %cst_57 = arith.constant dense<0.000000e+00> : vector<8x128xf32>
    %80 = tpu.matmul %4, %79, %cst_57 {dimension_numbers = #tpu.dot_dimension_numbers<[1], [0], [0], [1], [0, 0, 1, 1], [], []>} : vector<8x27xbf16>, vector<27x128xbf16>, vector<8x128xf32> -> vector<8x128xf32>
    %81 = arith.addf %77, %80 : vector<8x128xf32>
    %c4 = arith.constant 4 : index
    %c0_58 = arith.constant 0 : index
    %c0_59 = arith.constant 0 : index
    %82 = vector.load %arg1[%c4, %c0_58, %c0_59] : memref<6x27x128xbf16, #tpu.memory_space<vmem>>, vector<1x27x128xbf16>
    %83 = vector.shape_cast %82 : vector<1x27x128xbf16> to vector<27x128xbf16>
    %cst_60 = arith.constant dense<0.000000e+00> : vector<8x128xf32>
    %84 = tpu.matmul %6, %83, %cst_60 {dimension_numbers = #tpu.dot_dimension_numbers<[1], [0], [0], [1], [0, 0, 1, 1], [], []>} : vector<8x27xbf16>, vector<27x128xbf16>, vector<8x128xf32> -> vector<8x128xf32>
    %85 = arith.addf %81, %84 : vector<8x128xf32>
    %86 = vector.broadcast %0 : vector<8x1xf32> to vector<8x128xf32>
    %87 = arith.addf %85, %86 : vector<8x128xf32>
    %c2_61 = arith.constant 2 : index
    %c0_62 = arith.constant 0 : index
    %c0_63 = arith.constant 0 : index
    %88 = vector.load %arg4[%c2_61, %c0_62, %c0_63] : memref<4x8x128xf32, #tpu.memory_space<vmem>>, vector<1x8x128xf32>
    %89 = vector.shape_cast %88 : vector<1x8x128xf32> to vector<8x128xf32>
    %90 = vector.shape_cast %87 : vector<8x128xf32> to vector<1x8x128xf32>
    tpu.vector_store %arg4[%c2_61, %c0_62, %c0_63], %90 {strides = array<i32>} : memref<4x8x128xf32, #tpu.memory_space<vmem>>, vector<1x8x128xf32>,
    %c2_64 = arith.constant 2 : index
    %c0_65 = arith.constant 0 : index
    %c0_66 = arith.constant 0 : index
    %91 = vector.load %arg5[%c2_64, %c0_65, %c0_66] : memref<4x8x128xf32, #tpu.memory_space<vmem>>, vector<1x8x128xf32>
    %92 = vector.shape_cast %91 : vector<1x8x128xf32> to vector<8x128xf32>
    %93 = vector.shape_cast %8 : vector<8x128xf32> to vector<1x8x128xf32>
    tpu.vector_store %arg5[%c2_64, %c0_65, %c0_66], %93 {strides = array<i32>} : memref<4x8x128xf32, #tpu.memory_space<vmem>>, vector<1x8x128xf32>,
    %94 = arith.mulf %87, %87 : vector<8x128xf32>
    %95 = arith.mulf %8, %8 : vector<8x128xf32>
    %96 = arith.addf %94, %95 : vector<8x128xf32>
    %cst_67 = arith.constant 9.99999968E-21 : f32
    %97 = vector.broadcast %cst_67 : f32 to vector<8x128xf32>
    %98 = arith.addf %96, %97 : vector<8x128xf32>
    %99 = math.rsqrt %98 : vector<8x128xf32>
    %100 = arith.mulf %96, %99 : vector<8x128xf32>
    %cst_68 = arith.constant dense<0.000000e+00> : vector<8xf32>
    %101 = vector.multi_reduction <add>, %100, %cst_68 [1] : vector<8x128xf32> to vector<8xf32>
    %102 = vector.shape_cast %101 : vector<8xf32> to vector<8x1xf32>
    %103 = arith.addf %71, %102 : vector<8x1xf32>
    %cst_69 = arith.constant dense<0.000000e+00> : vector<8xf32>
    %104 = vector.multi_reduction <add>, %96, %cst_69 [1] : vector<8x128xf32> to vector<8xf32>
    %105 = vector.shape_cast %104 : vector<8xf32> to vector<8x1xf32>
    %106 = arith.addf %74, %105 : vector<8x1xf32>
    %c3_70 = arith.constant 3 : index
    %c0_71 = arith.constant 0 : index
    %c0_72 = arith.constant 0 : index
    %107 = vector.load %arg1[%c3_70, %c0_71, %c0_72] : memref<6x27x128xbf16, #tpu.memory_space<vmem>>, vector<1x27x128xbf16>
    %108 = vector.shape_cast %107 : vector<1x27x128xbf16> to vector<27x128xbf16>
    %cst_73 = arith.constant dense<0.000000e+00> : vector<8x128xf32>
    %109 = tpu.matmul %2, %108, %cst_73 {dimension_numbers = #tpu.dot_dimension_numbers<[1], [0], [0], [1], [0, 0, 1, 1], [], []>} : vector<8x27xbf16>, vector<27x128xbf16>, vector<8x128xf32> -> vector<8x128xf32>
    %c4_74 = arith.constant 4 : index
    %c0_75 = arith.constant 0 : index
    %c0_76 = arith.constant 0 : index
    %110 = vector.load %arg1[%c4_74, %c0_75, %c0_76] : memref<6x27x128xbf16, #tpu.memory_space<vmem>>, vector<1x27x128xbf16>
    %111 = vector.shape_cast %110 : vector<1x27x128xbf16> to vector<27x128xbf16>
    %cst_77 = arith.constant dense<0.000000e+00> : vector<8x128xf32>
    %112 = tpu.matmul %4, %111, %cst_77 {dimension_numbers = #tpu.dot_dimension_numbers<[1], [0], [0], [1], [0, 0, 1, 1], [], []>} : vector<8x27xbf16>, vector<27x128xbf16>, vector<8x128xf32> -> vector<8x128xf32>
    %113 = arith.addf %109, %112 : vector<8x128xf32>
    %c5 = arith.constant 5 : index
    %c0_78 = arith.constant 0 : index
    %c0_79 = arith.constant 0 : index
    %114 = vector.load %arg1[%c5, %c0_78, %c0_79] : memref<6x27x128xbf16, #tpu.memory_space<vmem>>, vector<1x27x128xbf16>
    %115 = vector.shape_cast %114 : vector<1x27x128xbf16> to vector<27x128xbf16>
    %cst_80 = arith.constant dense<0.000000e+00> : vector<8x128xf32>
    %116 = tpu.matmul %6, %115, %cst_80 {dimension_numbers = #tpu.dot_dimension_numbers<[1], [0], [0], [1], [0, 0, 1, 1], [], []>} : vector<8x27xbf16>, vector<27x128xbf16>, vector<8x128xf32> -> vector<8x128xf32>
    %117 = arith.addf %113, %116 : vector<8x128xf32>
    %118 = vector.broadcast %0 : vector<8x1xf32> to vector<8x128xf32>
    %119 = arith.addf %117, %118 : vector<8x128xf32>
    %c3_81 = arith.constant 3 : index
    %c0_82 = arith.constant 0 : index
    %c0_83 = arith.constant 0 : index
    %120 = vector.load %arg4[%c3_81, %c0_82, %c0_83] : memref<4x8x128xf32, #tpu.memory_space<vmem>>, vector<1x8x128xf32>
    %121 = vector.shape_cast %120 : vector<1x8x128xf32> to vector<8x128xf32>
    %122 = vector.shape_cast %119 : vector<8x128xf32> to vector<1x8x128xf32>
    tpu.vector_store %arg4[%c3_81, %c0_82, %c0_83], %122 {strides = array<i32>} : memref<4x8x128xf32, #tpu.memory_space<vmem>>, vector<1x8x128xf32>,
    %c3_84 = arith.constant 3 : index
    %c0_85 = arith.constant 0 : index
    %c0_86 = arith.constant 0 : index
    %123 = vector.load %arg5[%c3_84, %c0_85, %c0_86] : memref<4x8x128xf32, #tpu.memory_space<vmem>>, vector<1x8x128xf32>
    %124 = vector.shape_cast %123 : vector<1x8x128xf32> to vector<8x128xf32>
    %125 = vector.shape_cast %8 : vector<8x128xf32> to vector<1x8x128xf32>
    tpu.vector_store %arg5[%c3_84, %c0_85, %c0_86], %125 {strides = array<i32>} : memref<4x8x128xf32, #tpu.memory_space<vmem>>, vector<1x8x128xf32>,
    %126 = arith.mulf %119, %119 : vector<8x128xf32>
    %127 = arith.mulf %8, %8 : vector<8x128xf32>
    %128 = arith.addf %126, %127 : vector<8x128xf32>
    %cst_87 = arith.constant 9.99999968E-21 : f32
    %129 = vector.broadcast %cst_87 : f32 to vector<8x128xf32>
    %130 = arith.addf %128, %129 : vector<8x128xf32>
    %131 = math.rsqrt %130 : vector<8x128xf32>
    %132 = arith.mulf %128, %131 : vector<8x128xf32>
    %cst_88 = arith.constant dense<0.000000e+00> : vector<8xf32>
    %133 = vector.multi_reduction <add>, %132, %cst_88 [1] : vector<8x128xf32> to vector<8xf32>
    %134 = vector.shape_cast %133 : vector<8xf32> to vector<8x1xf32>
    %135 = arith.addf %103, %134 : vector<8x1xf32>
    %cst_89 = arith.constant dense<0.000000e+00> : vector<8xf32>
    %136 = vector.multi_reduction <add>, %128, %cst_89 [1] : vector<8x128xf32> to vector<8xf32>
    %137 = vector.shape_cast %136 : vector<8xf32> to vector<8x1xf32>
    %138 = arith.addf %106, %137 : vector<8x1xf32>
    %c0_90 = arith.constant 0 : index
    %c0_91 = arith.constant 0 : index
    %c0_92 = arith.constant 0 : index
    %c0_93 = arith.constant 0 : index
    %139 = vector.load %arg6[%c0_90, %c0_91, %c0_92, %c0_93] : memref<1x2x8x1xf32, #tpu.memory_space<vmem>>, vector<1x1x8x1xf32>
    %140 = vector.shape_cast %139 : vector<1x1x8x1xf32> to vector<8x1xf32>
    %141 = vector.shape_cast %135 : vector<8x1xf32> to vector<1x1x8x1xf32>
    tpu.vector_store %arg6[%c0_90, %c0_91, %c0_92, %c0_93], %141 {strides = array<i32>} : memref<1x2x8x1xf32, #tpu.memory_space<vmem>>, vector<1x1x8x1xf32>,
    %c0_94 = arith.constant 0 : index
    %c1_95 = arith.constant 1 : index
    %c0_96 = arith.constant 0 : index
    %c0_97 = arith.constant 0 : index
    %142 = vector.load %arg6[%c0_94, %c1_95, %c0_96, %c0_97] : memref<1x2x8x1xf32, #tpu.memory_space<vmem>>, vector<1x1x8x1xf32>
    %143 = vector.shape_cast %142 : vector<1x1x8x1xf32> to vector<8x1xf32>
    %144 = vector.shape_cast %138 : vector<8x1xf32> to vector<1x1x8x1xf32>
    tpu.vector_store %arg6[%c0_94, %c1_95, %c0_96, %c0_97], %144 {strides = array<i32>} : memref<1x2x8x1xf32, #tpu.memory_space<vmem>>, vector<1x1x8x1xf32>,
    return
  }
  func.func @transform_0(%arg0: i32) -> (i32, i32, i32) {
    %c0_i32 = arith.constant 0 : i32
    %c0_i32_0 = arith.constant 0 : i32
    %c0_i32_1 = arith.constant 0 : i32
    return %c0_i32, %c0_i32_0, %arg0 : i32, i32, i32
  }
  func.func @transform_1(%arg0: i32) -> (i32, i32, i32) {
    %c0_i32 = arith.constant 0 : i32
    %c0_i32_0 = arith.constant 0 : i32
    %c0_i32_1 = arith.constant 0 : i32
    %c0_i32_2 = arith.constant 0 : i32
    return %c0_i32, %c0_i32_0, %c0_i32_1 : i32, i32, i32
  }
  func.func @transform_2(%arg0: i32) -> (i32, i32) {
    %c0_i32 = arith.constant 0 : i32
    %c0_i32_0 = arith.constant 0 : i32
    %c0_i32_1 = arith.constant 0 : i32
    return %c0_i32, %c0_i32_0 : i32, i32
  }
  func.func @transform_3(%arg0: i32) -> (i32, i32, i32) {
    %c0_i32 = arith.constant 0 : i32
    %c0_i32_0 = arith.constant 0 : i32
    %c0_i32_1 = arith.constant 0 : i32
    return %c0_i32, %c0_i32_0, %arg0 : i32, i32, i32
  }
  func.func @transform_4(%arg0: i32) -> (i32, i32, i32) {
    %c0_i32 = arith.constant 0 : i32
    %c0_i32_0 = arith.constant 0 : i32
    %c0_i32_1 = arith.constant 0 : i32
    return %c0_i32, %c0_i32_0, %arg0 : i32, i32, i32
  }
  func.func @transform_5(%arg0: i32) -> (i32, i32, i32, i32) {
    %c0_i32 = arith.constant 0 : i32
    %c0_i32_0 = arith.constant 0 : i32
    %c0_i32_1 = arith.constant 0 : i32
    %c0_i32_2 = arith.constant 0 : i32
    return %arg0, %c0_i32, %c0_i32_0, %c0_i32_1 : i32, i32, i32, i32
  }
}

module attributes {stable_mosaic.version = 11 : i64} {
  func.func @bn_relu_recombine_kernel(%arg0: i32, %arg1: i32, %arg2: memref<1x8x128xf32, #tpu.memory_space<vmem>>, %arg3: memref<1x8x128xf32, #tpu.memory_space<vmem>>, %arg4: memref<8x1xf32, #tpu.memory_space<vmem>>, %arg5: memref<8x1xf32, #tpu.memory_space<vmem>>, %arg6: memref<1x8x128xbf16, #tpu.memory_space<vmem>>, %arg7: memref<1x8x128xbf16, #tpu.memory_space<vmem>>) attributes {dimension_semantics = [#tpu.dimension_semantics<parallel>, #tpu.dimension_semantics<parallel>], iteration_bounds = array<i64: 4, 1>, scalar_prefetch = 0 : i64, scratch_operands = 0 : i64, tpu.core_type = #tpu.core_type<tc>, window_params = [{transform_indices = @transform_0, window_bounds = array<i64: 1, 8, 128>}, {transform_indices = @transform_1, window_bounds = array<i64: 1, 8, 128>}, {pipeline_mode = #tpu.pipeline_mode<synchronous>, transform_indices = @transform_2, window_bounds = array<i64: 8, 1>}, {pipeline_mode = #tpu.pipeline_mode<synchronous>, transform_indices = @transform_3, window_bounds = array<i64: 8, 1>}, {transform_indices = @transform_4, window_bounds = array<i64: 1, 8, 128>}, {transform_indices = @transform_5, window_bounds = array<i64: 1, 8, 128>}]} {
    %c0 = arith.constant 0 : index
    %c0_0 = arith.constant 0 : index
    %c0_1 = arith.constant 0 : index
    %0 = vector.load %arg2[%c0, %c0_0, %c0_1] : memref<1x8x128xf32, #tpu.memory_space<vmem>>, vector<1x8x128xf32>
    %1 = vector.shape_cast %0 : vector<1x8x128xf32> to vector<8x128xf32>
    %c0_2 = arith.constant 0 : index
    %c0_3 = arith.constant 0 : index
    %c0_4 = arith.constant 0 : index
    %2 = vector.load %arg3[%c0_2, %c0_3, %c0_4] : memref<1x8x128xf32, #tpu.memory_space<vmem>>, vector<1x8x128xf32>
    %3 = vector.shape_cast %2 : vector<1x8x128xf32> to vector<8x128xf32>
    %4 = arith.mulf %1, %1 : vector<8x128xf32>
    %5 = arith.mulf %3, %3 : vector<8x128xf32>
    %6 = arith.addf %4, %5 : vector<8x128xf32>
    %cst = arith.constant 9.99999968E-21 : f32
    %7 = vector.broadcast %cst : f32 to vector<8x128xf32>
    %8 = arith.addf %6, %7 : vector<8x128xf32>
    %9 = math.rsqrt %8 : vector<8x128xf32>
    %10 = arith.mulf %6, %9 : vector<8x128xf32>
    %c0_5 = arith.constant 0 : index
    %c0_6 = arith.constant 0 : index
    %11 = vector.load %arg4[%c0_5, %c0_6] : memref<8x1xf32, #tpu.memory_space<vmem>>, vector<8x1xf32>
    %12 = vector.broadcast %11 : vector<8x1xf32> to vector<8x128xf32>
    %13 = arith.mulf %10, %12 : vector<8x128xf32>
    %c0_7 = arith.constant 0 : index
    %c0_8 = arith.constant 0 : index
    %14 = vector.load %arg5[%c0_7, %c0_8] : memref<8x1xf32, #tpu.memory_space<vmem>>, vector<8x1xf32>
    %15 = vector.broadcast %14 : vector<8x1xf32> to vector<8x128xf32>
    %16 = arith.addf %13, %15 : vector<8x128xf32>
    %cst_9 = arith.constant 0.000000e+00 : f32
    %17 = vector.broadcast %cst_9 : f32 to vector<8x128xf32>
    %18 = arith.maximumf %16, %17 : vector<8x128xf32>
    %19 = arith.mulf %18, %9 : vector<8x128xf32>
    %20 = arith.mulf %1, %19 : vector<8x128xf32>
    %21 = arith.truncf %20 : vector<8x128xf32> to vector<8x128xbf16>
    %c0_10 = arith.constant 0 : index
    %c0_11 = arith.constant 0 : index
    %c0_12 = arith.constant 0 : index
    %22 = vector.load %arg6[%c0_10, %c0_11, %c0_12] : memref<1x8x128xbf16, #tpu.memory_space<vmem>>, vector<1x8x128xbf16>
    %23 = vector.shape_cast %22 : vector<1x8x128xbf16> to vector<8x128xbf16>
    %24 = vector.shape_cast %21 : vector<8x128xbf16> to vector<1x8x128xbf16>
    tpu.vector_store %arg6[%c0_10, %c0_11, %c0_12], %24 {strides = array<i32>} : memref<1x8x128xbf16, #tpu.memory_space<vmem>>, vector<1x8x128xbf16>,
    %25 = arith.mulf %3, %19 : vector<8x128xf32>
    %26 = arith.truncf %25 : vector<8x128xf32> to vector<8x128xbf16>
    %c0_13 = arith.constant 0 : index
    %c0_14 = arith.constant 0 : index
    %c0_15 = arith.constant 0 : index
    %27 = vector.load %arg7[%c0_13, %c0_14, %c0_15] : memref<1x8x128xbf16, #tpu.memory_space<vmem>>, vector<1x8x128xbf16>
    %28 = vector.shape_cast %27 : vector<1x8x128xbf16> to vector<8x128xbf16>
    %29 = vector.shape_cast %26 : vector<8x128xbf16> to vector<1x8x128xbf16>
    tpu.vector_store %arg7[%c0_13, %c0_14, %c0_15], %29 {strides = array<i32>} : memref<1x8x128xbf16, #tpu.memory_space<vmem>>, vector<1x8x128xbf16>,
    return
  }
  func.func @transform_0(%arg0: i32, %arg1: i32) -> (i32, i32, i32) {
    %c0_i32 = arith.constant 0 : i32
    %c0_i32_0 = arith.constant 0 : i32
    return %arg0, %c0_i32, %arg1 : i32, i32, i32
  }
  func.func @transform_1(%arg0: i32, %arg1: i32) -> (i32, i32, i32) {
    %c0_i32 = arith.constant 0 : i32
    %c0_i32_0 = arith.constant 0 : i32
    return %arg0, %c0_i32, %arg1 : i32, i32, i32
  }
  func.func @transform_2(%arg0: i32, %arg1: i32) -> (i32, i32) {
    %c0_i32 = arith.constant 0 : i32
    %c0_i32_0 = arith.constant 0 : i32
    %c0_i32_1 = arith.constant 0 : i32
    return %c0_i32, %c0_i32_0 : i32, i32
  }
  func.func @transform_3(%arg0: i32, %arg1: i32) -> (i32, i32) {
    %c0_i32 = arith.constant 0 : i32
    %c0_i32_0 = arith.constant 0 : i32
    %c0_i32_1 = arith.constant 0 : i32
    return %c0_i32, %c0_i32_0 : i32, i32
  }
  func.func @transform_4(%arg0: i32, %arg1: i32) -> (i32, i32, i32) {
    %c0_i32 = arith.constant 0 : i32
    %c0_i32_0 = arith.constant 0 : i32
    return %arg0, %c0_i32, %arg1 : i32, i32, i32
  }
  func.func @transform_5(%arg0: i32, %arg1: i32) -> (i32, i32, i32) {
    %c0_i32 = arith.constant 0 : i32
    %c0_i32_0 = arith.constant 0 : i32
    return %arg0, %c0_i32, %arg1 : i32, i32, i32
  }
}

module attributes {stable_mosaic.version = 11 : i64} {
  func.func @conv_taps_cplx_kernel(%arg0: i32, %arg1: memref<6x36x32xbf16, #tpu.memory_space<vmem>>, %arg2: memref<6x36x32xbf16, #tpu.memory_space<vmem>>, %arg3: memref<3x8x36xbf16, #tpu.memory_space<vmem>>, %arg4: memref<8x1xf32, #tpu.memory_space<vmem>>, %arg5: memref<4x8x32xf32, #tpu.memory_space<vmem>>, %arg6: memref<4x8x32xf32, #tpu.memory_space<vmem>>, %arg7: memref<1x2x8x1xf32, #tpu.memory_space<vmem>>) attributes {dimension_semantics = [#tpu.dimension_semantics<parallel>], iteration_bounds = array<i64: 1>, scalar_prefetch = 0 : i64, scratch_operands = 0 : i64, tpu.core_type = #tpu.core_type<tc>, window_params = [{transform_indices = @transform_0, window_bounds = array<i64: 6, 36, 32>}, {transform_indices = @transform_1, window_bounds = array<i64: 6, 36, 32>}, {pipeline_mode = #tpu.pipeline_mode<synchronous>, transform_indices = @transform_2, window_bounds = array<i64: 3, 8, 36>}, {pipeline_mode = #tpu.pipeline_mode<synchronous>, transform_indices = @transform_3, window_bounds = array<i64: 8, 1>}, {transform_indices = @transform_4, window_bounds = array<i64: 4, 8, 32>}, {transform_indices = @transform_5, window_bounds = array<i64: 4, 8, 32>}, {transform_indices = @transform_6, window_bounds = array<i64: 1, 2, 8, 1>}]} {
    %c0 = arith.constant 0 : index
    %c0_0 = arith.constant 0 : index
    %0 = vector.load %arg4[%c0, %c0_0] : memref<8x1xf32, #tpu.memory_space<vmem>>, vector<8x1xf32>
    %c0_1 = arith.constant 0 : index
    %c0_2 = arith.constant 0 : index
    %c0_3 = arith.constant 0 : index
    %1 = vector.load %arg3[%c0_1, %c0_2, %c0_3] : memref<3x8x36xbf16, #tpu.memory_space<vmem>>, vector<1x8x36xbf16>
    %2 = vector.shape_cast %1 : vector<1x8x36xbf16> to vector<8x36xbf16>
    %c1 = arith.constant 1 : index
    %c0_4 = arith.constant 0 : index
    %c0_5 = arith.constant 0 : index
    %3 = vector.load %arg3[%c1, %c0_4, %c0_5] : memref<3x8x36xbf16, #tpu.memory_space<vmem>>, vector<1x8x36xbf16>
    %4 = vector.shape_cast %3 : vector<1x8x36xbf16> to vector<8x36xbf16>
    %c2 = arith.constant 2 : index
    %c0_6 = arith.constant 0 : index
    %c0_7 = arith.constant 0 : index
    %5 = vector.load %arg3[%c2, %c0_6, %c0_7] : memref<3x8x36xbf16, #tpu.memory_space<vmem>>, vector<1x8x36xbf16>
    %6 = vector.shape_cast %5 : vector<1x8x36xbf16> to vector<8x36xbf16>
    %cst = arith.constant 0.000000e+00 : f32
    %7 = vector.broadcast %cst : f32 to vector<8x1xf32>
    %cst_8 = arith.constant 0.000000e+00 : f32
    %8 = vector.broadcast %cst_8 : f32 to vector<8x1xf32>
    %c0_9 = arith.constant 0 : index
    %c0_10 = arith.constant 0 : index
    %c0_11 = arith.constant 0 : index
    %9 = vector.load %arg1[%c0_9, %c0_10, %c0_11] : memref<6x36x32xbf16, #tpu.memory_space<vmem>>, vector<1x36x32xbf16>
    %10 = vector.shape_cast %9 : vector<1x36x32xbf16> to vector<36x32xbf16>
    %cst_12 = arith.constant dense<0.000000e+00> : vector<8x32xf32>
    %11 = tpu.matmul %2, %10, %cst_12 {dimension_numbers = #tpu.dot_dimension_numbers<[1], [0], [0], [1], [0, 0, 1, 1], [], []>} : vector<8x36xbf16>, vector<36x32xbf16>, vector<8x32xf32> -> vector<8x32xf32>
    %c1_13 = arith.constant 1 : index
    %c0_14 = arith.constant 0 : index
    %c0_15 = arith.constant 0 : index
    %12 = vector.load %arg1[%c1_13, %c0_14, %c0_15] : memref<6x36x32xbf16, #tpu.memory_space<vmem>>, vector<1x36x32xbf16>
    %13 = vector.shape_cast %12 : vector<1x36x32xbf16> to vector<36x32xbf16>
    %cst_16 = arith.constant dense<0.000000e+00> : vector<8x32xf32>
    %14 = tpu.matmul %4, %13, %cst_16 {dimension_numbers = #tpu.dot_dimension_numbers<[1], [0], [0], [1], [0, 0, 1, 1], [], []>} : vector<8x36xbf16>, vector<36x32xbf16>, vector<8x32xf32> -> vector<8x32xf32>
    %15 = arith.addf %11, %14 : vector<8x32xf32>
    %c2_17 = arith.constant 2 : index
    %c0_18 = arith.constant 0 : index
    %c0_19 = arith.constant 0 : index
    %16 = vector.load %arg1[%c2_17, %c0_18, %c0_19] : memref<6x36x32xbf16, #tpu.memory_space<vmem>>, vector<1x36x32xbf16>
    %17 = vector.shape_cast %16 : vector<1x36x32xbf16> to vector<36x32xbf16>
    %cst_20 = arith.constant dense<0.000000e+00> : vector<8x32xf32>
    %18 = tpu.matmul %6, %17, %cst_20 {dimension_numbers = #tpu.dot_dimension_numbers<[1], [0], [0], [1], [0, 0, 1, 1], [], []>} : vector<8x36xbf16>, vector<36x32xbf16>, vector<8x32xf32> -> vector<8x32xf32>
    %19 = arith.addf %15, %18 : vector<8x32xf32>
    %20 = vector.broadcast %0 : vector<8x1xf32> to vector<8x32xf32>
    %21 = arith.addf %19, %20 : vector<8x32xf32>
    %c0_21 = arith.constant 0 : index
    %c0_22 = arith.constant 0 : index
    %c0_23 = arith.constant 0 : index
    %22 = vector.load %arg2[%c0_21, %c0_22, %c0_23] : memref<6x36x32xbf16, #tpu.memory_space<vmem>>, vector<1x36x32xbf16>
    %23 = vector.shape_cast %22 : vector<1x36x32xbf16> to vector<36x32xbf16>
    %cst_24 = arith.constant dense<0.000000e+00> : vector<8x32xf32>
    %24 = tpu.matmul %2, %23, %cst_24 {dimension_numbers = #tpu.dot_dimension_numbers<[1], [0], [0], [1], [0, 0, 1, 1], [], []>} : vector<8x36xbf16>, vector<36x32xbf16>, vector<8x32xf32> -> vector<8x32xf32>
    %c1_25 = arith.constant 1 : index
    %c0_26 = arith.constant 0 : index
    %c0_27 = arith.constant 0 : index
    %25 = vector.load %arg2[%c1_25, %c0_26, %c0_27] : memref<6x36x32xbf16, #tpu.memory_space<vmem>>, vector<1x36x32xbf16>
    %26 = vector.shape_cast %25 : vector<1x36x32xbf16> to vector<36x32xbf16>
    %cst_28 = arith.constant dense<0.000000e+00> : vector<8x32xf32>
    %27 = tpu.matmul %4, %26, %cst_28 {dimension_numbers = #tpu.dot_dimension_numbers<[1], [0], [0], [1], [0, 0, 1, 1], [], []>} : vector<8x36xbf16>, vector<36x32xbf16>, vector<8x32xf32> -> vector<8x32xf32>
    %28 = arith.addf %24, %27 : vector<8x32xf32>
    %c2_29 = arith.constant 2 : index
    %c0_30 = arith.constant 0 : index
    %c0_31 = arith.constant 0 : index
    %29 = vector.load %arg2[%c2_29, %c0_30, %c0_31] : memref<6x36x32xbf16, #tpu.memory_space<vmem>>, vector<1x36x32xbf16>
    %30 = vector.shape_cast %29 : vector<1x36x32xbf16> to vector<36x32xbf16>
    %cst_32 = arith.constant dense<0.000000e+00> : vector<8x32xf32>
    %31 = tpu.matmul %6, %30, %cst_32 {dimension_numbers = #tpu.dot_dimension_numbers<[1], [0], [0], [1], [0, 0, 1, 1], [], []>} : vector<8x36xbf16>, vector<36x32xbf16>, vector<8x32xf32> -> vector<8x32xf32>
    %32 = arith.addf %28, %31 : vector<8x32xf32>
    %33 = vector.broadcast %0 : vector<8x1xf32> to vector<8x32xf32>
    %34 = arith.addf %32, %33 : vector<8x32xf32>
    %c0_33 = arith.constant 0 : index
    %c0_34 = arith.constant 0 : index
    %c0_35 = arith.constant 0 : index
    %35 = vector.load %arg5[%c0_33, %c0_34, %c0_35] : memref<4x8x32xf32, #tpu.memory_space<vmem>>, vector<1x8x32xf32>
    %36 = vector.shape_cast %35 : vector<1x8x32xf32> to vector<8x32xf32>
    %37 = vector.shape_cast %21 : vector<8x32xf32> to vector<1x8x32xf32>
    tpu.vector_store %arg5[%c0_33, %c0_34, %c0_35], %37 {strides = array<i32>} : memref<4x8x32xf32, #tpu.memory_space<vmem>>, vector<1x8x32xf32>,
    %c0_36 = arith.constant 0 : index
    %c0_37 = arith.constant 0 : index
    %c0_38 = arith.constant 0 : index
    %38 = vector.load %arg6[%c0_36, %c0_37, %c0_38] : memref<4x8x32xf32, #tpu.memory_space<vmem>>, vector<1x8x32xf32>
    %39 = vector.shape_cast %38 : vector<1x8x32xf32> to vector<8x32xf32>
    %40 = vector.shape_cast %34 : vector<8x32xf32> to vector<1x8x32xf32>
    tpu.vector_store %arg6[%c0_36, %c0_37, %c0_38], %40 {strides = array<i32>} : memref<4x8x32xf32, #tpu.memory_space<vmem>>, vector<1x8x32xf32>,
    %41 = arith.mulf %21, %21 : vector<8x32xf32>
    %42 = arith.mulf %34, %34 : vector<8x32xf32>
    %43 = arith.addf %41, %42 : vector<8x32xf32>
    %cst_39 = arith.constant 9.99999968E-21 : f32
    %44 = vector.broadcast %cst_39 : f32 to vector<8x32xf32>
    %45 = arith.addf %43, %44 : vector<8x32xf32>
    %46 = math.rsqrt %45 : vector<8x32xf32>
    %47 = arith.mulf %43, %46 : vector<8x32xf32>
    %cst_40 = arith.constant dense<0.000000e+00> : vector<8xf32>
    %48 = vector.multi_reduction <add>, %47, %cst_40 [1] : vector<8x32xf32> to vector<8xf32>
    %49 = vector.shape_cast %48 : vector<8xf32> to vector<8x1xf32>
    %50 = arith.addf %7, %49 : vector<8x1xf32>
    %cst_41 = arith.constant dense<0.000000e+00> : vector<8xf32>
    %51 = vector.multi_reduction <add>, %43, %cst_41 [1] : vector<8x32xf32> to vector<8xf32>
    %52 = vector.shape_cast %51 : vector<8xf32> to vector<8x1xf32>
    %53 = arith.addf %8, %52 : vector<8x1xf32>
    %c1_42 = arith.constant 1 : index
    %c0_43 = arith.constant 0 : index
    %c0_44 = arith.constant 0 : index
    %54 = vector.load %arg1[%c1_42, %c0_43, %c0_44] : memref<6x36x32xbf16, #tpu.memory_space<vmem>>, vector<1x36x32xbf16>
    %55 = vector.shape_cast %54 : vector<1x36x32xbf16> to vector<36x32xbf16>
    %cst_45 = arith.constant dense<0.000000e+00> : vector<8x32xf32>
    %56 = tpu.matmul %2, %55, %cst_45 {dimension_numbers = #tpu.dot_dimension_numbers<[1], [0], [0], [1], [0, 0, 1, 1], [], []>} : vector<8x36xbf16>, vector<36x32xbf16>, vector<8x32xf32> -> vector<8x32xf32>
    %c2_46 = arith.constant 2 : index
    %c0_47 = arith.constant 0 : index
    %c0_48 = arith.constant 0 : index
    %57 = vector.load %arg1[%c2_46, %c0_47, %c0_48] : memref<6x36x32xbf16, #tpu.memory_space<vmem>>, vector<1x36x32xbf16>
    %58 = vector.shape_cast %57 : vector<1x36x32xbf16> to vector<36x32xbf16>
    %cst_49 = arith.constant dense<0.000000e+00> : vector<8x32xf32>
    %59 = tpu.matmul %4, %58, %cst_49 {dimension_numbers = #tpu.dot_dimension_numbers<[1], [0], [0], [1], [0, 0, 1, 1], [], []>} : vector<8x36xbf16>, vector<36x32xbf16>, vector<8x32xf32> -> vector<8x32xf32>
    %60 = arith.addf %56, %59 : vector<8x32xf32>
    %c3 = arith.constant 3 : index
    %c0_50 = arith.constant 0 : index
    %c0_51 = arith.constant 0 : index
    %61 = vector.load %arg1[%c3, %c0_50, %c0_51] : memref<6x36x32xbf16, #tpu.memory_space<vmem>>, vector<1x36x32xbf16>
    %62 = vector.shape_cast %61 : vector<1x36x32xbf16> to vector<36x32xbf16>
    %cst_52 = arith.constant dense<0.000000e+00> : vector<8x32xf32>
    %63 = tpu.matmul %6, %62, %cst_52 {dimension_numbers = #tpu.dot_dimension_numbers<[1], [0], [0], [1], [0, 0, 1, 1], [], []>} : vector<8x36xbf16>, vector<36x32xbf16>, vector<8x32xf32> -> vector<8x32xf32>
    %64 = arith.addf %60, %63 : vector<8x32xf32>
    %65 = vector.broadcast %0 : vector<8x1xf32> to vector<8x32xf32>
    %66 = arith.addf %64, %65 : vector<8x32xf32>
    %c1_53 = arith.constant 1 : index
    %c0_54 = arith.constant 0 : index
    %c0_55 = arith.constant 0 : index
    %67 = vector.load %arg2[%c1_53, %c0_54, %c0_55] : memref<6x36x32xbf16, #tpu.memory_space<vmem>>, vector<1x36x32xbf16>
    %68 = vector.shape_cast %67 : vector<1x36x32xbf16> to vector<36x32xbf16>
    %cst_56 = arith.constant dense<0.000000e+00> : vector<8x32xf32>
    %69 = tpu.matmul %2, %68, %cst_56 {dimension_numbers = #tpu.dot_dimension_numbers<[1], [0], [0], [1], [0, 0, 1, 1], [], []>} : vector<8x36xbf16>, vector<36x32xbf16>, vector<8x32xf32> -> vector<8x32xf32>
    %c2_57 = arith.constant 2 : index
    %c0_58 = arith.constant 0 : index
    %c0_59 = arith.constant 0 : index
    %70 = vector.load %arg2[%c2_57, %c0_58, %c0_59] : memref<6x36x32xbf16, #tpu.memory_space<vmem>>, vector<1x36x32xbf16>
    %71 = vector.shape_cast %70 : vector<1x36x32xbf16> to vector<36x32xbf16>
    %cst_60 = arith.constant dense<0.000000e+00> : vector<8x32xf32>
    %72 = tpu.matmul %4, %71, %cst_60 {dimension_numbers = #tpu.dot_dimension_numbers<[1], [0], [0], [1], [0, 0, 1, 1], [], []>} : vector<8x36xbf16>, vector<36x32xbf16>, vector<8x32xf32> -> vector<8x32xf32>
    %73 = arith.addf %69, %72 : vector<8x32xf32>
    %c3_61 = arith.constant 3 : index
    %c0_62 = arith.constant 0 : index
    %c0_63 = arith.constant 0 : index
    %74 = vector.load %arg2[%c3_61, %c0_62, %c0_63] : memref<6x36x32xbf16, #tpu.memory_space<vmem>>, vector<1x36x32xbf16>
    %75 = vector.shape_cast %74 : vector<1x36x32xbf16> to vector<36x32xbf16>
    %cst_64 = arith.constant dense<0.000000e+00> : vector<8x32xf32>
    %76 = tpu.matmul %6, %75, %cst_64 {dimension_numbers = #tpu.dot_dimension_numbers<[1], [0], [0], [1], [0, 0, 1, 1], [], []>} : vector<8x36xbf16>, vector<36x32xbf16>, vector<8x32xf32> -> vector<8x32xf32>
    %77 = arith.addf %73, %76 : vector<8x32xf32>
    %78 = vector.broadcast %0 : vector<8x1xf32> to vector<8x32xf32>
    %79 = arith.addf %77, %78 : vector<8x32xf32>
    %c1_65 = arith.constant 1 : index
    %c0_66 = arith.constant 0 : index
    %c0_67 = arith.constant 0 : index
    %80 = vector.load %arg5[%c1_65, %c0_66, %c0_67] : memref<4x8x32xf32, #tpu.memory_space<vmem>>, vector<1x8x32xf32>
    %81 = vector.shape_cast %80 : vector<1x8x32xf32> to vector<8x32xf32>
    %82 = vector.shape_cast %66 : vector<8x32xf32> to vector<1x8x32xf32>
    tpu.vector_store %arg5[%c1_65, %c0_66, %c0_67], %82 {strides = array<i32>} : memref<4x8x32xf32, #tpu.memory_space<vmem>>, vector<1x8x32xf32>,
    %c1_68 = arith.constant 1 : index
    %c0_69 = arith.constant 0 : index
    %c0_70 = arith.constant 0 : index
    %83 = vector.load %arg6[%c1_68, %c0_69, %c0_70] : memref<4x8x32xf32, #tpu.memory_space<vmem>>, vector<1x8x32xf32>
    %84 = vector.shape_cast %83 : vector<1x8x32xf32> to vector<8x32xf32>
    %85 = vector.shape_cast %79 : vector<8x32xf32> to vector<1x8x32xf32>
    tpu.vector_store %arg6[%c1_68, %c0_69, %c0_70], %85 {strides = array<i32>} : memref<4x8x32xf32, #tpu.memory_space<vmem>>, vector<1x8x32xf32>,
    %86 = arith.mulf %66, %66 : vector<8x32xf32>
    %87 = arith.mulf %79, %79 : vector<8x32xf32>
    %88 = arith.addf %86, %87 : vector<8x32xf32>
    %cst_71 = arith.constant 9.99999968E-21 : f32
    %89 = vector.broadcast %cst_71 : f32 to vector<8x32xf32>
    %90 = arith.addf %88, %89 : vector<8x32xf32>
    %91 = math.rsqrt %90 : vector<8x32xf32>
    %92 = arith.mulf %88, %91 : vector<8x32xf32>
    %cst_72 = arith.constant dense<0.000000e+00> : vector<8xf32>
    %93 = vector.multi_reduction <add>, %92, %cst_72 [1] : vector<8x32xf32> to vector<8xf32>
    %94 = vector.shape_cast %93 : vector<8xf32> to vector<8x1xf32>
    %95 = arith.addf %50, %94 : vector<8x1xf32>
    %cst_73 = arith.constant dense<0.000000e+00> : vector<8xf32>
    %96 = vector.multi_reduction <add>, %88, %cst_73 [1] : vector<8x32xf32> to vector<8xf32>
    %97 = vector.shape_cast %96 : vector<8xf32> to vector<8x1xf32>
    %98 = arith.addf %53, %97 : vector<8x1xf32>
    %c2_74 = arith.constant 2 : index
    %c0_75 = arith.constant 0 : index
    %c0_76 = arith.constant 0 : index
    %99 = vector.load %arg1[%c2_74, %c0_75, %c0_76] : memref<6x36x32xbf16, #tpu.memory_space<vmem>>, vector<1x36x32xbf16>
    %100 = vector.shape_cast %99 : vector<1x36x32xbf16> to vector<36x32xbf16>
    %cst_77 = arith.constant dense<0.000000e+00> : vector<8x32xf32>
    %101 = tpu.matmul %2, %100, %cst_77 {dimension_numbers = #tpu.dot_dimension_numbers<[1], [0], [0], [1], [0, 0, 1, 1], [], []>} : vector<8x36xbf16>, vector<36x32xbf16>, vector<8x32xf32> -> vector<8x32xf32>
    %c3_78 = arith.constant 3 : index
    %c0_79 = arith.constant 0 : index
    %c0_80 = arith.constant 0 : index
    %102 = vector.load %arg1[%c3_78, %c0_79, %c0_80] : memref<6x36x32xbf16, #tpu.memory_space<vmem>>, vector<1x36x32xbf16>
    %103 = vector.shape_cast %102 : vector<1x36x32xbf16> to vector<36x32xbf16>
    %cst_81 = arith.constant dense<0.000000e+00> : vector<8x32xf32>
    %104 = tpu.matmul %4, %103, %cst_81 {dimension_numbers = #tpu.dot_dimension_numbers<[1], [0], [0], [1], [0, 0, 1, 1], [], []>} : vector<8x36xbf16>, vector<36x32xbf16>, vector<8x32xf32> -> vector<8x32xf32>
    %105 = arith.addf %101, %104 : vector<8x32xf32>
    %c4 = arith.constant 4 : index
    %c0_82 = arith.constant 0 : index
    %c0_83 = arith.constant 0 : index
    %106 = vector.load %arg1[%c4, %c0_82, %c0_83] : memref<6x36x32xbf16, #tpu.memory_space<vmem>>, vector<1x36x32xbf16>
    %107 = vector.shape_cast %106 : vector<1x36x32xbf16> to vector<36x32xbf16>
    %cst_84 = arith.constant dense<0.000000e+00> : vector<8x32xf32>
    %108 = tpu.matmul %6, %107, %cst_84 {dimension_numbers = #tpu.dot_dimension_numbers<[1], [0], [0], [1], [0, 0, 1, 1], [], []>} : vector<8x36xbf16>, vector<36x32xbf16>, vector<8x32xf32> -> vector<8x32xf32>
    %109 = arith.addf %105, %108 : vector<8x32xf32>
    %110 = vector.broadcast %0 : vector<8x1xf32> to vector<8x32xf32>
    %111 = arith.addf %109, %110 : vector<8x32xf32>
    %c2_85 = arith.constant 2 : index
    %c0_86 = arith.constant 0 : index
    %c0_87 = arith.constant 0 : index
    %112 = vector.load %arg2[%c2_85, %c0_86, %c0_87] : memref<6x36x32xbf16, #tpu.memory_space<vmem>>, vector<1x36x32xbf16>
    %113 = vector.shape_cast %112 : vector<1x36x32xbf16> to vector<36x32xbf16>
    %cst_88 = arith.constant dense<0.000000e+00> : vector<8x32xf32>
    %114 = tpu.matmul %2, %113, %cst_88 {dimension_numbers = #tpu.dot_dimension_numbers<[1], [0], [0], [1], [0, 0, 1, 1], [], []>} : vector<8x36xbf16>, vector<36x32xbf16>, vector<8x32xf32> -> vector<8x32xf32>
    %c3_89 = arith.constant 3 : index
    %c0_90 = arith.constant 0 : index
    %c0_91 = arith.constant 0 : index
    %115 = vector.load %arg2[%c3_89, %c0_90, %c0_91] : memref<6x36x32xbf16, #tpu.memory_space<vmem>>, vector<1x36x32xbf16>
    %116 = vector.shape_cast %115 : vector<1x36x32xbf16> to vector<36x32xbf16>
    %cst_92 = arith.constant dense<0.000000e+00> : vector<8x32xf32>
    %117 = tpu.matmul %4, %116, %cst_92 {dimension_numbers = #tpu.dot_dimension_numbers<[1], [0], [0], [1], [0, 0, 1, 1], [], []>} : vector<8x36xbf16>, vector<36x32xbf16>, vector<8x32xf32> -> vector<8x32xf32>
    %118 = arith.addf %114, %117 : vector<8x32xf32>
    %c4_93 = arith.constant 4 : index
    %c0_94 = arith.constant 0 : index
    %c0_95 = arith.constant 0 : index
    %119 = vector.load %arg2[%c4_93, %c0_94, %c0_95] : memref<6x36x32xbf16, #tpu.memory_space<vmem>>, vector<1x36x32xbf16>
    %120 = vector.shape_cast %119 : vector<1x36x32xbf16> to vector<36x32xbf16>
    %cst_96 = arith.constant dense<0.000000e+00> : vector<8x32xf32>
    %121 = tpu.matmul %6, %120, %cst_96 {dimension_numbers = #tpu.dot_dimension_numbers<[1], [0], [0], [1], [0, 0, 1, 1], [], []>} : vector<8x36xbf16>, vector<36x32xbf16>, vector<8x32xf32> -> vector<8x32xf32>
    %122 = arith.addf %118, %121 : vector<8x32xf32>
    %123 = vector.broadcast %0 : vector<8x1xf32> to vector<8x32xf32>
    %124 = arith.addf %122, %123 : vector<8x32xf32>
    %c2_97 = arith.constant 2 : index
    %c0_98 = arith.constant 0 : index
    %c0_99 = arith.constant 0 : index
    %125 = vector.load %arg5[%c2_97, %c0_98, %c0_99] : memref<4x8x32xf32, #tpu.memory_space<vmem>>, vector<1x8x32xf32>
    %126 = vector.shape_cast %125 : vector<1x8x32xf32> to vector<8x32xf32>
    %127 = vector.shape_cast %111 : vector<8x32xf32> to vector<1x8x32xf32>
    tpu.vector_store %arg5[%c2_97, %c0_98, %c0_99], %127 {strides = array<i32>} : memref<4x8x32xf32, #tpu.memory_space<vmem>>, vector<1x8x32xf32>,
    %c2_100 = arith.constant 2 : index
    %c0_101 = arith.constant 0 : index
    %c0_102 = arith.constant 0 : index
    %128 = vector.load %arg6[%c2_100, %c0_101, %c0_102] : memref<4x8x32xf32, #tpu.memory_space<vmem>>, vector<1x8x32xf32>
    %129 = vector.shape_cast %128 : vector<1x8x32xf32> to vector<8x32xf32>
    %130 = vector.shape_cast %124 : vector<8x32xf32> to vector<1x8x32xf32>
    tpu.vector_store %arg6[%c2_100, %c0_101, %c0_102], %130 {strides = array<i32>} : memref<4x8x32xf32, #tpu.memory_space<vmem>>, vector<1x8x32xf32>,
    %131 = arith.mulf %111, %111 : vector<8x32xf32>
    %132 = arith.mulf %124, %124 : vector<8x32xf32>
    %133 = arith.addf %131, %132 : vector<8x32xf32>
    %cst_103 = arith.constant 9.99999968E-21 : f32
    %134 = vector.broadcast %cst_103 : f32 to vector<8x32xf32>
    %135 = arith.addf %133, %134 : vector<8x32xf32>
    %136 = math.rsqrt %135 : vector<8x32xf32>
    %137 = arith.mulf %133, %136 : vector<8x32xf32>
    %cst_104 = arith.constant dense<0.000000e+00> : vector<8xf32>
    %138 = vector.multi_reduction <add>, %137, %cst_104 [1] : vector<8x32xf32> to vector<8xf32>
    %139 = vector.shape_cast %138 : vector<8xf32> to vector<8x1xf32>
    %140 = arith.addf %95, %139 : vector<8x1xf32>
    %cst_105 = arith.constant dense<0.000000e+00> : vector<8xf32>
    %141 = vector.multi_reduction <add>, %133, %cst_105 [1] : vector<8x32xf32> to vector<8xf32>
    %142 = vector.shape_cast %141 : vector<8xf32> to vector<8x1xf32>
    %143 = arith.addf %98, %142 : vector<8x1xf32>
    %c3_106 = arith.constant 3 : index
    %c0_107 = arith.constant 0 : index
    %c0_108 = arith.constant 0 : index
    %144 = vector.load %arg1[%c3_106, %c0_107, %c0_108] : memref<6x36x32xbf16, #tpu.memory_space<vmem>>, vector<1x36x32xbf16>
    %145 = vector.shape_cast %144 : vector<1x36x32xbf16> to vector<36x32xbf16>
    %cst_109 = arith.constant dense<0.000000e+00> : vector<8x32xf32>
    %146 = tpu.matmul %2, %145, %cst_109 {dimension_numbers = #tpu.dot_dimension_numbers<[1], [0], [0], [1], [0, 0, 1, 1], [], []>} : vector<8x36xbf16>, vector<36x32xbf16>, vector<8x32xf32> -> vector<8x32xf32>
    %c4_110 = arith.constant 4 : index
    %c0_111 = arith.constant 0 : index
    %c0_112 = arith.constant 0 : index
    %147 = vector.load %arg1[%c4_110, %c0_111, %c0_112] : memref<6x36x32xbf16, #tpu.memory_space<vmem>>, vector<1x36x32xbf16>
    %148 = vector.shape_cast %147 : vector<1x36x32xbf16> to vector<36x32xbf16>
    %cst_113 = arith.constant dense<0.000000e+00> : vector<8x32xf32>
    %149 = tpu.matmul %4, %148, %cst_113 {dimension_numbers = #tpu.dot_dimension_numbers<[1], [0], [0], [1], [0, 0, 1, 1], [], []>} : vector<8x36xbf16>, vector<36x32xbf16>, vector<8x32xf32> -> vector<8x32xf32>
    %150 = arith.addf %146, %149 : vector<8x32xf32>
    %c5 = arith.constant 5 : index
    %c0_114 = arith.constant 0 : index
    %c0_115 = arith.constant 0 : index
    %151 = vector.load %arg1[%c5, %c0_114, %c0_115] : memref<6x36x32xbf16, #tpu.memory_space<vmem>>, vector<1x36x32xbf16>
    %152 = vector.shape_cast %151 : vector<1x36x32xbf16> to vector<36x32xbf16>
    %cst_116 = arith.constant dense<0.000000e+00> : vector<8x32xf32>
    %153 = tpu.matmul %6, %152, %cst_116 {dimension_numbers = #tpu.dot_dimension_numbers<[1], [0], [0], [1], [0, 0, 1, 1], [], []>} : vector<8x36xbf16>, vector<36x32xbf16>, vector<8x32xf32> -> vector<8x32xf32>
    %154 = arith.addf %150, %153 : vector<8x32xf32>
    %155 = vector.broadcast %0 : vector<8x1xf32> to vector<8x32xf32>
    %156 = arith.addf %154, %155 : vector<8x32xf32>
    %c3_117 = arith.constant 3 : index
    %c0_118 = arith.constant 0 : index
    %c0_119 = arith.constant 0 : index
    %157 = vector.load %arg2[%c3_117, %c0_118, %c0_119] : memref<6x36x32xbf16, #tpu.memory_space<vmem>>, vector<1x36x32xbf16>
    %158 = vector.shape_cast %157 : vector<1x36x32xbf16> to vector<36x32xbf16>
    %cst_120 = arith.constant dense<0.000000e+00> : vector<8x32xf32>
    %159 = tpu.matmul %2, %158, %cst_120 {dimension_numbers = #tpu.dot_dimension_numbers<[1], [0], [0], [1], [0, 0, 1, 1], [], []>} : vector<8x36xbf16>, vector<36x32xbf16>, vector<8x32xf32> -> vector<8x32xf32>
    %c4_121 = arith.constant 4 : index
    %c0_122 = arith.constant 0 : index
    %c0_123 = arith.constant 0 : index
    %160 = vector.load %arg2[%c4_121, %c0_122, %c0_123] : memref<6x36x32xbf16, #tpu.memory_space<vmem>>, vector<1x36x32xbf16>
    %161 = vector.shape_cast %160 : vector<1x36x32xbf16> to vector<36x32xbf16>
    %cst_124 = arith.constant dense<0.000000e+00> : vector<8x32xf32>
    %162 = tpu.matmul %4, %161, %cst_124 {dimension_numbers = #tpu.dot_dimension_numbers<[1], [0], [0], [1], [0, 0, 1, 1], [], []>} : vector<8x36xbf16>, vector<36x32xbf16>, vector<8x32xf32> -> vector<8x32xf32>
    %163 = arith.addf %159, %162 : vector<8x32xf32>
    %c5_125 = arith.constant 5 : index
    %c0_126 = arith.constant 0 : index
    %c0_127 = arith.constant 0 : index
    %164 = vector.load %arg2[%c5_125, %c0_126, %c0_127] : memref<6x36x32xbf16, #tpu.memory_space<vmem>>, vector<1x36x32xbf16>
    %165 = vector.shape_cast %164 : vector<1x36x32xbf16> to vector<36x32xbf16>
    %cst_128 = arith.constant dense<0.000000e+00> : vector<8x32xf32>
    %166 = tpu.matmul %6, %165, %cst_128 {dimension_numbers = #tpu.dot_dimension_numbers<[1], [0], [0], [1], [0, 0, 1, 1], [], []>} : vector<8x36xbf16>, vector<36x32xbf16>, vector<8x32xf32> -> vector<8x32xf32>
    %167 = arith.addf %163, %166 : vector<8x32xf32>
    %168 = vector.broadcast %0 : vector<8x1xf32> to vector<8x32xf32>
    %169 = arith.addf %167, %168 : vector<8x32xf32>
    %c3_129 = arith.constant 3 : index
    %c0_130 = arith.constant 0 : index
    %c0_131 = arith.constant 0 : index
    %170 = vector.load %arg5[%c3_129, %c0_130, %c0_131] : memref<4x8x32xf32, #tpu.memory_space<vmem>>, vector<1x8x32xf32>
    %171 = vector.shape_cast %170 : vector<1x8x32xf32> to vector<8x32xf32>
    %172 = vector.shape_cast %156 : vector<8x32xf32> to vector<1x8x32xf32>
    tpu.vector_store %arg5[%c3_129, %c0_130, %c0_131], %172 {strides = array<i32>} : memref<4x8x32xf32, #tpu.memory_space<vmem>>, vector<1x8x32xf32>,
    %c3_132 = arith.constant 3 : index
    %c0_133 = arith.constant 0 : index
    %c0_134 = arith.constant 0 : index
    %173 = vector.load %arg6[%c3_132, %c0_133, %c0_134] : memref<4x8x32xf32, #tpu.memory_space<vmem>>, vector<1x8x32xf32>
    %174 = vector.shape_cast %173 : vector<1x8x32xf32> to vector<8x32xf32>
    %175 = vector.shape_cast %169 : vector<8x32xf32> to vector<1x8x32xf32>
    tpu.vector_store %arg6[%c3_132, %c0_133, %c0_134], %175 {strides = array<i32>} : memref<4x8x32xf32, #tpu.memory_space<vmem>>, vector<1x8x32xf32>,
    %176 = arith.mulf %156, %156 : vector<8x32xf32>
    %177 = arith.mulf %169, %169 : vector<8x32xf32>
    %178 = arith.addf %176, %177 : vector<8x32xf32>
    %cst_135 = arith.constant 9.99999968E-21 : f32
    %179 = vector.broadcast %cst_135 : f32 to vector<8x32xf32>
    %180 = arith.addf %178, %179 : vector<8x32xf32>
    %181 = math.rsqrt %180 : vector<8x32xf32>
    %182 = arith.mulf %178, %181 : vector<8x32xf32>
    %cst_136 = arith.constant dense<0.000000e+00> : vector<8xf32>
    %183 = vector.multi_reduction <add>, %182, %cst_136 [1] : vector<8x32xf32> to vector<8xf32>
    %184 = vector.shape_cast %183 : vector<8xf32> to vector<8x1xf32>
    %185 = arith.addf %140, %184 : vector<8x1xf32>
    %cst_137 = arith.constant dense<0.000000e+00> : vector<8xf32>
    %186 = vector.multi_reduction <add>, %178, %cst_137 [1] : vector<8x32xf32> to vector<8xf32>
    %187 = vector.shape_cast %186 : vector<8xf32> to vector<8x1xf32>
    %188 = arith.addf %143, %187 : vector<8x1xf32>
    %c0_138 = arith.constant 0 : index
    %c0_139 = arith.constant 0 : index
    %c0_140 = arith.constant 0 : index
    %c0_141 = arith.constant 0 : index
    %189 = vector.load %arg7[%c0_138, %c0_139, %c0_140, %c0_141] : memref<1x2x8x1xf32, #tpu.memory_space<vmem>>, vector<1x1x8x1xf32>
    %190 = vector.shape_cast %189 : vector<1x1x8x1xf32> to vector<8x1xf32>
    %191 = vector.shape_cast %185 : vector<8x1xf32> to vector<1x1x8x1xf32>
    tpu.vector_store %arg7[%c0_138, %c0_139, %c0_140, %c0_141], %191 {strides = array<i32>} : memref<1x2x8x1xf32, #tpu.memory_space<vmem>>, vector<1x1x8x1xf32>,
    %c0_142 = arith.constant 0 : index
    %c1_143 = arith.constant 1 : index
    %c0_144 = arith.constant 0 : index
    %c0_145 = arith.constant 0 : index
    %192 = vector.load %arg7[%c0_142, %c1_143, %c0_144, %c0_145] : memref<1x2x8x1xf32, #tpu.memory_space<vmem>>, vector<1x1x8x1xf32>
    %193 = vector.shape_cast %192 : vector<1x1x8x1xf32> to vector<8x1xf32>
    %194 = vector.shape_cast %188 : vector<8x1xf32> to vector<1x1x8x1xf32>
    tpu.vector_store %arg7[%c0_142, %c1_143, %c0_144, %c0_145], %194 {strides = array<i32>} : memref<1x2x8x1xf32, #tpu.memory_space<vmem>>, vector<1x1x8x1xf32>,
    return
  }
  func.func @transform_0(%arg0: i32) -> (i32, i32, i32) {
    %c0_i32 = arith.constant 0 : i32
    %c0_i32_0 = arith.constant 0 : i32
    %c0_i32_1 = arith.constant 0 : i32
    return %c0_i32, %c0_i32_0, %arg0 : i32, i32, i32
  }
  func.func @transform_1(%arg0: i32) -> (i32, i32, i32) {
    %c0_i32 = arith.constant 0 : i32
    %c0_i32_0 = arith.constant 0 : i32
    %c0_i32_1 = arith.constant 0 : i32
    return %c0_i32, %c0_i32_0, %arg0 : i32, i32, i32
  }
  func.func @transform_2(%arg0: i32) -> (i32, i32, i32) {
    %c0_i32 = arith.constant 0 : i32
    %c0_i32_0 = arith.constant 0 : i32
    %c0_i32_1 = arith.constant 0 : i32
    %c0_i32_2 = arith.constant 0 : i32
    return %c0_i32, %c0_i32_0, %c0_i32_1 : i32, i32, i32
  }
  func.func @transform_3(%arg0: i32) -> (i32, i32) {
    %c0_i32 = arith.constant 0 : i32
    %c0_i32_0 = arith.constant 0 : i32
    %c0_i32_1 = arith.constant 0 : i32
    return %c0_i32, %c0_i32_0 : i32, i32
  }
  func.func @transform_4(%arg0: i32) -> (i32, i32, i32) {
    %c0_i32 = arith.constant 0 : i32
    %c0_i32_0 = arith.constant 0 : i32
    %c0_i32_1 = arith.constant 0 : i32
    return %c0_i32, %c0_i32_0, %arg0 : i32, i32, i32
  }
  func.func @transform_5(%arg0: i32) -> (i32, i32, i32) {
    %c0_i32 = arith.constant 0 : i32
    %c0_i32_0 = arith.constant 0 : i32
    %c0_i32_1 = arith.constant 0 : i32
    return %c0_i32, %c0_i32_0, %arg0 : i32, i32, i32
  }
  func.func @transform_6(%arg0: i32) -> (i32, i32, i32, i32) {
    %c0_i32 = arith.constant 0 : i32
    %c0_i32_0 = arith.constant 0 : i32
    %c0_i32_1 = arith.constant 0 : i32
    %c0_i32_2 = arith.constant 0 : i32
    return %arg0, %c0_i32, %c0_i32_0, %c0_i32_1 : i32, i32, i32, i32
  }
}

module attributes {stable_mosaic.version = 11 : i64} {
  func.func @bn_relu_recombine_kernel(%arg0: i32, %arg1: i32, %arg2: memref<1x8x32xf32, #tpu.memory_space<vmem>>, %arg3: memref<1x8x32xf32, #tpu.memory_space<vmem>>, %arg4: memref<8x1xf32, #tpu.memory_space<vmem>>, %arg5: memref<8x1xf32, #tpu.memory_space<vmem>>, %arg6: memref<1x8x32xbf16, #tpu.memory_space<vmem>>, %arg7: memref<1x8x32xbf16, #tpu.memory_space<vmem>>) attributes {dimension_semantics = [#tpu.dimension_semantics<parallel>, #tpu.dimension_semantics<parallel>], iteration_bounds = array<i64: 4, 1>, scalar_prefetch = 0 : i64, scratch_operands = 0 : i64, tpu.core_type = #tpu.core_type<tc>, window_params = [{transform_indices = @transform_0, window_bounds = array<i64: 1, 8, 32>}, {transform_indices = @transform_1, window_bounds = array<i64: 1, 8, 32>}, {pipeline_mode = #tpu.pipeline_mode<synchronous>, transform_indices = @transform_2, window_bounds = array<i64: 8, 1>}, {pipeline_mode = #tpu.pipeline_mode<synchronous>, transform_indices = @transform_3, window_bounds = array<i64: 8, 1>}, {transform_indices = @transform_4, window_bounds = array<i64: 1, 8, 32>}, {transform_indices = @transform_5, window_bounds = array<i64: 1, 8, 32>}]} {
    %c0 = arith.constant 0 : index
    %c0_0 = arith.constant 0 : index
    %c0_1 = arith.constant 0 : index
    %0 = vector.load %arg2[%c0, %c0_0, %c0_1] : memref<1x8x32xf32, #tpu.memory_space<vmem>>, vector<1x8x32xf32>
    %1 = vector.shape_cast %0 : vector<1x8x32xf32> to vector<8x32xf32>
    %c0_2 = arith.constant 0 : index
    %c0_3 = arith.constant 0 : index
    %c0_4 = arith.constant 0 : index
    %2 = vector.load %arg3[%c0_2, %c0_3, %c0_4] : memref<1x8x32xf32, #tpu.memory_space<vmem>>, vector<1x8x32xf32>
    %3 = vector.shape_cast %2 : vector<1x8x32xf32> to vector<8x32xf32>
    %4 = arith.mulf %1, %1 : vector<8x32xf32>
    %5 = arith.mulf %3, %3 : vector<8x32xf32>
    %6 = arith.addf %4, %5 : vector<8x32xf32>
    %cst = arith.constant 9.99999968E-21 : f32
    %7 = vector.broadcast %cst : f32 to vector<8x32xf32>
    %8 = arith.addf %6, %7 : vector<8x32xf32>
    %9 = math.rsqrt %8 : vector<8x32xf32>
    %10 = arith.mulf %6, %9 : vector<8x32xf32>
    %c0_5 = arith.constant 0 : index
    %c0_6 = arith.constant 0 : index
    %11 = vector.load %arg4[%c0_5, %c0_6] : memref<8x1xf32, #tpu.memory_space<vmem>>, vector<8x1xf32>
    %12 = vector.broadcast %11 : vector<8x1xf32> to vector<8x32xf32>
    %13 = arith.mulf %10, %12 : vector<8x32xf32>
    %c0_7 = arith.constant 0 : index
    %c0_8 = arith.constant 0 : index
    %14 = vector.load %arg5[%c0_7, %c0_8] : memref<8x1xf32, #tpu.memory_space<vmem>>, vector<8x1xf32>
    %15 = vector.broadcast %14 : vector<8x1xf32> to vector<8x32xf32>
    %16 = arith.addf %13, %15 : vector<8x32xf32>
    %cst_9 = arith.constant 0.000000e+00 : f32
    %17 = vector.broadcast %cst_9 : f32 to vector<8x32xf32>
    %18 = arith.maximumf %16, %17 : vector<8x32xf32>
    %19 = arith.mulf %18, %9 : vector<8x32xf32>
    %20 = arith.mulf %1, %19 : vector<8x32xf32>
    %21 = arith.truncf %20 : vector<8x32xf32> to vector<8x32xbf16>
    %c0_10 = arith.constant 0 : index
    %c0_11 = arith.constant 0 : index
    %c0_12 = arith.constant 0 : index
    %22 = vector.load %arg6[%c0_10, %c0_11, %c0_12] : memref<1x8x32xbf16, #tpu.memory_space<vmem>>, vector<1x8x32xbf16>
    %23 = vector.shape_cast %22 : vector<1x8x32xbf16> to vector<8x32xbf16>
    %24 = vector.shape_cast %21 : vector<8x32xbf16> to vector<1x8x32xbf16>
    tpu.vector_store %arg6[%c0_10, %c0_11, %c0_12], %24 {strides = array<i32>} : memref<1x8x32xbf16, #tpu.memory_space<vmem>>, vector<1x8x32xbf16>,
    %25 = arith.mulf %3, %19 : vector<8x32xf32>
    %26 = arith.truncf %25 : vector<8x32xf32> to vector<8x32xbf16>
    %c0_13 = arith.constant 0 : index
    %c0_14 = arith.constant 0 : index
    %c0_15 = arith.constant 0 : index
    %27 = vector.load %arg7[%c0_13, %c0_14, %c0_15] : memref<1x8x32xbf16, #tpu.memory_space<vmem>>, vector<1x8x32xbf16>
    %28 = vector.shape_cast %27 : vector<1x8x32xbf16> to vector<8x32xbf16>
    %29 = vector.shape_cast %26 : vector<8x32xbf16> to vector<1x8x32xbf16>
    tpu.vector_store %arg7[%c0_13, %c0_14, %c0_15], %29 {strides = array<i32>} : memref<1x8x32xbf16, #tpu.memory_space<vmem>>, vector<1x8x32xbf16>,
    return
  }
  func.func @transform_0(%arg0: i32, %arg1: i32) -> (i32, i32, i32) {
    %c0_i32 = arith.constant 0 : i32
    %c0_i32_0 = arith.constant 0 : i32
    return %arg0, %c0_i32, %arg1 : i32, i32, i32
  }
  func.func @transform_1(%arg0: i32, %arg1: i32) -> (i32, i32, i32) {
    %c0_i32 = arith.constant 0 : i32
    %c0_i32_0 = arith.constant 0 : i32
    return %arg0, %c0_i32, %arg1 : i32, i32, i32
  }
  func.func @transform_2(%arg0: i32, %arg1: i32) -> (i32, i32) {
    %c0_i32 = arith.constant 0 : i32
    %c0_i32_0 = arith.constant 0 : i32
    %c0_i32_1 = arith.constant 0 : i32
    return %c0_i32, %c0_i32_0 : i32, i32
  }
  func.func @transform_3(%arg0: i32, %arg1: i32) -> (i32, i32) {
    %c0_i32 = arith.constant 0 : i32
    %c0_i32_0 = arith.constant 0 : i32
    %c0_i32_1 = arith.constant 0 : i32
    return %c0_i32, %c0_i32_0 : i32, i32
  }
  func.func @transform_4(%arg0: i32, %arg1: i32) -> (i32, i32, i32) {
    %c0_i32 = arith.constant 0 : i32
    %c0_i32_0 = arith.constant 0 : i32
    return %arg0, %c0_i32, %arg1 : i32, i32, i32
  }
  func.func @transform_5(%arg0: i32, %arg1: i32) -> (i32, i32, i32) {
    %c0_i32 = arith.constant 0 : i32
    %c0_i32_0 = arith.constant 0 : i32
    return %arg0, %c0_i32, %arg1 : i32, i32, i32
  }
}

module attributes {stable_mosaic.version = 11 : i64} {
  func.func @conv_taps_cplx_kernel(%arg0: i32, %arg1: memref<6x72x8xbf16, #tpu.memory_space<vmem>>, %arg2: memref<6x72x8xbf16, #tpu.memory_space<vmem>>, %arg3: memref<3x8x72xbf16, #tpu.memory_space<vmem>>, %arg4: memref<8x1xf32, #tpu.memory_space<vmem>>, %arg5: memref<4x8x8xf32, #tpu.memory_space<vmem>>, %arg6: memref<4x8x8xf32, #tpu.memory_space<vmem>>, %arg7: memref<1x2x8x1xf32, #tpu.memory_space<vmem>>) attributes {dimension_semantics = [#tpu.dimension_semantics<parallel>], iteration_bounds = array<i64: 1>, scalar_prefetch = 0 : i64, scratch_operands = 0 : i64, tpu.core_type = #tpu.core_type<tc>, window_params = [{transform_indices = @transform_0, window_bounds = array<i64: 6, 72, 8>}, {transform_indices = @transform_1, window_bounds = array<i64: 6, 72, 8>}, {pipeline_mode = #tpu.pipeline_mode<synchronous>, transform_indices = @transform_2, window_bounds = array<i64: 3, 8, 72>}, {pipeline_mode = #tpu.pipeline_mode<synchronous>, transform_indices = @transform_3, window_bounds = array<i64: 8, 1>}, {transform_indices = @transform_4, window_bounds = array<i64: 4, 8, 8>}, {transform_indices = @transform_5, window_bounds = array<i64: 4, 8, 8>}, {transform_indices = @transform_6, window_bounds = array<i64: 1, 2, 8, 1>}]} {
    %c0 = arith.constant 0 : index
    %c0_0 = arith.constant 0 : index
    %0 = vector.load %arg4[%c0, %c0_0] : memref<8x1xf32, #tpu.memory_space<vmem>>, vector<8x1xf32>
    %c0_1 = arith.constant 0 : index
    %c0_2 = arith.constant 0 : index
    %c0_3 = arith.constant 0 : index
    %1 = vector.load %arg3[%c0_1, %c0_2, %c0_3] : memref<3x8x72xbf16, #tpu.memory_space<vmem>>, vector<1x8x72xbf16>
    %2 = vector.shape_cast %1 : vector<1x8x72xbf16> to vector<8x72xbf16>
    %c1 = arith.constant 1 : index
    %c0_4 = arith.constant 0 : index
    %c0_5 = arith.constant 0 : index
    %3 = vector.load %arg3[%c1, %c0_4, %c0_5] : memref<3x8x72xbf16, #tpu.memory_space<vmem>>, vector<1x8x72xbf16>
    %4 = vector.shape_cast %3 : vector<1x8x72xbf16> to vector<8x72xbf16>
    %c2 = arith.constant 2 : index
    %c0_6 = arith.constant 0 : index
    %c0_7 = arith.constant 0 : index
    %5 = vector.load %arg3[%c2, %c0_6, %c0_7] : memref<3x8x72xbf16, #tpu.memory_space<vmem>>, vector<1x8x72xbf16>
    %6 = vector.shape_cast %5 : vector<1x8x72xbf16> to vector<8x72xbf16>
    %cst = arith.constant 0.000000e+00 : f32
    %7 = vector.broadcast %cst : f32 to vector<8x1xf32>
    %cst_8 = arith.constant 0.000000e+00 : f32
    %8 = vector.broadcast %cst_8 : f32 to vector<8x1xf32>
    %c0_9 = arith.constant 0 : index
    %c0_10 = arith.constant 0 : index
    %c0_11 = arith.constant 0 : index
    %9 = vector.load %arg1[%c0_9, %c0_10, %c0_11] : memref<6x72x8xbf16, #tpu.memory_space<vmem>>, vector<1x72x8xbf16>
    %10 = vector.shape_cast %9 : vector<1x72x8xbf16> to vector<72x8xbf16>
    %cst_12 = arith.constant dense<0.000000e+00> : vector<8x8xf32>
    %11 = tpu.matmul %2, %10, %cst_12 {dimension_numbers = #tpu.dot_dimension_numbers<[1], [0], [0], [1], [0, 0, 1, 1], [], []>} : vector<8x72xbf16>, vector<72x8xbf16>, vector<8x8xf32> -> vector<8x8xf32>
    %c1_13 = arith.constant 1 : index
    %c0_14 = arith.constant 0 : index
    %c0_15 = arith.constant 0 : index
    %12 = vector.load %arg1[%c1_13, %c0_14, %c0_15] : memref<6x72x8xbf16, #tpu.memory_space<vmem>>, vector<1x72x8xbf16>
    %13 = vector.shape_cast %12 : vector<1x72x8xbf16> to vector<72x8xbf16>
    %cst_16 = arith.constant dense<0.000000e+00> : vector<8x8xf32>
    %14 = tpu.matmul %4, %13, %cst_16 {dimension_numbers = #tpu.dot_dimension_numbers<[1], [0], [0], [1], [0, 0, 1, 1], [], []>} : vector<8x72xbf16>, vector<72x8xbf16>, vector<8x8xf32> -> vector<8x8xf32>
    %15 = arith.addf %11, %14 : vector<8x8xf32>
    %c2_17 = arith.constant 2 : index
    %c0_18 = arith.constant 0 : index
    %c0_19 = arith.constant 0 : index
    %16 = vector.load %arg1[%c2_17, %c0_18, %c0_19] : memref<6x72x8xbf16, #tpu.memory_space<vmem>>, vector<1x72x8xbf16>
    %17 = vector.shape_cast %16 : vector<1x72x8xbf16> to vector<72x8xbf16>
    %cst_20 = arith.constant dense<0.000000e+00> : vector<8x8xf32>
    %18 = tpu.matmul %6, %17, %cst_20 {dimension_numbers = #tpu.dot_dimension_numbers<[1], [0], [0], [1], [0, 0, 1, 1], [], []>} : vector<8x72xbf16>, vector<72x8xbf16>, vector<8x8xf32> -> vector<8x8xf32>
    %19 = arith.addf %15, %18 : vector<8x8xf32>
    %20 = vector.broadcast %0 : vector<8x1xf32> to vector<8x8xf32>
    %21 = arith.addf %19, %20 : vector<8x8xf32>
    %c0_21 = arith.constant 0 : index
    %c0_22 = arith.constant 0 : index
    %c0_23 = arith.constant 0 : index
    %22 = vector.load %arg2[%c0_21, %c0_22, %c0_23] : memref<6x72x8xbf16, #tpu.memory_space<vmem>>, vector<1x72x8xbf16>
    %23 = vector.shape_cast %22 : vector<1x72x8xbf16> to vector<72x8xbf16>
    %cst_24 = arith.constant dense<0.000000e+00> : vector<8x8xf32>
    %24 = tpu.matmul %2, %23, %cst_24 {dimension_numbers = #tpu.dot_dimension_numbers<[1], [0], [0], [1], [0, 0, 1, 1], [], []>} : vector<8x72xbf16>, vector<72x8xbf16>, vector<8x8xf32> -> vector<8x8xf32>
    %c1_25 = arith.constant 1 : index
    %c0_26 = arith.constant 0 : index
    %c0_27 = arith.constant 0 : index
    %25 = vector.load %arg2[%c1_25, %c0_26, %c0_27] : memref<6x72x8xbf16, #tpu.memory_space<vmem>>, vector<1x72x8xbf16>
    %26 = vector.shape_cast %25 : vector<1x72x8xbf16> to vector<72x8xbf16>
    %cst_28 = arith.constant dense<0.000000e+00> : vector<8x8xf32>
    %27 = tpu.matmul %4, %26, %cst_28 {dimension_numbers = #tpu.dot_dimension_numbers<[1], [0], [0], [1], [0, 0, 1, 1], [], []>} : vector<8x72xbf16>, vector<72x8xbf16>, vector<8x8xf32> -> vector<8x8xf32>
    %28 = arith.addf %24, %27 : vector<8x8xf32>
    %c2_29 = arith.constant 2 : index
    %c0_30 = arith.constant 0 : index
    %c0_31 = arith.constant 0 : index
    %29 = vector.load %arg2[%c2_29, %c0_30, %c0_31] : memref<6x72x8xbf16, #tpu.memory_space<vmem>>, vector<1x72x8xbf16>
    %30 = vector.shape_cast %29 : vector<1x72x8xbf16> to vector<72x8xbf16>
    %cst_32 = arith.constant dense<0.000000e+00> : vector<8x8xf32>
    %31 = tpu.matmul %6, %30, %cst_32 {dimension_numbers = #tpu.dot_dimension_numbers<[1], [0], [0], [1], [0, 0, 1, 1], [], []>} : vector<8x72xbf16>, vector<72x8xbf16>, vector<8x8xf32> -> vector<8x8xf32>
    %32 = arith.addf %28, %31 : vector<8x8xf32>
    %33 = vector.broadcast %0 : vector<8x1xf32> to vector<8x8xf32>
    %34 = arith.addf %32, %33 : vector<8x8xf32>
    %c0_33 = arith.constant 0 : index
    %c0_34 = arith.constant 0 : index
    %c0_35 = arith.constant 0 : index
    %35 = vector.load %arg5[%c0_33, %c0_34, %c0_35] : memref<4x8x8xf32, #tpu.memory_space<vmem>>, vector<1x8x8xf32>
    %36 = vector.shape_cast %35 : vector<1x8x8xf32> to vector<8x8xf32>
    %37 = vector.shape_cast %21 : vector<8x8xf32> to vector<1x8x8xf32>
    tpu.vector_store %arg5[%c0_33, %c0_34, %c0_35], %37 {strides = array<i32>} : memref<4x8x8xf32, #tpu.memory_space<vmem>>, vector<1x8x8xf32>,
    %c0_36 = arith.constant 0 : index
    %c0_37 = arith.constant 0 : index
    %c0_38 = arith.constant 0 : index
    %38 = vector.load %arg6[%c0_36, %c0_37, %c0_38] : memref<4x8x8xf32, #tpu.memory_space<vmem>>, vector<1x8x8xf32>
    %39 = vector.shape_cast %38 : vector<1x8x8xf32> to vector<8x8xf32>
    %40 = vector.shape_cast %34 : vector<8x8xf32> to vector<1x8x8xf32>
    tpu.vector_store %arg6[%c0_36, %c0_37, %c0_38], %40 {strides = array<i32>} : memref<4x8x8xf32, #tpu.memory_space<vmem>>, vector<1x8x8xf32>,
    %41 = arith.mulf %21, %21 : vector<8x8xf32>
    %42 = arith.mulf %34, %34 : vector<8x8xf32>
    %43 = arith.addf %41, %42 : vector<8x8xf32>
    %cst_39 = arith.constant 9.99999968E-21 : f32
    %44 = vector.broadcast %cst_39 : f32 to vector<8x8xf32>
    %45 = arith.addf %43, %44 : vector<8x8xf32>
    %46 = math.rsqrt %45 : vector<8x8xf32>
    %47 = arith.mulf %43, %46 : vector<8x8xf32>
    %cst_40 = arith.constant dense<0.000000e+00> : vector<8xf32>
    %48 = vector.multi_reduction <add>, %47, %cst_40 [1] : vector<8x8xf32> to vector<8xf32>
    %49 = vector.shape_cast %48 : vector<8xf32> to vector<8x1xf32>
    %50 = arith.addf %7, %49 : vector<8x1xf32>
    %cst_41 = arith.constant dense<0.000000e+00> : vector<8xf32>
    %51 = vector.multi_reduction <add>, %43, %cst_41 [1] : vector<8x8xf32> to vector<8xf32>
    %52 = vector.shape_cast %51 : vector<8xf32> to vector<8x1xf32>
    %53 = arith.addf %8, %52 : vector<8x1xf32>
    %c1_42 = arith.constant 1 : index
    %c0_43 = arith.constant 0 : index
    %c0_44 = arith.constant 0 : index
    %54 = vector.load %arg1[%c1_42, %c0_43, %c0_44] : memref<6x72x8xbf16, #tpu.memory_space<vmem>>, vector<1x72x8xbf16>
    %55 = vector.shape_cast %54 : vector<1x72x8xbf16> to vector<72x8xbf16>
    %cst_45 = arith.constant dense<0.000000e+00> : vector<8x8xf32>
    %56 = tpu.matmul %2, %55, %cst_45 {dimension_numbers = #tpu.dot_dimension_numbers<[1], [0], [0], [1], [0, 0, 1, 1], [], []>} : vector<8x72xbf16>, vector<72x8xbf16>, vector<8x8xf32> -> vector<8x8xf32>
    %c2_46 = arith.constant 2 : index
    %c0_47 = arith.constant 0 : index
    %c0_48 = arith.constant 0 : index
    %57 = vector.load %arg1[%c2_46, %c0_47, %c0_48] : memref<6x72x8xbf16, #tpu.memory_space<vmem>>, vector<1x72x8xbf16>
    %58 = vector.shape_cast %57 : vector<1x72x8xbf16> to vector<72x8xbf16>
    %cst_49 = arith.constant dense<0.000000e+00> : vector<8x8xf32>
    %59 = tpu.matmul %4, %58, %cst_49 {dimension_numbers = #tpu.dot_dimension_numbers<[1], [0], [0], [1], [0, 0, 1, 1], [], []>} : vector<8x72xbf16>, vector<72x8xbf16>, vector<8x8xf32> -> vector<8x8xf32>
    %60 = arith.addf %56, %59 : vector<8x8xf32>
    %c3 = arith.constant 3 : index
    %c0_50 = arith.constant 0 : index
    %c0_51 = arith.constant 0 : index
    %61 = vector.load %arg1[%c3, %c0_50, %c0_51] : memref<6x72x8xbf16, #tpu.memory_space<vmem>>, vector<1x72x8xbf16>
    %62 = vector.shape_cast %61 : vector<1x72x8xbf16> to vector<72x8xbf16>
    %cst_52 = arith.constant dense<0.000000e+00> : vector<8x8xf32>
    %63 = tpu.matmul %6, %62, %cst_52 {dimension_numbers = #tpu.dot_dimension_numbers<[1], [0], [0], [1], [0, 0, 1, 1], [], []>} : vector<8x72xbf16>, vector<72x8xbf16>, vector<8x8xf32> -> vector<8x8xf32>
    %64 = arith.addf %60, %63 : vector<8x8xf32>
    %65 = vector.broadcast %0 : vector<8x1xf32> to vector<8x8xf32>
    %66 = arith.addf %64, %65 : vector<8x8xf32>
    %c1_53 = arith.constant 1 : index
    %c0_54 = arith.constant 0 : index
    %c0_55 = arith.constant 0 : index
    %67 = vector.load %arg2[%c1_53, %c0_54, %c0_55] : memref<6x72x8xbf16, #tpu.memory_space<vmem>>, vector<1x72x8xbf16>
    %68 = vector.shape_cast %67 : vector<1x72x8xbf16> to vector<72x8xbf16>
    %cst_56 = arith.constant dense<0.000000e+00> : vector<8x8xf32>
    %69 = tpu.matmul %2, %68, %cst_56 {dimension_numbers = #tpu.dot_dimension_numbers<[1], [0], [0], [1], [0, 0, 1, 1], [], []>} : vector<8x72xbf16>, vector<72x8xbf16>, vector<8x8xf32> -> vector<8x8xf32>
    %c2_57 = arith.constant 2 : index
    %c0_58 = arith.constant 0 : index
    %c0_59 = arith.constant 0 : index
    %70 = vector.load %arg2[%c2_57, %c0_58, %c0_59] : memref<6x72x8xbf16, #tpu.memory_space<vmem>>, vector<1x72x8xbf16>
    %71 = vector.shape_cast %70 : vector<1x72x8xbf16> to vector<72x8xbf16>
    %cst_60 = arith.constant dense<0.000000e+00> : vector<8x8xf32>
    %72 = tpu.matmul %4, %71, %cst_60 {dimension_numbers = #tpu.dot_dimension_numbers<[1], [0], [0], [1], [0, 0, 1, 1], [], []>} : vector<8x72xbf16>, vector<72x8xbf16>, vector<8x8xf32> -> vector<8x8xf32>
    %73 = arith.addf %69, %72 : vector<8x8xf32>
    %c3_61 = arith.constant 3 : index
    %c0_62 = arith.constant 0 : index
    %c0_63 = arith.constant 0 : index
    %74 = vector.load %arg2[%c3_61, %c0_62, %c0_63] : memref<6x72x8xbf16, #tpu.memory_space<vmem>>, vector<1x72x8xbf16>
    %75 = vector.shape_cast %74 : vector<1x72x8xbf16> to vector<72x8xbf16>
    %cst_64 = arith.constant dense<0.000000e+00> : vector<8x8xf32>
    %76 = tpu.matmul %6, %75, %cst_64 {dimension_numbers = #tpu.dot_dimension_numbers<[1], [0], [0], [1], [0, 0, 1, 1], [], []>} : vector<8x72xbf16>, vector<72x8xbf16>, vector<8x8xf32> -> vector<8x8xf32>
    %77 = arith.addf %73, %76 : vector<8x8xf32>
    %78 = vector.broadcast %0 : vector<8x1xf32> to vector<8x8xf32>
    %79 = arith.addf %77, %78 : vector<8x8xf32>
    %c1_65 = arith.constant 1 : index
    %c0_66 = arith.constant 0 : index
    %c0_67 = arith.constant 0 : index
    %80 = vector.load %arg5[%c1_65, %c0_66, %c0_67] : memref<4x8x8xf32, #tpu.memory_space<vmem>>, vector<1x8x8xf32>
    %81 = vector.shape_cast %80 : vector<1x8x8xf32> to vector<8x8xf32>
    %82 = vector.shape_cast %66 : vector<8x8xf32> to vector<1x8x8xf32>
    tpu.vector_store %arg5[%c1_65, %c0_66, %c0_67], %82 {strides = array<i32>} : memref<4x8x8xf32, #tpu.memory_space<vmem>>, vector<1x8x8xf32>,
    %c1_68 = arith.constant 1 : index
    %c0_69 = arith.constant 0 : index
    %c0_70 = arith.constant 0 : index
    %83 = vector.load %arg6[%c1_68, %c0_69, %c0_70] : memref<4x8x8xf32, #tpu.memory_space<vmem>>, vector<1x8x8xf32>
    %84 = vector.shape_cast %83 : vector<1x8x8xf32> to vector<8x8xf32>
    %85 = vector.shape_cast %79 : vector<8x8xf32> to vector<1x8x8xf32>
    tpu.vector_store %arg6[%c1_68, %c0_69, %c0_70], %85 {strides = array<i32>} : memref<4x8x8xf32, #tpu.memory_space<vmem>>, vector<1x8x8xf32>,
    %86 = arith.mulf %66, %66 : vector<8x8xf32>
    %87 = arith.mulf %79, %79 : vector<8x8xf32>
    %88 = arith.addf %86, %87 : vector<8x8xf32>
    %cst_71 = arith.constant 9.99999968E-21 : f32
    %89 = vector.broadcast %cst_71 : f32 to vector<8x8xf32>
    %90 = arith.addf %88, %89 : vector<8x8xf32>
    %91 = math.rsqrt %90 : vector<8x8xf32>
    %92 = arith.mulf %88, %91 : vector<8x8xf32>
    %cst_72 = arith.constant dense<0.000000e+00> : vector<8xf32>
    %93 = vector.multi_reduction <add>, %92, %cst_72 [1] : vector<8x8xf32> to vector<8xf32>
    %94 = vector.shape_cast %93 : vector<8xf32> to vector<8x1xf32>
    %95 = arith.addf %50, %94 : vector<8x1xf32>
    %cst_73 = arith.constant dense<0.000000e+00> : vector<8xf32>
    %96 = vector.multi_reduction <add>, %88, %cst_73 [1] : vector<8x8xf32> to vector<8xf32>
    %97 = vector.shape_cast %96 : vector<8xf32> to vector<8x1xf32>
    %98 = arith.addf %53, %97 : vector<8x1xf32>
    %c2_74 = arith.constant 2 : index
    %c0_75 = arith.constant 0 : index
    %c0_76 = arith.constant 0 : index
    %99 = vector.load %arg1[%c2_74, %c0_75, %c0_76] : memref<6x72x8xbf16, #tpu.memory_space<vmem>>, vector<1x72x8xbf16>
    %100 = vector.shape_cast %99 : vector<1x72x8xbf16> to vector<72x8xbf16>
    %cst_77 = arith.constant dense<0.000000e+00> : vector<8x8xf32>
    %101 = tpu.matmul %2, %100, %cst_77 {dimension_numbers = #tpu.dot_dimension_numbers<[1], [0], [0], [1], [0, 0, 1, 1], [], []>} : vector<8x72xbf16>, vector<72x8xbf16>, vector<8x8xf32> -> vector<8x8xf32>
    %c3_78 = arith.constant 3 : index
    %c0_79 = arith.constant 0 : index
    %c0_80 = arith.constant 0 : index
    %102 = vector.load %arg1[%c3_78, %c0_79, %c0_80] : memref<6x72x8xbf16, #tpu.memory_space<vmem>>, vector<1x72x8xbf16>
    %103 = vector.shape_cast %102 : vector<1x72x8xbf16> to vector<72x8xbf16>
    %cst_81 = arith.constant dense<0.000000e+00> : vector<8x8xf32>
    %104 = tpu.matmul %4, %103, %cst_81 {dimension_numbers = #tpu.dot_dimension_numbers<[1], [0], [0], [1], [0, 0, 1, 1], [], []>} : vector<8x72xbf16>, vector<72x8xbf16>, vector<8x8xf32> -> vector<8x8xf32>
    %105 = arith.addf %101, %104 : vector<8x8xf32>
    %c4 = arith.constant 4 : index
    %c0_82 = arith.constant 0 : index
    %c0_83 = arith.constant 0 : index
    %106 = vector.load %arg1[%c4, %c0_82, %c0_83] : memref<6x72x8xbf16, #tpu.memory_space<vmem>>, vector<1x72x8xbf16>
    %107 = vector.shape_cast %106 : vector<1x72x8xbf16> to vector<72x8xbf16>
    %cst_84 = arith.constant dense<0.000000e+00> : vector<8x8xf32>
    %108 = tpu.matmul %6, %107, %cst_84 {dimension_numbers = #tpu.dot_dimension_numbers<[1], [0], [0], [1], [0, 0, 1, 1], [], []>} : vector<8x72xbf16>, vector<72x8xbf16>, vector<8x8xf32> -> vector<8x8xf32>
    %109 = arith.addf %105, %108 : vector<8x8xf32>
    %110 = vector.broadcast %0 : vector<8x1xf32> to vector<8x8xf32>
    %111 = arith.addf %109, %110 : vector<8x8xf32>
    %c2_85 = arith.constant 2 : index
    %c0_86 = arith.constant 0 : index
    %c0_87 = arith.constant 0 : index
    %112 = vector.load %arg2[%c2_85, %c0_86, %c0_87] : memref<6x72x8xbf16, #tpu.memory_space<vmem>>, vector<1x72x8xbf16>
    %113 = vector.shape_cast %112 : vector<1x72x8xbf16> to vector<72x8xbf16>
    %cst_88 = arith.constant dense<0.000000e+00> : vector<8x8xf32>
    %114 = tpu.matmul %2, %113, %cst_88 {dimension_numbers = #tpu.dot_dimension_numbers<[1], [0], [0], [1], [0, 0, 1, 1], [], []>} : vector<8x72xbf16>, vector<72x8xbf16>, vector<8x8xf32> -> vector<8x8xf32>
    %c3_89 = arith.constant 3 : index
    %c0_90 = arith.constant 0 : index
    %c0_91 = arith.constant 0 : index
    %115 = vector.load %arg2[%c3_89, %c0_90, %c0_91] : memref<6x72x8xbf16, #tpu.memory_space<vmem>>, vector<1x72x8xbf16>
    %116 = vector.shape_cast %115 : vector<1x72x8xbf16> to vector<72x8xbf16>
    %cst_92 = arith.constant dense<0.000000e+00> : vector<8x8xf32>
    %117 = tpu.matmul %4, %116, %cst_92 {dimension_numbers = #tpu.dot_dimension_numbers<[1], [0], [0], [1], [0, 0, 1, 1], [], []>} : vector<8x72xbf16>, vector<72x8xbf16>, vector<8x8xf32> -> vector<8x8xf32>
    %118 = arith.addf %114, %117 : vector<8x8xf32>
    %c4_93 = arith.constant 4 : index
    %c0_94 = arith.constant 0 : index
    %c0_95 = arith.constant 0 : index
    %119 = vector.load %arg2[%c4_93, %c0_94, %c0_95] : memref<6x72x8xbf16, #tpu.memory_space<vmem>>, vector<1x72x8xbf16>
    %120 = vector.shape_cast %119 : vector<1x72x8xbf16> to vector<72x8xbf16>
    %cst_96 = arith.constant dense<0.000000e+00> : vector<8x8xf32>
    %121 = tpu.matmul %6, %120, %cst_96 {dimension_numbers = #tpu.dot_dimension_numbers<[1], [0], [0], [1], [0, 0, 1, 1], [], []>} : vector<8x72xbf16>, vector<72x8xbf16>, vector<8x8xf32> -> vector<8x8xf32>
    %122 = arith.addf %118, %121 : vector<8x8xf32>
    %123 = vector.broadcast %0 : vector<8x1xf32> to vector<8x8xf32>
    %124 = arith.addf %122, %123 : vector<8x8xf32>
    %c2_97 = arith.constant 2 : index
    %c0_98 = arith.constant 0 : index
    %c0_99 = arith.constant 0 : index
    %125 = vector.load %arg5[%c2_97, %c0_98, %c0_99] : memref<4x8x8xf32, #tpu.memory_space<vmem>>, vector<1x8x8xf32>
    %126 = vector.shape_cast %125 : vector<1x8x8xf32> to vector<8x8xf32>
    %127 = vector.shape_cast %111 : vector<8x8xf32> to vector<1x8x8xf32>
    tpu.vector_store %arg5[%c2_97, %c0_98, %c0_99], %127 {strides = array<i32>} : memref<4x8x8xf32, #tpu.memory_space<vmem>>, vector<1x8x8xf32>,
    %c2_100 = arith.constant 2 : index
    %c0_101 = arith.constant 0 : index
    %c0_102 = arith.constant 0 : index
    %128 = vector.load %arg6[%c2_100, %c0_101, %c0_102] : memref<4x8x8xf32, #tpu.memory_space<vmem>>, vector<1x8x8xf32>
    %129 = vector.shape_cast %128 : vector<1x8x8xf32> to vector<8x8xf32>
    %130 = vector.shape_cast %124 : vector<8x8xf32> to vector<1x8x8xf32>
    tpu.vector_store %arg6[%c2_100, %c0_101, %c0_102], %130 {strides = array<i32>} : memref<4x8x8xf32, #tpu.memory_space<vmem>>, vector<1x8x8xf32>,
    %131 = arith.mulf %111, %111 : vector<8x8xf32>
    %132 = arith.mulf %124, %124 : vector<8x8xf32>
    %133 = arith.addf %131, %132 : vector<8x8xf32>
    %cst_103 = arith.constant 9.99999968E-21 : f32
    %134 = vector.broadcast %cst_103 : f32 to vector<8x8xf32>
    %135 = arith.addf %133, %134 : vector<8x8xf32>
    %136 = math.rsqrt %135 : vector<8x8xf32>
    %137 = arith.mulf %133, %136 : vector<8x8xf32>
    %cst_104 = arith.constant dense<0.000000e+00> : vector<8xf32>
    %138 = vector.multi_reduction <add>, %137, %cst_104 [1] : vector<8x8xf32> to vector<8xf32>
    %139 = vector.shape_cast %138 : vector<8xf32> to vector<8x1xf32>
    %140 = arith.addf %95, %139 : vector<8x1xf32>
    %cst_105 = arith.constant dense<0.000000e+00> : vector<8xf32>
    %141 = vector.multi_reduction <add>, %133, %cst_105 [1] : vector<8x8xf32> to vector<8xf32>
    %142 = vector.shape_cast %141 : vector<8xf32> to vector<8x1xf32>
    %143 = arith.addf %98, %142 : vector<8x1xf32>
    %c3_106 = arith.constant 3 : index
    %c0_107 = arith.constant 0 : index
    %c0_108 = arith.constant 0 : index
    %144 = vector.load %arg1[%c3_106, %c0_107, %c0_108] : memref<6x72x8xbf16, #tpu.memory_space<vmem>>, vector<1x72x8xbf16>
    %145 = vector.shape_cast %144 : vector<1x72x8xbf16> to vector<72x8xbf16>
    %cst_109 = arith.constant dense<0.000000e+00> : vector<8x8xf32>
    %146 = tpu.matmul %2, %145, %cst_109 {dimension_numbers = #tpu.dot_dimension_numbers<[1], [0], [0], [1], [0, 0, 1, 1], [], []>} : vector<8x72xbf16>, vector<72x8xbf16>, vector<8x8xf32> -> vector<8x8xf32>
    %c4_110 = arith.constant 4 : index
    %c0_111 = arith.constant 0 : index
    %c0_112 = arith.constant 0 : index
    %147 = vector.load %arg1[%c4_110, %c0_111, %c0_112] : memref<6x72x8xbf16, #tpu.memory_space<vmem>>, vector<1x72x8xbf16>
    %148 = vector.shape_cast %147 : vector<1x72x8xbf16> to vector<72x8xbf16>
    %cst_113 = arith.constant dense<0.000000e+00> : vector<8x8xf32>
    %149 = tpu.matmul %4, %148, %cst_113 {dimension_numbers = #tpu.dot_dimension_numbers<[1], [0], [0], [1], [0, 0, 1, 1], [], []>} : vector<8x72xbf16>, vector<72x8xbf16>, vector<8x8xf32> -> vector<8x8xf32>
    %150 = arith.addf %146, %149 : vector<8x8xf32>
    %c5 = arith.constant 5 : index
    %c0_114 = arith.constant 0 : index
    %c0_115 = arith.constant 0 : index
    %151 = vector.load %arg1[%c5, %c0_114, %c0_115] : memref<6x72x8xbf16, #tpu.memory_space<vmem>>, vector<1x72x8xbf16>
    %152 = vector.shape_cast %151 : vector<1x72x8xbf16> to vector<72x8xbf16>
    %cst_116 = arith.constant dense<0.000000e+00> : vector<8x8xf32>
    %153 = tpu.matmul %6, %152, %cst_116 {dimension_numbers = #tpu.dot_dimension_numbers<[1], [0], [0], [1], [0, 0, 1, 1], [], []>} : vector<8x72xbf16>, vector<72x8xbf16>, vector<8x8xf32> -> vector<8x8xf32>
    %154 = arith.addf %150, %153 : vector<8x8xf32>
    %155 = vector.broadcast %0 : vector<8x1xf32> to vector<8x8xf32>
    %156 = arith.addf %154, %155 : vector<8x8xf32>
    %c3_117 = arith.constant 3 : index
    %c0_118 = arith.constant 0 : index
    %c0_119 = arith.constant 0 : index
    %157 = vector.load %arg2[%c3_117, %c0_118, %c0_119] : memref<6x72x8xbf16, #tpu.memory_space<vmem>>, vector<1x72x8xbf16>
    %158 = vector.shape_cast %157 : vector<1x72x8xbf16> to vector<72x8xbf16>
    %cst_120 = arith.constant dense<0.000000e+00> : vector<8x8xf32>
    %159 = tpu.matmul %2, %158, %cst_120 {dimension_numbers = #tpu.dot_dimension_numbers<[1], [0], [0], [1], [0, 0, 1, 1], [], []>} : vector<8x72xbf16>, vector<72x8xbf16>, vector<8x8xf32> -> vector<8x8xf32>
    %c4_121 = arith.constant 4 : index
    %c0_122 = arith.constant 0 : index
    %c0_123 = arith.constant 0 : index
    %160 = vector.load %arg2[%c4_121, %c0_122, %c0_123] : memref<6x72x8xbf16, #tpu.memory_space<vmem>>, vector<1x72x8xbf16>
    %161 = vector.shape_cast %160 : vector<1x72x8xbf16> to vector<72x8xbf16>
    %cst_124 = arith.constant dense<0.000000e+00> : vector<8x8xf32>
    %162 = tpu.matmul %4, %161, %cst_124 {dimension_numbers = #tpu.dot_dimension_numbers<[1], [0], [0], [1], [0, 0, 1, 1], [], []>} : vector<8x72xbf16>, vector<72x8xbf16>, vector<8x8xf32> -> vector<8x8xf32>
    %163 = arith.addf %159, %162 : vector<8x8xf32>
    %c5_125 = arith.constant 5 : index
    %c0_126 = arith.constant 0 : index
    %c0_127 = arith.constant 0 : index
    %164 = vector.load %arg2[%c5_125, %c0_126, %c0_127] : memref<6x72x8xbf16, #tpu.memory_space<vmem>>, vector<1x72x8xbf16>
    %165 = vector.shape_cast %164 : vector<1x72x8xbf16> to vector<72x8xbf16>
    %cst_128 = arith.constant dense<0.000000e+00> : vector<8x8xf32>
    %166 = tpu.matmul %6, %165, %cst_128 {dimension_numbers = #tpu.dot_dimension_numbers<[1], [0], [0], [1], [0, 0, 1, 1], [], []>} : vector<8x72xbf16>, vector<72x8xbf16>, vector<8x8xf32> -> vector<8x8xf32>
    %167 = arith.addf %163, %166 : vector<8x8xf32>
    %168 = vector.broadcast %0 : vector<8x1xf32> to vector<8x8xf32>
    %169 = arith.addf %167, %168 : vector<8x8xf32>
    %c3_129 = arith.constant 3 : index
    %c0_130 = arith.constant 0 : index
    %c0_131 = arith.constant 0 : index
    %170 = vector.load %arg5[%c3_129, %c0_130, %c0_131] : memref<4x8x8xf32, #tpu.memory_space<vmem>>, vector<1x8x8xf32>
    %171 = vector.shape_cast %170 : vector<1x8x8xf32> to vector<8x8xf32>
    %172 = vector.shape_cast %156 : vector<8x8xf32> to vector<1x8x8xf32>
    tpu.vector_store %arg5[%c3_129, %c0_130, %c0_131], %172 {strides = array<i32>} : memref<4x8x8xf32, #tpu.memory_space<vmem>>, vector<1x8x8xf32>,
    %c3_132 = arith.constant 3 : index
    %c0_133 = arith.constant 0 : index
    %c0_134 = arith.constant 0 : index
    %173 = vector.load %arg6[%c3_132, %c0_133, %c0_134] : memref<4x8x8xf32, #tpu.memory_space<vmem>>, vector<1x8x8xf32>
    %174 = vector.shape_cast %173 : vector<1x8x8xf32> to vector<8x8xf32>
    %175 = vector.shape_cast %169 : vector<8x8xf32> to vector<1x8x8xf32>
    tpu.vector_store %arg6[%c3_132, %c0_133, %c0_134], %175 {strides = array<i32>} : memref<4x8x8xf32, #tpu.memory_space<vmem>>, vector<1x8x8xf32>,
    %176 = arith.mulf %156, %156 : vector<8x8xf32>
    %177 = arith.mulf %169, %169 : vector<8x8xf32>
    %178 = arith.addf %176, %177 : vector<8x8xf32>
    %cst_135 = arith.constant 9.99999968E-21 : f32
    %179 = vector.broadcast %cst_135 : f32 to vector<8x8xf32>
    %180 = arith.addf %178, %179 : vector<8x8xf32>
    %181 = math.rsqrt %180 : vector<8x8xf32>
    %182 = arith.mulf %178, %181 : vector<8x8xf32>
    %cst_136 = arith.constant dense<0.000000e+00> : vector<8xf32>
    %183 = vector.multi_reduction <add>, %182, %cst_136 [1] : vector<8x8xf32> to vector<8xf32>
    %184 = vector.shape_cast %183 : vector<8xf32> to vector<8x1xf32>
    %185 = arith.addf %140, %184 : vector<8x1xf32>
    %cst_137 = arith.constant dense<0.000000e+00> : vector<8xf32>
    %186 = vector.multi_reduction <add>, %178, %cst_137 [1] : vector<8x8xf32> to vector<8xf32>
    %187 = vector.shape_cast %186 : vector<8xf32> to vector<8x1xf32>
    %188 = arith.addf %143, %187 : vector<8x1xf32>
    %c0_138 = arith.constant 0 : index
    %c0_139 = arith.constant 0 : index
    %c0_140 = arith.constant 0 : index
    %c0_141 = arith.constant 0 : index
    %189 = vector.load %arg7[%c0_138, %c0_139, %c0_140, %c0_141] : memref<1x2x8x1xf32, #tpu.memory_space<vmem>>, vector<1x1x8x1xf32>
    %190 = vector.shape_cast %189 : vector<1x1x8x1xf32> to vector<8x1xf32>
    %191 = vector.shape_cast %185 : vector<8x1xf32> to vector<1x1x8x1xf32>
    tpu.vector_store %arg7[%c0_138, %c0_139, %c0_140, %c0_141], %191 {strides = array<i32>} : memref<1x2x8x1xf32, #tpu.memory_space<vmem>>, vector<1x1x8x1xf32>,
    %c0_142 = arith.constant 0 : index
    %c1_143 = arith.constant 1 : index
    %c0_144 = arith.constant 0 : index
    %c0_145 = arith.constant 0 : index
    %192 = vector.load %arg7[%c0_142, %c1_143, %c0_144, %c0_145] : memref<1x2x8x1xf32, #tpu.memory_space<vmem>>, vector<1x1x8x1xf32>
    %193 = vector.shape_cast %192 : vector<1x1x8x1xf32> to vector<8x1xf32>
    %194 = vector.shape_cast %188 : vector<8x1xf32> to vector<1x1x8x1xf32>
    tpu.vector_store %arg7[%c0_142, %c1_143, %c0_144, %c0_145], %194 {strides = array<i32>} : memref<1x2x8x1xf32, #tpu.memory_space<vmem>>, vector<1x1x8x1xf32>,
    return
  }
  func.func @transform_0(%arg0: i32) -> (i32, i32, i32) {
    %c0_i32 = arith.constant 0 : i32
    %c0_i32_0 = arith.constant 0 : i32
    %c0_i32_1 = arith.constant 0 : i32
    return %c0_i32, %c0_i32_0, %arg0 : i32, i32, i32
  }
  func.func @transform_1(%arg0: i32) -> (i32, i32, i32) {
    %c0_i32 = arith.constant 0 : i32
    %c0_i32_0 = arith.constant 0 : i32
    %c0_i32_1 = arith.constant 0 : i32
    return %c0_i32, %c0_i32_0, %arg0 : i32, i32, i32
  }
  func.func @transform_2(%arg0: i32) -> (i32, i32, i32) {
    %c0_i32 = arith.constant 0 : i32
    %c0_i32_0 = arith.constant 0 : i32
    %c0_i32_1 = arith.constant 0 : i32
    %c0_i32_2 = arith.constant 0 : i32
    return %c0_i32, %c0_i32_0, %c0_i32_1 : i32, i32, i32
  }
  func.func @transform_3(%arg0: i32) -> (i32, i32) {
    %c0_i32 = arith.constant 0 : i32
    %c0_i32_0 = arith.constant 0 : i32
    %c0_i32_1 = arith.constant 0 : i32
    return %c0_i32, %c0_i32_0 : i32, i32
  }
  func.func @transform_4(%arg0: i32) -> (i32, i32, i32) {
    %c0_i32 = arith.constant 0 : i32
    %c0_i32_0 = arith.constant 0 : i32
    %c0_i32_1 = arith.constant 0 : i32
    return %c0_i32, %c0_i32_0, %arg0 : i32, i32, i32
  }
  func.func @transform_5(%arg0: i32) -> (i32, i32, i32) {
    %c0_i32 = arith.constant 0 : i32
    %c0_i32_0 = arith.constant 0 : i32
    %c0_i32_1 = arith.constant 0 : i32
    return %c0_i32, %c0_i32_0, %arg0 : i32, i32, i32
  }
  func.func @transform_6(%arg0: i32) -> (i32, i32, i32, i32) {
    %c0_i32 = arith.constant 0 : i32
    %c0_i32_0 = arith.constant 0 : i32
    %c0_i32_1 = arith.constant 0 : i32
    %c0_i32_2 = arith.constant 0 : i32
    return %arg0, %c0_i32, %c0_i32_0, %c0_i32_1 : i32, i32, i32, i32
  }
}

module attributes {stable_mosaic.version = 11 : i64} {
  func.func @bn_relu_recombine_kernel(%arg0: i32, %arg1: i32, %arg2: memref<1x8x8xf32, #tpu.memory_space<vmem>>, %arg3: memref<1x8x8xf32, #tpu.memory_space<vmem>>, %arg4: memref<8x1xf32, #tpu.memory_space<vmem>>, %arg5: memref<8x1xf32, #tpu.memory_space<vmem>>, %arg6: memref<1x8x8xbf16, #tpu.memory_space<vmem>>, %arg7: memref<1x8x8xbf16, #tpu.memory_space<vmem>>) attributes {dimension_semantics = [#tpu.dimension_semantics<parallel>, #tpu.dimension_semantics<parallel>], iteration_bounds = array<i64: 4, 1>, scalar_prefetch = 0 : i64, scratch_operands = 0 : i64, tpu.core_type = #tpu.core_type<tc>, window_params = [{transform_indices = @transform_0, window_bounds = array<i64: 1, 8, 8>}, {transform_indices = @transform_1, window_bounds = array<i64: 1, 8, 8>}, {pipeline_mode = #tpu.pipeline_mode<synchronous>, transform_indices = @transform_2, window_bounds = array<i64: 8, 1>}, {pipeline_mode = #tpu.pipeline_mode<synchronous>, transform_indices = @transform_3, window_bounds = array<i64: 8, 1>}, {transform_indices = @transform_4, window_bounds = array<i64: 1, 8, 8>}, {transform_indices = @transform_5, window_bounds = array<i64: 1, 8, 8>}]} {
    %c0 = arith.constant 0 : index
    %c0_0 = arith.constant 0 : index
    %c0_1 = arith.constant 0 : index
    %0 = vector.load %arg2[%c0, %c0_0, %c0_1] : memref<1x8x8xf32, #tpu.memory_space<vmem>>, vector<1x8x8xf32>
    %1 = vector.shape_cast %0 : vector<1x8x8xf32> to vector<8x8xf32>
    %c0_2 = arith.constant 0 : index
    %c0_3 = arith.constant 0 : index
    %c0_4 = arith.constant 0 : index
    %2 = vector.load %arg3[%c0_2, %c0_3, %c0_4] : memref<1x8x8xf32, #tpu.memory_space<vmem>>, vector<1x8x8xf32>
    %3 = vector.shape_cast %2 : vector<1x8x8xf32> to vector<8x8xf32>
    %4 = arith.mulf %1, %1 : vector<8x8xf32>
    %5 = arith.mulf %3, %3 : vector<8x8xf32>
    %6 = arith.addf %4, %5 : vector<8x8xf32>
    %cst = arith.constant 9.99999968E-21 : f32
    %7 = vector.broadcast %cst : f32 to vector<8x8xf32>
    %8 = arith.addf %6, %7 : vector<8x8xf32>
    %9 = math.rsqrt %8 : vector<8x8xf32>
    %10 = arith.mulf %6, %9 : vector<8x8xf32>
    %c0_5 = arith.constant 0 : index
    %c0_6 = arith.constant 0 : index
    %11 = vector.load %arg4[%c0_5, %c0_6] : memref<8x1xf32, #tpu.memory_space<vmem>>, vector<8x1xf32>
    %12 = vector.broadcast %11 : vector<8x1xf32> to vector<8x8xf32>
    %13 = arith.mulf %10, %12 : vector<8x8xf32>
    %c0_7 = arith.constant 0 : index
    %c0_8 = arith.constant 0 : index
    %14 = vector.load %arg5[%c0_7, %c0_8] : memref<8x1xf32, #tpu.memory_space<vmem>>, vector<8x1xf32>
    %15 = vector.broadcast %14 : vector<8x1xf32> to vector<8x8xf32>
    %16 = arith.addf %13, %15 : vector<8x8xf32>
    %cst_9 = arith.constant 0.000000e+00 : f32
    %17 = vector.broadcast %cst_9 : f32 to vector<8x8xf32>
    %18 = arith.maximumf %16, %17 : vector<8x8xf32>
    %19 = arith.mulf %18, %9 : vector<8x8xf32>
    %20 = arith.mulf %1, %19 : vector<8x8xf32>
    %21 = arith.truncf %20 : vector<8x8xf32> to vector<8x8xbf16>
    %c0_10 = arith.constant 0 : index
    %c0_11 = arith.constant 0 : index
    %c0_12 = arith.constant 0 : index
    %22 = vector.load %arg6[%c0_10, %c0_11, %c0_12] : memref<1x8x8xbf16, #tpu.memory_space<vmem>>, vector<1x8x8xbf16>
    %23 = vector.shape_cast %22 : vector<1x8x8xbf16> to vector<8x8xbf16>
    %24 = vector.shape_cast %21 : vector<8x8xbf16> to vector<1x8x8xbf16>
    tpu.vector_store %arg6[%c0_10, %c0_11, %c0_12], %24 {strides = array<i32>} : memref<1x8x8xbf16, #tpu.memory_space<vmem>>, vector<1x8x8xbf16>,
    %25 = arith.mulf %3, %19 : vector<8x8xf32>
    %26 = arith.truncf %25 : vector<8x8xf32> to vector<8x8xbf16>
    %c0_13 = arith.constant 0 : index
    %c0_14 = arith.constant 0 : index
    %c0_15 = arith.constant 0 : index
    %27 = vector.load %arg7[%c0_13, %c0_14, %c0_15] : memref<1x8x8xbf16, #tpu.memory_space<vmem>>, vector<1x8x8xbf16>
    %28 = vector.shape_cast %27 : vector<1x8x8xbf16> to vector<8x8xbf16>
    %29 = vector.shape_cast %26 : vector<8x8xbf16> to vector<1x8x8xbf16>
    tpu.vector_store %arg7[%c0_13, %c0_14, %c0_15], %29 {strides = array<i32>} : memref<1x8x8xbf16, #tpu.memory_space<vmem>>, vector<1x8x8xbf16>,
    return
  }
  func.func @transform_0(%arg0: i32, %arg1: i32) -> (i32, i32, i32) {
    %c0_i32 = arith.constant 0 : i32
    %c0_i32_0 = arith.constant 0 : i32
    return %arg0, %c0_i32, %arg1 : i32, i32, i32
  }
  func.func @transform_1(%arg0: i32, %arg1: i32) -> (i32, i32, i32) {
    %c0_i32 = arith.constant 0 : i32
    %c0_i32_0 = arith.constant 0 : i32
    return %arg0, %c0_i32, %arg1 : i32, i32, i32
  }
  func.func @transform_2(%arg0: i32, %arg1: i32) -> (i32, i32) {
    %c0_i32 = arith.constant 0 : i32
    %c0_i32_0 = arith.constant 0 : i32
    %c0_i32_1 = arith.constant 0 : i32
    return %c0_i32, %c0_i32_0 : i32, i32
  }
  func.func @transform_3(%arg0: i32, %arg1: i32) -> (i32, i32) {
    %c0_i32 = arith.constant 0 : i32
    %c0_i32_0 = arith.constant 0 : i32
    %c0_i32_1 = arith.constant 0 : i32
    return %c0_i32, %c0_i32_0 : i32, i32
  }
  func.func @transform_4(%arg0: i32, %arg1: i32) -> (i32, i32, i32) {
    %c0_i32 = arith.constant 0 : i32
    %c0_i32_0 = arith.constant 0 : i32
    return %arg0, %c0_i32, %arg1 : i32, i32, i32
  }
  func.func @transform_5(%arg0: i32, %arg1: i32) -> (i32, i32, i32) {
    %c0_i32 = arith.constant 0 : i32
    %c0_i32_0 = arith.constant 0 : i32
    return %arg0, %c0_i32, %arg1 : i32, i32, i32
  }
}

module attributes {stable_mosaic.version = 11 : i64} {
  func.func @readout_kernel(%arg0: i32, %arg1: memref<2x128xbf16, #tpu.memory_space<vmem>>, %arg2: memref<2x128xbf16, #tpu.memory_space<vmem>>, %arg3: memref<1x128xf32, #tpu.memory_space<vmem>>, %arg4: memref<1x1xf32, #tpu.memory_space<vmem>>, %arg5: memref<2x1xf32, #tpu.memory_space<vmem>>, %arg6: memref<2x1xf32, #tpu.memory_space<vmem>>, %arg7: memref<2x1xf32, #tpu.memory_space<vmem>>, %arg8: memref<2x1xf32, #tpu.memory_space<vmem>>, %arg9: memref<2x1xf32, #tpu.memory_space<vmem>>) attributes {dimension_semantics = [#tpu.dimension_semantics<arbitrary>], iteration_bounds = array<i64: 1>, scalar_prefetch = 0 : i64, scratch_operands = 2 : i64, tpu.core_type = #tpu.core_type<tc>, window_params = [{transform_indices = @transform_0, window_bounds = array<i64: 2, 128>}, {transform_indices = @transform_1, window_bounds = array<i64: 2, 128>}, {transform_indices = @transform_2, window_bounds = array<i64: 1, 128>}, {pipeline_mode = #tpu.pipeline_mode<synchronous>, transform_indices = @transform_3, window_bounds = array<i64: 1, 1>}, {pipeline_mode = #tpu.pipeline_mode<synchronous>, transform_indices = @transform_4, window_bounds = array<i64: 2, 1>}, {pipeline_mode = #tpu.pipeline_mode<synchronous>, transform_indices = @transform_5, window_bounds = array<i64: 2, 1>}, {pipeline_mode = #tpu.pipeline_mode<synchronous>, transform_indices = @transform_6, window_bounds = array<i64: 2, 1>}]} {
    %c0_i32 = arith.constant 0 : i32
    %0 = arith.cmpi eq, %arg0, %c0_i32 : i32
    %1 = arith.extui %0 : i1 to i32
    %c0_i32_0 = arith.constant 0 : i32
    %2 = arith.cmpi ne, %1, %c0_i32_0 : i32
    scf.if %2 {
      %cst_17 = arith.constant 0.000000e+00 : f32
      %25 = vector.broadcast %cst_17 : f32 to vector<2x1xf32>
      %c0_18 = arith.constant 0 : index
      %c0_19 = arith.constant 0 : index
      %26 = vector.load %arg8[%c0_18, %c0_19] : memref<2x1xf32, #tpu.memory_space<vmem>>, vector<2x1xf32>
      tpu.vector_store %arg8[%c0_18, %c0_19], %25 {strides = array<i32>} : memref<2x1xf32, #tpu.memory_space<vmem>>, vector<2x1xf32>,
      %cst_20 = arith.constant 0.000000e+00 : f32
      %27 = vector.broadcast %cst_20 : f32 to vector<2x1xf32>
      %c0_21 = arith.constant 0 : index
      %c0_22 = arith.constant 0 : index
      %28 = vector.load %arg9[%c0_21, %c0_22] : memref<2x1xf32, #tpu.memory_space<vmem>>, vector<2x1xf32>
      tpu.vector_store %arg9[%c0_21, %c0_22], %27 {strides = array<i32>} : memref<2x1xf32, #tpu.memory_space<vmem>>, vector<2x1xf32>,
    } else {
    }
    %c0 = arith.constant 0 : index
    %c0_1 = arith.constant 0 : index
    %3 = vector.load %arg3[%c0, %c0_1] : memref<1x128xf32, #tpu.memory_space<vmem>>, vector<1x128xf32>
    %c0_2 = arith.constant 0 : index
    %c0_3 = arith.constant 0 : index
    %4 = vector.load %arg1[%c0_2, %c0_3] : memref<2x128xbf16, #tpu.memory_space<vmem>>, vector<2x128xbf16>
    %5 = arith.extf %4 : vector<2x128xbf16> to vector<2x128xf32>
    %c0_4 = arith.constant 0 : index
    %c0_5 = arith.constant 0 : index
    %6 = vector.load %arg2[%c0_4, %c0_5] : memref<2x128xbf16, #tpu.memory_space<vmem>>, vector<2x128xbf16>
    %7 = arith.extf %6 : vector<2x128xbf16> to vector<2x128xf32>
    %c0_6 = arith.constant 0 : index
    %c0_7 = arith.constant 0 : index
    %8 = vector.load %arg8[%c0_6, %c0_7] : memref<2x1xf32, #tpu.memory_space<vmem>>, vector<2x1xf32>
    %9 = vector.broadcast %3 : vector<1x128xf32> to vector<2x128xf32>
    %10 = arith.mulf %5, %9 : vector<2x128xf32>
    %cst = arith.constant dense<0.000000e+00> : vector<2xf32>
    %11 = vector.multi_reduction <add>, %10, %cst [1] : vector<2x128xf32> to vector<2xf32>
    %12 = vector.shape_cast %11 : vector<2xf32> to vector<2x1xf32>
    %13 = arith.addf %8, %12 : vector<2x1xf32>
    %c0_8 = arith.constant 0 : index
    %c0_9 = arith.constant 0 : index
    %14 = vector.load %arg8[%c0_8, %c0_9] : memref<2x1xf32, #tpu.memory_space<vmem>>, vector<2x1xf32>
    tpu.vector_store %arg8[%c0_8, %c0_9], %13 {strides = array<i32>} : memref<2x1xf32, #tpu.memory_space<vmem>>, vector<2x1xf32>,
    %c0_10 = arith.constant 0 : index
    %c0_11 = arith.constant 0 : index
    %15 = vector.load %arg9[%c0_10, %c0_11] : memref<2x1xf32, #tpu.memory_space<vmem>>, vector<2x1xf32>
    %16 = vector.broadcast %3 : vector<1x128xf32> to vector<2x128xf32>
    %17 = arith.mulf %7, %16 : vector<2x128xf32>
    %cst_12 = arith.constant dense<0.000000e+00> : vector<2xf32>
    %18 = vector.multi_reduction <add>, %17, %cst_12 [1] : vector<2x128xf32> to vector<2xf32>
    %19 = vector.shape_cast %18 : vector<2xf32> to vector<2x1xf32>
    %20 = arith.addf %15, %19 : vector<2x1xf32>
    %c0_13 = arith.constant 0 : index
    %c0_14 = arith.constant 0 : index
    %21 = vector.load %arg9[%c0_13, %c0_14] : memref<2x1xf32, #tpu.memory_space<vmem>>, vector<2x1xf32>
    tpu.vector_store %arg9[%c0_13, %c0_14], %20 {strides = array<i32>} : memref<2x1xf32, #tpu.memory_space<vmem>>, vector<2x1xf32>,
    %c0_i32_15 = arith.constant 0 : i32
    %22 = arith.cmpi eq, %arg0, %c0_i32_15 : i32
    %23 = arith.extui %22 : i1 to i32
    %c0_i32_16 = arith.constant 0 : i32
    %24 = arith.cmpi ne, %23, %c0_i32_16 : i32
    scf.if %24 {
      %c0_17 = arith.constant 0 : index
      %c0_18 = arith.constant 0 : index
      %25 = vector.load %arg8[%c0_17, %c0_18] : memref<2x1xf32, #tpu.memory_space<vmem>>, vector<2x1xf32>
      %c0_19 = arith.constant 0 : index
      %c0_20 = arith.constant 0 : index
      %26 = vector.load %arg4[%c0_19, %c0_20] : memref<1x1xf32, #tpu.memory_space<vmem>>, vector<1x1xf32>
      %27 = vector.broadcast %26 : vector<1x1xf32> to vector<2x1xf32>
      %28 = arith.addf %25, %27 : vector<2x1xf32>
      %c0_21 = arith.constant 0 : index
      %c0_22 = arith.constant 0 : index
      %29 = vector.load %arg9[%c0_21, %c0_22] : memref<2x1xf32, #tpu.memory_space<vmem>>, vector<2x1xf32>
      %c0_23 = arith.constant 0 : index
      %c0_24 = arith.constant 0 : index
      %30 = vector.load %arg4[%c0_23, %c0_24] : memref<1x1xf32, #tpu.memory_space<vmem>>, vector<1x1xf32>
      %31 = vector.broadcast %30 : vector<1x1xf32> to vector<2x1xf32>
      %32 = arith.addf %29, %31 : vector<2x1xf32>
      %c0_25 = arith.constant 0 : index
      %c0_26 = arith.constant 0 : index
      %33 = vector.load %arg6[%c0_25, %c0_26] : memref<2x1xf32, #tpu.memory_space<vmem>>, vector<2x1xf32>
      tpu.vector_store %arg6[%c0_25, %c0_26], %28 {strides = array<i32>} : memref<2x1xf32, #tpu.memory_space<vmem>>, vector<2x1xf32>,
      %c0_27 = arith.constant 0 : index
      %c0_28 = arith.constant 0 : index
      %34 = vector.load %arg7[%c0_27, %c0_28] : memref<2x1xf32, #tpu.memory_space<vmem>>, vector<2x1xf32>
      tpu.vector_store %arg7[%c0_27, %c0_28], %32 {strides = array<i32>} : memref<2x1xf32, #tpu.memory_space<vmem>>, vector<2x1xf32>,
      %35 = arith.mulf %28, %28 : vector<2x1xf32>
      %36 = arith.mulf %32, %32 : vector<2x1xf32>
      %37 = arith.addf %35, %36 : vector<2x1xf32>
      %38 = math.sqrt %37 : vector<2x1xf32>
      %c0_29 = arith.constant 0 : index
      %c0_30 = arith.constant 0 : index
      %39 = vector.load %arg5[%c0_29, %c0_30] : memref<2x1xf32, #tpu.memory_space<vmem>>, vector<2x1xf32>
      tpu.vector_store %arg5[%c0_29, %c0_30], %38 {strides = array<i32>} : memref<2x1xf32, #tpu.memory_space<vmem>>, vector<2x1xf32>,
    } else {
    }
    return
  }
  func.func @transform_0(%arg0: i32) -> (i32, i32) {
    %c0_i32 = arith.constant 0 : i32
    %c0_i32_0 = arith.constant 0 : i32
    return %c0_i32, %arg0 : i32, i32
  }
  func.func @transform_1(%arg0: i32) -> (i32, i32) {
    %c0_i32 = arith.constant 0 : i32
    %c0_i32_0 = arith.constant 0 : i32
    return %c0_i32, %arg0 : i32, i32
  }
  func.func @transform_2(%arg0: i32) -> (i32, i32) {
    %c0_i32 = arith.constant 0 : i32
    %c0_i32_0 = arith.constant 0 : i32
    return %c0_i32, %arg0 : i32, i32
  }
  func.func @transform_3(%arg0: i32) -> (i32, i32) {
    %c0_i32 = arith.constant 0 : i32
    %c0_i32_0 = arith.constant 0 : i32
    %c0_i32_1 = arith.constant 0 : i32
    return %c0_i32, %c0_i32_0 : i32, i32
  }
  func.func @transform_4(%arg0: i32) -> (i32, i32) {
    %c0_i32 = arith.constant 0 : i32
    %c0_i32_0 = arith.constant 0 : i32
    %c0_i32_1 = arith.constant 0 : i32
    return %c0_i32, %c0_i32_0 : i32, i32
  }
  func.func @transform_5(%arg0: i32) -> (i32, i32) {
    %c0_i32 = arith.constant 0 : i32
    %c0_i32_0 = arith.constant 0 : i32
    %c0_i32_1 = arith.constant 0 : i32
    return %c0_i32, %c0_i32_0 : i32, i32
  }
  func.func @transform_6(%arg0: i32) -> (i32, i32) {
    %c0_i32 = arith.constant 0 : i32
    %c0_i32_0 = arith.constant 0 : i32
    %c0_i32_1 = arith.constant 0 : i32
    return %c0_i32, %c0_i32_0 : i32, i32
  }
}

</mosaic_0001>

<bundles_post_ra>
// kernel: fc_forward.8
= control target key start
LH: loop header
LB: loop body
LE: loop exit
PB: predicated region body
PF: predicated region fallthrough
CT: control target
= control target key end

     0   :  { %s561_s18 = smov 0   ;;  %s563_s19 = smov 0   ;;  %s610_s0 = inlined_call_operand.vmem [shape: f32[4,8,128], index: 0, kind: input, shape index: {}]   ;;  %s611_s1 = inlined_call_operand.vmem [shape: f32[4,8,128], index: 1, kind: input, shape index: {}]   ;;  %s612_s2 = inlined_call_operand.vmem [shape: f32[8,1], index: 2, kind: input, shape index: {}]   ;;  %s613_s3 = inlined_call_operand.vmem [shape: f32[8,1], index: 3, kind: input, shape index: {}]   ;;  %s614_s4 = inlined_call_operand.vmem [shape: bf16[4,8,128], index: 4, kind: output, shape index: {0}]   ;;  %s615_s5 = inlined_call_operand.vmem [shape: bf16[4,8,128], index: 5, kind: output, shape index: {1}]  }
   0x1   :  { %s565_s20 = smov 0  }
   0x2 LB: > { %s28_s21 = sadd.s32 1, %s524_s19  ;;  %p471_p0 = scmp.ge.s32.totalorder %s528_s20, 1  ;;  %s528_s20 = sphi %s565_s20, %s16_s20   ;;  %s524_s19 = sphi %s563_s19, %s617_s19   ;;  %s520_s18 = sphi %s561_s18, %s616_s18  }
   0x3   : > { %p30_p1 = scmp.ge.s32.totalorder %s28_s21, 4  ;;  %p224_p2 = scmp.lt.s32.totalorder %s528_s20, 5 }
   0x5   : > { %s619_s21 = smov (%p30_p1, %s28_s21), 0  ;;  %p225_p3 = pnand %p471_p0, %p224_p2 }
   0x6   : > { %p270_p4 = scmp.lt.s32.totalorder (!%p225_p3), %s520_s18, 3 }
   0x7   : > { %228 = sbr.rel (%p225_p3) target bundleno = 149 (0x95), region = 36 }
   0xc   : > { %v315_v0 = vld [vmem:[%s612_s2] sm:$0xff]  ;;  %v530_v1 = vmov 0   ;;  %s621_s18 = smov (!%p270_p4, %s520_s18), 3 }
   0xd   : > { %503 = vset.pattern.permute.xlu0 %v530_v1  ;;  %v322_v2 = vld [vmem:[%s613_s3] sm:$0xff]  ;;  %s472_s26 = sshll.u32 %s621_s18, 3  ;;  %s474_s8 = sshll.u32 %s621_s18, 2 }
   0xe   : > { %318 = vperm.xlu0 %503, %v315_v0   ;;  %s276_s29 = scalar_lea.vmem %s610_s0, %s472_s26  ;;  %s283_s7 = scalar_lea.vmem %s611_s1, %s472_s26 }
   0xf   : > { %v298_v3 = vld [vmem:[%s276_s29] sm:$0xff]  ;;  %s290_s11 = scalar_lea.vmem %s614_s4, %s474_s8  ;;  %s297_s14 = scalar_lea.vmem %s615_s5, %s474_s8 }
  0x10   : > { %v299_v4 = vld [vmem:[%s283_s7] sm:$0xff]  ;;  %v300_v5 = vmul.f32 %v298_v3, %v298_v3 }
  0x11   : > { %v301_v6 = vmul.f32 %v299_v4, %v299_v4 }
  0x13   : > { %v302_v7 = vadd.f32 %v301_v6, %v300_v5 }
  0x15   : > { %v303_v8 = vadd.f32 1e-20, %v302_v7 }
  0x16   : > { %325 = vperm.xlu0 %503, %v322_v2  }
  0x17   : > { %504 = vrsqrt.f32 %v303_v8  ;;  %vm310_vm0 = vweird.f32 %v303_v8 }
  0x1d   : > { %v505_v9 = vpop.eup %504 }
  0x1e   : > { %v305_v10 = vmul.f32 %v505_v9, %v303_v8  ;;  %vm311_vm1 = vweird.f32 %v505_v9 }
  0x1f   : > { %vm312_vm2 = vmor %vm310_vm0, %vm311_vm1 }
  0x20   : > { %v306_v11 = vmul.f32 %v505_v9, %v305_v10 }
  0x22   : > { %v307_v12 = vmul.f32 0.5, %v306_v11 }
  0x24   : > { %v308_v13 = vsub.f32 1.5, %v307_v12 }
  0x26   : > { %v309_v14 = vmul.f32 %v505_v9, %v308_v13 }
  0x28   : > { %v313_v16 = vsel %vm312_vm2, %v505_v9, %v309_v14 }
  0x29   : > { %v314_v17 = vmul.f32 %v313_v16, %v302_v7 }
  0x80   : > { %v319_v15 = vpop.permute.xlu0 %318 }
  0x81   : > { %v321_v18 = vmul.f32 %v319_v15, %v314_v17 }
  0x88   : > { %v326_v19 = vpop.permute.xlu0 %325 }
  0x89   : > { %v328_v20 = vadd.f32 %v326_v19, %v321_v18 }
  0x8b   : > { %v329_v21 = vmax.f32 %v328_v20, 0.0 }
  0x8d   : > { %v330_v22 = vmul.f32 %v329_v21, %v313_v16 }
  0x8f   : > { %v331_v23 = vmul.f32 %v330_v22, %v298_v3  ;;  %v334_v24 = vmul.f32 %v330_v22, %v299_v4 }
  0x91   : > { %v332_v25 = vpack.c.bf16 %v331_v23, %v331_v23  ;;  %v335_v26 = vpack.c.bf16 %v334_v24, %v334_v24 }
  0x93   : > { %333 = vst [vmem:[%s290_s11] sm:$0xf] %v332_v25 }
  0x94   : > { %336 = vst [vmem:[%s297_s14] sm:$0xf] %v335_v26 }
  0x95 PF: > { %s16_s20 = sadd.s32 1, %s528_s20   ;;  %s616_s18 = smov %s524_s19 }
  0x96   : > { %p13_p5 = scmp.ge.s32.totalorder %s16_s20, 6   ;;  %s617_s19 = smov %s619_s21 }
  0x98   :  { %15 = sbr.rel (!%p13_p5) target bundleno = 2 (0x2), region = 81 }

// kernel: fc_forward.7
= control target key start
LH: loop header
LB: loop body
LE: loop exit
PB: predicated region body
PF: predicated region fallthrough
CT: control target
= control target key end

     0   :  { %vm53_vm0 = vcmask 1044480   ;;  %vm54_vm1 = vcmask 1045504   ;;  %v735_v2 = vmov 65535   ;;  %v736_v19 = vmov 0   ;;  %s973_s0 = inlined_call_operand.vmem [shape: bf16[6,27,128], index: 0, kind: input, shape index: {}]   ;;  %s974_s1 = inlined_call_operand.vmem [shape: bf16[3,8,27], index: 1, kind: input, shape index: {}]   ;;  %s975_s2 = inlined_call_operand.vmem [shape: f32[8,1], index: 2, kind: input, shape index: {}]   ;;  %s976_s4 = inlined_call_operand.vmem [shape: f32[4,8,128], index: 4, kind: output, shape index: {1}]   ;;  %s977_s3 = inlined_call_operand.vmem [shape: f32[4,8,128], index: 3, kind: output, shape index: {0}]   ;;  %s978_s5 = inlined_call_operand.vmem [shape: f32[1,2,8,1], index: 5, kind: output, shape index: {2}]  }
   0x1   :  { %v551_v0 = vld [vmem:[%s973_s0 + $0x18] sm:$0xf]  ;;  %v703_v1 = vld [vmem:[%s973_s0 + $0x18] sm:$0x30]  ;;  %v55_v3 = vsel %vm53_vm0, 4294967295, %v735_v2  ;;  %v702_v17 = vld [vmem:[%s973_s0 + $0x10] sm:$0xff]  ;;  %726 = vset.pattern.permute.xlu0 %v736_v19 }
   0x2   :  { %v552_v4 = vor.u32 %v703_v1, %v551_v0  ;;  %v773_v5 = vsel %vm54_vm1, %v55_v3, 0  ;;  %v560_v6 = vld [vmem:[%s973_s0 + $0x8] sm:$0xf]  ;;  %v701_v7 = vld [vmem:[%s973_s0 + $0x8] sm:$0x30]  ;;  %v700_v18 = vld [vmem:[%s973_s0] sm:$0xff] }
   0x3   :  { %v561_v8 = vor.u32 %v701_v7, %v560_v6  ;;  %v573_v9 = vld [vmem:[%s973_s0 + $0x28] sm:$0xf]  ;;  %v705_v10 = vld [vmem:[%s973_s0 + $0x28] sm:$0x30]  ;;  %v599_v21 = vld [vmem:[%s973_s0 + $0x18] sm:$0xf] }
   0x4   :  { %v590_v11 = vld [vmem:[%s973_s0 + $0x28] sm:$0xf]  ;;  %v58_v12 = vand.u32 %v552_v4, %v773_v5  ;;  %v574_v13 = vor.u32 %v705_v10, %v573_v9  ;;  %v709_v14 = vld [vmem:[%s973_s0 + $0x28] sm:$0x30]  ;;  %v707_v22 = vld [vmem:[%s973_s0 + $0x18] sm:$0x30] }
   0x5   :  { %v88_v15 = vand.u32 %v561_v8, %v773_v5  ;;  %v591_v16 = vor.u32 %v709_v14, %v590_v11  ;;  %v631_v23 = vld [vmem:[%s973_s0 + $0x38] sm:$0xf]  ;;  %v600_v25 = vor.u32 %v707_v22, %v599_v21  ;;  %v715_v26 = vld [vmem:[%s973_s0 + $0x38] sm:$0x30]  ;;  %v640_v27 = vld [vmem:[%s973_s0 + $0x28] sm:$0xf] }
   0x6   :  { %66 = vmatpush.bf16.msra.mxu0 %v58_v12  ;;  %v123_v20 = vand.u32 %v574_v13, %v773_v5  ;;  %v713_v28 = vld [vmem:[%s973_s0 + $0x28] sm:$0x30]  ;;  %v704_v29 = vld [vmem:[%s973_s0 + $0x20] sm:$0xff]  ;;  %v632_v30 = vor.u32 %v715_v26, %v631_v23  ;;  %v612_v32 = vld [vmem:[%s973_s0 + $0x38] sm:$0xf]  ;;  %vm49_vm2 = vcmask 220160  }
   0x7   :  { %96 = vmatpush.bf16.msra.mxu1 %v88_v15  ;;  %v183_v24 = vand.u32 %v591_v16, %v773_v5  ;;  %v641_v31 = vor.u32 %v713_v28, %v640_v27  ;;  %v711_v33 = vld [vmem:[%s973_s0 + $0x38] sm:$0x30]  ;;  %v708_v34 = vld [vmem:[%s973_s0 + $0x20] sm:$0xff]  ;;  %v210_v37 = vand.u32 %v600_v25, %v773_v5  ;;  %v653_v40 = vld [vmem:[%s973_s0 + $0x48] sm:$0xf]  ;;  %vm523_vm15 = vcmask 7168  }
   0x8   :  { %131 = vmatpush.bf16.msra.mxu2 %v123_v20  ;;  %v836_v35 = vld [vmem:[%s974_s1 + $0x4] sm:$0xf]  ;;  %v841_v36 = vld [vmem:[%s974_s1] sm:$0xf]  ;;  %v613_v38 = vor.u32 %v711_v33, %v612_v32  ;;  %v303_v39 = vand.u32 %v632_v30, %v773_v5  ;;  %v717_v41 = vld [vmem:[%s973_s0 + $0x48] sm:$0x30] }
   0x9   :  { %191 = vmatpush.bf16.msra.mxu3 %v183_v24  ;;  %v681_v42 = vld [vmem:[%s973_s0 + $0x38] sm:$0xf]  ;;  %v330_v43 = vand.u32 %v641_v31, %v773_v5  ;;  %v654_v44 = vor.u32 %v717_v41, %v653_v40  ;;  %v719_v45 = vld [vmem:[%s973_s0 + $0x38] sm:$0x30]  ;;  %v540_v48 = vld [vmem:[%s974_s1 + $0x8] sm:$0xf] }
   0xa   :  { %67 = vmatpush.bf16.msra.mxu0 %v702_v17  ;;  %v694_v46 = vld [vmem:[%s973_s0 + $0x58] sm:$0xf]  ;;  %v723_v47 = vld [vmem:[%s973_s0 + $0x58] sm:$0x30]  ;;  %v242_v49 = vand.u32 %v613_v38, %v773_v5  ;;  %v682_v50 = vor.u32 %v719_v45, %v681_v42  ;;  %v672_v52 = vld [vmem:[%s973_s0 + $0x48] sm:$0xf] }
   0xb   :  { %97 = vmatpush.bf16.msra.mxu1 %v700_v18  ;;  %v695_v51 = vor.u32 %v723_v47, %v694_v46  ;;  %v721_v53 = vld [vmem:[%s973_s0 + $0x48] sm:$0x30]  ;;  %v706_v54 = vld [vmem:[%s973_s0 + $0x10] sm:$0xff]  ;;  %v362_v57 = vand.u32 %v654_v44, %v773_v5  ;;  %v18_v58 = vld [vmem:[%s975_s2] sm:$0xff] }
   0xc   :  { %132 = vmatpush.bf16.msra.mxu2 %v704_v29  ;;  %v673_v55 = vor.u32 %v721_v53, %v672_v52  ;;  %v714_v56 = vld [vmem:[%s973_s0 + $0x30] sm:$0xff]  ;;  %v712_v59 = vld [vmem:[%s973_s0 + $0x20] sm:$0xff]  ;;  %v450_v60 = vand.u32 %v682_v50, %v773_v5  ;;  %26 = vperm.xlu0 %726, %v18_v58  }
   0xd   :  { %192 = vmatpush.bf16.msra.mxu3 %v708_v34  ;;  %553 = vmatmul.msk.bf16.vlgmr.msra.gmra.mxu0 %vm49_vm2, %v836_v35  ;;  %v710_v61 = vld [vmem:[%s973_s0 + $0x30] sm:$0xff]  ;;  %v482_v62 = vand.u32 %v695_v51, %v773_v5  ;;  %v716_v0 = vld [vmem:[%s973_s0 + $0x40] sm:$0xff] }
   0xe   :  { %218 = vmatpush.bf16.msrb.mxu0 %v210_v37  ;;  %562 = vmatmul.msk.bf16.vlgmr.msra.gmra.mxu1 %vm49_vm2, %v841_v36  ;;  %v423_v63 = vand.u32 %v673_v55, %v773_v5  ;;  %v718_v1 = vld [vmem:[%s973_s0 + $0x30] sm:$0xff]  ;;  %v720_v3 = vld [vmem:[%s973_s0 + $0x40] sm:$0xff] }
   0xf   :  { %575 = vmatmul.msk.bf16.vlgmr.msra.gmra.mxu2 %vm49_vm2, %v540_v48  ;;  %250 = vmatpush.bf16.msrb.mxu1 %v242_v49  ;;  %v722_v2 = vld [vmem:[%s973_s0 + $0x50] sm:$0xff] }
  0x10   :  { %311 = vmatpush.bf16.msrb.mxu2 %v303_v39  ;;  %592 = vmatmul.msk.bf16.vlgmr.msra.gmra.mxu3 %vm49_vm2, %v836_v35 }
  0x11   :  { %338 = vmatpush.bf16.msrb.mxu3 %v330_v43 }
  0x12   :  { %219 = vmatpush.bf16.msrb.mxu0 %v706_v54 }
  0x13   :  { %251 = vmatpush.bf16.msrb.mxu1 %v710_v61 }
  0x14   :  { %312 = vmatpush.bf16.msrb.mxu2 %v714_v56 }
  0x15   :  { %339 = vmatpush.bf16.msrb.mxu3 %v712_v59 }
  0x16   :  { %370 = vmatpush.bf16.msra.mxu0 %v362_v57 }
  0x17   :  { %431 = vmatpush.bf16.msra.mxu1 %v423_v63 }
  0x18   :  { %458 = vmatpush.bf16.msra.mxu2 %v450_v60 }
  0x19   :  { %490 = vmatpush.bf16.msra.mxu3 %v482_v62 }
  0x1a   :  { %371 = vmatpush.bf16.msra.mxu0 %v716_v0 }
  0x1b   :  { %432 = vmatpush.bf16.msra.mxu1 %v720_v3 }
  0x1c   :  { %459 = vmatpush.bf16.msra.mxu2 %v718_v1 }
  0x1d   :  { %491 = vmatpush.bf16.msra.mxu3 %v722_v2  ;;  %601 = vmatmul.msk.bf16.vlgmr.msrb.gmra.mxu0 %vm49_vm2, %v841_v36 }
  0x1e   :  { %614 = vmatmul.msk.bf16.vlgmr.msrb.gmra.mxu1 %vm49_vm2, %v540_v48 }
  0x1f   :  { %633 = vmatmul.msk.bf16.vlgmr.msrb.gmra.mxu2 %vm49_vm2, %v836_v35 }
  0x20   :  { %642 = vmatmul.msk.bf16.vlgmr.msrb.gmra.mxu3 %vm49_vm2, %v841_v36 }
  0x2d   :  { %655 = vmatmul.msk.bf16.vlgmr.msra.gmra.mxu0 %vm49_vm2, %v540_v48 }
  0x2e   :  { %674 = vmatmul.msk.bf16.vlgmr.msra.gmra.mxu1 %vm49_vm2, %v836_v35 }
  0x2f   :  { %683 = vmatmul.msk.bf16.vlgmr.msra.gmra.mxu2 %vm49_vm2, %v841_v36 }
  0x30   :  { %696 = vmatmul.msk.bf16.vlgmr.msra.gmra.mxu3 %vm49_vm2, %v540_v48 }
  0x7e   :  { %v925_v4 = vpop.permute.xlu0 %26 }
  0x7f   :  { %141 = vst [vmem:[%s976_s4] sm:$0xff] %v925_v4  ;;  %v946_v14 = vmul.f32 %v925_v4, %v925_v4 }
  0x80   :  { %616 = vst [vmem:[%s976_s4 + $0x8] sm:$0xff] %v925_v4 }
  0x81   :  { %657 = vst [vmem:[%s976_s4 + $0x10] sm:$0xff] %v925_v4 }
  0x82   :  { %698 = vst [vmem:[%s976_s4 + $0x18] sm:$0xff] %v925_v4 }
  0x8a   :  { %v69_v5 = vpop.f32.mrf.mxu0 }
  0x8b   :  { %v99_v6 = vpop.f32.mrf.mxu1 }
  0x8c   :  { %v100_v7 = vadd.f32 %v99_v6, %v69_v5 }
  0x92   :  { %v134_v8 = vpop.f32.mrf.mxu2  ;;  %v71_v9 = vpop.f32.mrf.mxu0 }
  0x93   :  { %v138_v10 = vadd.f32 %v134_v8, %v100_v7  ;;  %v194_v11 = vpop.f32.mrf.mxu3  ;;  %v101_v12 = vpop.f32.mrf.mxu1 }
  0x95   :  { %v139_v13 = vadd.f32 %v138_v10, %v925_v4 }
  0x97   :  { %v142_v15 = vmul.f32 %v139_v13, %v139_v13  ;;  %140 = vst [vmem:[%s977_s3] sm:$0xff] %v139_v13 }
  0x99   :  { %v144_v16 = vadd.f32 %v946_v14, %v142_v15 }
  0x9a   :  { %v136_v17 = vpop.f32.mrf.mxu2  ;;  %v221_v18 = vpop.f32.mrf.mxu0 }
  0x9b   :  { %v196_v19 = vpop.f32.mrf.mxu3  ;;  %160 = vadd.xlane.f32.xlu1 %v144_v16  ;;  %v145_v20 = vadd.f32 1e-20, %v144_v16  ;;  %v222_v21 = vadd.f32 %v221_v18, %v194_v11  ;;  %v253_v22 = vpop.f32.mrf.mxu1 }
  0x9d   :  { %727 = vrsqrt.f32 %v145_v20  ;;  %v257_v23 = vadd.f32 %v253_v22, %v222_v21  ;;  %vm152_vm4 = vweird.f32 %v145_v20 }
  0x9f   :  { %v258_v24 = vadd.f32 %v257_v23, %v925_v4 }
  0xa1   :  { %615 = vst [vmem:[%s977_s3 + $0x8] sm:$0xff] %v258_v24  ;;  %v263_v25 = vmul.f32 %v258_v24, %v258_v24 }
  0xa2   :  { %v314_v26 = vpop.f32.mrf.mxu2  ;;  %v223_v27 = vpop.f32.mrf.mxu0 }
  0xa3   :  { %v728_v28 = vpop.eup %727  ;;  %v341_v29 = vpop.f32.mrf.mxu3  ;;  %v264_v31 = vadd.f32 %v263_v25, %v946_v14 }
  0xa4   :  { %v255_v30 = vpop.f32.mrf.mxu1  ;;  %v147_v32 = vmul.f32 %v728_v28, %v145_v20  ;;  %v342_v36 = vadd.f32 %v341_v29, %v314_v26  ;;  %vm153_vm3 = vweird.f32 %v728_v28 }
  0xa5   :  { %280 = vadd.xlane.f32.xlu2 %v264_v31  ;;  %v265_v33 = vadd.f32 1e-20, %v264_v31  ;;  %vm154_vm5 = vmor %vm152_vm4, %vm153_vm3 }
  0xa6   :  { %v148_v34 = vmul.f32 %v728_v28, %v147_v32 }
  0xa7   :  { %729 = vrsqrt.f32 %v265_v33  ;;  %vm272_vm7 = vweird.f32 %v265_v33 }
  0xa8   :  { %v149_v35 = vmul.f32 0.5, %v148_v34 }
  0xaa   :  { %v316_v37 = vpop.f32.mrf.mxu2  ;;  %v373_v38 = vpop.f32.mrf.mxu0  ;;  %v150_v39 = vsub.f32 1.5, %v149_v35 }
  0xab   :  { %v343_v40 = vpop.f32.mrf.mxu3  ;;  %v377_v41 = vadd.f32 %v373_v38, %v342_v36 }
  0xac   :  { %v434_v42 = vpop.f32.mrf.mxu1  ;;  %v151_v43 = vmul.f32 %v728_v28, %v150_v39 }
  0xad   :  { %v730_v44 = vpop.eup %729  ;;  %v378_v45 = vadd.f32 %v377_v41, %v925_v4 }
  0xae   :  { %v155_v46 = vsel %vm154_vm5, %v728_v28, %v151_v43  ;;  %v267_v47 = vmul.f32 %v730_v44, %v265_v33  ;;  %vm273_vm6 = vweird.f32 %v730_v44 }
  0xaf   :  { %656 = vst [vmem:[%s977_s3 + $0x10] sm:$0xff] %v378_v45  ;;  %v383_v48 = vmul.f32 %v378_v45, %v378_v45  ;;  %v156_v49 = vmul.f32 %v155_v46, %v144_v16  ;;  %vm274_vm8 = vmor %vm272_vm7, %vm273_vm6 }
  0xb0   :  { %v268_v50 = vmul.f32 %v730_v44, %v267_v47 }
  0xb1   :  { %157 = vadd.xlane.f32.xlu0 %v156_v49  ;;  %v384_v51 = vadd.f32 %v383_v48, %v946_v14 }
  0xb2   :  { %v461_v52 = vpop.f32.mrf.mxu2  ;;  %v375_v53 = vpop.f32.mrf.mxu0  ;;  %v269_v54 = vmul.f32 0.5, %v268_v50 }
  0xb3   :  { %v462_v55 = vadd.f32 %v461_v52, %v434_v42  ;;  %v493_v56 = vpop.f32.mrf.mxu3  ;;  %v385_v58 = vadd.f32 1e-20, %v384_v51  ;;  %400 = vadd.xlane.f32.xlu1 %v384_v51 }
  0xb4   :  { %v436_v57 = vpop.f32.mrf.mxu1  ;;  %v270_v59 = vsub.f32 1.5, %v269_v54 }
  0xb5   :  { %v497_v60 = vadd.f32 %v493_v56, %v462_v55  ;;  %731 = vrsqrt.f32 %v385_v58  ;;  %vm392_vm10 = vweird.f32 %v385_v58 }
  0xb6   :  { %v271_v61 = vmul.f32 %v730_v44, %v270_v59 }
  0xb7   :  { %v498_v62 = vadd.f32 %v497_v60, %v925_v4 }
  0xb8   :  { %v275_v63 = vsel %vm274_vm8, %v730_v44, %v271_v61 }
  0xb9   :  { %697 = vst [vmem:[%s977_s3 + $0x18] sm:$0xff] %v498_v62  ;;  %v503_v0 = vmul.f32 %v498_v62, %v498_v62  ;;  %v276_v1 = vmul.f32 %v275_v63, %v264_v31 }
  0xba   :  { %v463_v2 = vpop.f32.mrf.mxu2 }
  0xbb   :  { %v732_v3 = vpop.eup %731  ;;  %v495_v5 = vpop.f32.mrf.mxu3  ;;  %277 = vadd.xlane.f32.xlu1 %v276_v1  ;;  %v504_v6 = vadd.f32 %v503_v0, %v946_v14 }
  0xbc   :  { %v387_v7 = vmul.f32 %v732_v3, %v385_v58  ;;  %vm393_vm9 = vweird.f32 %v732_v3 }
  0xbd   :  { %v505_v8 = vadd.f32 1e-20, %v504_v6  ;;  %vm394_vm11 = vmor %vm392_vm10, %vm393_vm9 }
  0xbe   :  { %v388_v9 = vmul.f32 %v732_v3, %v387_v7 }
  0xbf   :  { %733 = vrsqrt.f32 %v505_v8  ;;  %vm512_vm13 = vweird.f32 %v505_v8 }
  0xc0   :  { %v389_v10 = vmul.f32 0.5, %v388_v9 }
  0xc2   :  { %v390_v4 = vsub.f32 1.5, %v389_v10 }
  0xc3   :  { %520 = vadd.xlane.f32.xlu1 %v504_v6 }
  0xc4   :  { %v391_v11 = vmul.f32 %v732_v3, %v390_v4 }
  0xc5   :  { %v734_v12 = vpop.eup %733 }
  0xc6   :  { %v395_v13 = vsel %vm394_vm11, %v732_v3, %v391_v11  ;;  %v507_v15 = vmul.f32 %v734_v12, %v505_v8  ;;  %vm513_vm12 = vweird.f32 %v734_v12 }
  0xc7   :  { %v396_v16 = vmul.f32 %v395_v13, %v384_v51  ;;  %vm514_vm14 = vmor %vm512_vm13, %vm513_vm12 }
  0xc8   :  { %v508_v17 = vmul.f32 %v734_v12, %v507_v15 }
  0xc9   :  { %397 = vadd.xlane.f32.xlu2 %v396_v16 }
  0xca   :  { %v509_v18 = vmul.f32 0.5, %v508_v17 }
  0xcc   :  { %v510_v19 = vsub.f32 1.5, %v509_v18 }
  0xce   :  { %v511_v14 = vmul.f32 %v734_v12, %v510_v19 }
  0xd0   :  { %v515_v20 = vsel %vm514_vm14, %v734_v12, %v511_v14 }
  0xd1   :  { %v516_v21 = vmul.f32 %v515_v20, %v504_v6 }
  0xd3   :  { %517 = vadd.xlane.f32.xlu2 %v516_v21 }
 0x10e   :  { %v161_v22 = vpop.xlane.xlu1 %160 }
 0x118   :  { %v281_v25 = vpop.xlane.xlu2 %280 }
 0x119   :  { %v282_v26 = vadd.f32 %v281_v25, %v161_v22 }
 0x124   :  { %v158_v31 = vpop.xlane.xlu0 %157 }
 0x126   :  { %v401_v23 = vpop.xlane.xlu1 %400 }
 0x127   :  { %v402_v27 = vadd.f32 %v401_v23, %v282_v26 }
 0x12e   :  { %v278_v24 = vpop.xlane.xlu1 %277 }
 0x12f   :  { %v279_v32 = vadd.f32 %v278_v24, %v158_v31 }
 0x136   :  { %v521_v28 = vpop.xlane.xlu1 %520 }
 0x137   :  { %v522_v29 = vadd.f32 %v521_v28, %v402_v27 }
 0x139   :  { %699 = vst.msk [vmem:[%s978_s5 + $0x8] sm:$0xff] %vm523_vm15, %v522_v29 }
 0x13c   :  { %v398_v30 = vpop.xlane.xlu2 %397 }
 0x13d   :  { %v399_v33 = vadd.f32 %v398_v30, %v279_v32 }
 0x146   :  { %v518_v34 = vpop.xlane.xlu2 %517 }
 0x147   :  { %v519_v35 = vadd.f32 %v518_v34, %v399_v33 }
 0x149   :  { %524 = vst.msk [vmem:[%s978_s5] sm:$0xff] %vm523_vm15, %v519_v35 }

// kernel: fc_forward.10
= control target key start
LH: loop header
LB: loop body
LE: loop exit
PB: predicated region body
PF: predicated region fallthrough
CT: control target
= control target key end

     0   :  { %s562_s18 = smov 0   ;;  %s564_s19 = smov 0   ;;  %s611_s0 = inlined_call_operand.vmem [shape: f32[4,8,32], index: 0, kind: input, shape index: {}]   ;;  %s612_s1 = inlined_call_operand.vmem [shape: f32[4,8,32], index: 1, kind: input, shape index: {}]   ;;  %s613_s2 = inlined_call_operand.vmem [shape: f32[8,1], index: 2, kind: input, shape index: {}]   ;;  %s614_s3 = inlined_call_operand.vmem [shape: f32[8,1], index: 3, kind: input, shape index: {}]   ;;  %s615_s4 = inlined_call_operand.vmem [shape: bf16[4,8,32], index: 4, kind: output, shape index: {0}]   ;;  %s616_s5 = inlined_call_operand.vmem [shape: bf16[4,8,32], index: 5, kind: output, shape index: {1}]  }
   0x1   :  { %s566_s20 = smov 0  }
   0x2 LB: > { %s28_s21 = sadd.s32 1, %s525_s19  ;;  %p472_p0 = scmp.ge.s32.totalorder %s529_s20, 1  ;;  %s529_s20 = sphi %s566_s20, %s16_s20   ;;  %s525_s19 = sphi %s564_s19, %s618_s19   ;;  %s521_s18 = sphi %s562_s18, %s617_s18  }
   0x3   : > { %p30_p1 = scmp.ge.s32.totalorder %s28_s21, 4  ;;  %p224_p2 = scmp.lt.s32.totalorder %s529_s20, 5 }
   0x5   : > { %s620_s21 = smov (%p30_p1, %s28_s21), 0  ;;  %p225_p3 = pnand %p472_p0, %p224_p2 }
   0x6   : > { %p270_p4 = scmp.lt.s32.totalorder (!%p225_p3), %s521_s18, 3 }
   0x7   : > { %228 = sbr.rel (%p225_p3) target bundleno = 149 (0x95), region = 36 }
   0xc   : > { %v315_v0 = vld [vmem:[%s613_s2] sm:$0xff]  ;;  %v531_v1 = vmov 0   ;;  %s622_s18 = smov (!%p270_p4, %s521_s18), 3  ;;  %vm333_vm3 = vcmask 257024  }
   0xd   : > { %504 = vset.pattern.permute.xlu0 %v531_v1  ;;  %v322_v2 = vld [vmem:[%s614_s3] sm:$0xff]  ;;  %s473_s26 = sshll.u32 %s622_s18, 3  ;;  %s475_s8 = sshll.u32 %s622_s18, 2 }
   0xe   : > { %318 = vperm.xlu0 %504, %v315_v0   ;;  %s276_s29 = scalar_lea.vmem %s611_s0, %s473_s26  ;;  %s283_s7 = scalar_lea.vmem %s612_s1, %s473_s26 }
   0xf   : > { %v298_v3 = vld [vmem:[%s276_s29] sm:$0xff]  ;;  %s290_s11 = scalar_lea.vmem %s615_s4, %s475_s8  ;;  %s297_s14 = scalar_lea.vmem %s616_s5, %s475_s8 }
  0x10   : > { %v299_v4 = vld [vmem:[%s283_s7] sm:$0xff]  ;;  %v300_v5 = vmul.f32 %v298_v3, %v298_v3 }
  0x11   : > { %v301_v6 = vmul.f32 %v299_v4, %v299_v4 }
  0x13   : > { %v302_v7 = vadd.f32 %v301_v6, %v300_v5 }
  0x15   : > { %v303_v8 = vadd.f32 1e-20, %v302_v7 }
  0x16   : > { %325 = vperm.xlu0 %504, %v322_v2  }
  0x17   : > { %505 = vrsqrt.f32 %v303_v8  ;;  %vm310_vm0 = vweird.f32 %v303_v8 }
  0x1d   : > { %v506_v9 = vpop.eup %505 }
  0x1e   : > { %v305_v10 = vmul.f32 %v506_v9, %v303_v8  ;;  %vm311_vm1 = vweird.f32 %v506_v9 }
  0x1f   : > { %vm312_vm2 = vmor %vm310_vm0, %vm311_vm1 }
  0x20   : > { %v306_v11 = vmul.f32 %v506_v9, %v305_v10 }
  0x22   : > { %v307_v12 = vmul.f32 0.5, %v306_v11 }
  0x24   : > { %v308_v13 = vsub.f32 1.5, %v307_v12 }
  0x26   : > { %v309_v14 = vmul.f32 %v506_v9, %v308_v13 }
  0x28   : > { %v313_v16 = vsel %vm312_vm2, %v506_v9, %v309_v14 }
  0x29   : > { %v314_v17 = vmul.f32 %v313_v16, %v302_v7 }
  0x80   : > { %v319_v15 = vpop.permute.xlu0 %318 }
  0x81   : > { %v321_v18 = vmul.f32 %v319_v15, %v314_v17 }
  0x88   : > { %v326_v19 = vpop.permute.xlu0 %325 }
  0x89   : > { %v328_v20 = vadd.f32 %v326_v19, %v321_v18 }
  0x8b   : > { %v329_v21 = vmax.f32 %v328_v20, 0.0 }
  0x8d   : > { %v330_v22 = vmul.f32 %v329_v21, %v313_v16 }
  0x8f   : > { %v331_v23 = vmul.f32 %v330_v22, %v298_v3  ;;  %v335_v24 = vmul.f32 %v330_v22, %v299_v4 }
  0x91   : > { %v332_v25 = vpack.c.bf16 %v331_v23, %v331_v23  ;;  %v336_v26 = vpack.c.bf16 %v335_v24, %v335_v24 }
  0x93   : > { %334 = vst.msk [vmem:[%s290_s11] sm:$0xf] %vm333_vm3, %v332_v25 }
  0x94   : > { %337 = vst.msk [vmem:[%s297_s14] sm:$0xf] %vm333_vm3, %v336_v26 }
  0x95 PF: > { %s16_s20 = sadd.s32 1, %s529_s20   ;;  %s617_s18 = smov %s525_s19 }
  0x96   : > { %p13_p5 = scmp.ge.s32.totalorder %s16_s20, 6   ;;  %s618_s19 = smov %s620_s21 }
  0x98   :  { %15 = sbr.rel (!%p13_p5) target bundleno = 2 (0x2), region = 81 }

// kernel: fc_forward.9
= control target key start
LH: loop header
LB: loop body
LE: loop exit
PB: predicated region body
PF: predicated region fallthrough
CT: control target
= control target key end

     0   :  { %vm57_vm0 = vcmask 1041408   ;;  %v1449_v11 = vmov 0   ;;  %vm53_vm1 = vcmask 293888   ;;  %vm267_vm2 = vcmask 261120   ;;  %s1847_s0 = inlined_call_operand.vmem [shape: bf16[6,36,32], index: 0, kind: input, shape index: {}]   ;;  %s1848_s1 = inlined_call_operand.vmem [shape: bf16[6,36,32], index: 1, kind: input, shape index: {}]   ;;  %s1849_s3 = inlined_call_operand.vmem [shape: f32[8,1], index: 3, kind: input, shape index: {}]   ;;  %s1850_s2 = inlined_call_operand.vmem [shape: bf16[3,8,36], index: 2, kind: input, shape index: {}]   ;;  %s1851_s4 = inlined_call_operand.vmem [shape: f32[4,8,32], index: 4, kind: output, shape index: {0}]   ;;  %s1852_s5 = inlined_call_operand.vmem [shape: f32[4,8,32], index: 5, kind: output, shape index: {1}]   ;;  %s1853_s6 = inlined_call_operand.vmem [shape: f32[1,2,8,1], index: 6, kind: output, shape index: {2}]  }
   0x1   :  { %v1062_v0 = vld [vmem:[%s1847_s0 + $0x24] sm:$0x3]  ;;  %v31_v1 = vld [vmem:[%s1847_s0 + $0x10] sm:$0x3]  ;;  %v1085_v2 = vld [vmem:[%s1847_s0 + $0x38] sm:$0x3]  ;;  %1440 = vset.pattern.permute.xlu0 %v1449_v11 }
   0x2   :  { %v47_v3 = vunpack.c.l.b16 %v1062_v0  ;;  %v83_v4 = vunpack.c.l.b16 %v31_v1  ;;  %v123_v5 = vunpack.c.l.b16 %v1085_v2  ;;  %v1099_v6 = vld [vmem:[%s1848_s1 + $0x24] sm:$0x3]  ;;  %v1394_v16 = vld [vmem:[%s1847_s0 + $0x1c] sm:$0xff]  ;;  %v1141_v17 = vld [vmem:[%s1847_s0 + $0x38] sm:$0x3]  ;;  %vm1040_vm15 = vcmask 7168  }
   0x3   :  { %v175_v7 = vunpack.c.l.b16 %v1099_v6  ;;  %v1392_v19 = vld [vmem:[%s1847_s0 + $0x8] sm:$0xff]  ;;  %v312_v20 = vunpack.c.l.b16 %v1141_v17  ;;  %v1136_v21 = vld [vmem:[%s1847_s0 + $0x24] sm:$0x3]  ;;  %v159_v22 = vld [vmem:[%s1848_s1 + $0x10] sm:$0x3] }
   0x4   :  { %v50_v8 = vpack.c.b16 %v47_v3, %v47_v3  ;;  %v86_v9 = vpack.c.b16 %v83_v4, %v83_v4  ;;  %v126_v10 = vpack.c.b16 %v123_v5, %v123_v5  ;;  %v1396_v23 = vld [vmem:[%s1847_s0 + $0x30] sm:$0xff]  ;;  %v1400_v24 = vld [vmem:[%s1848_s1 + $0x1c] sm:$0xff]  ;;  %v343_v25 = vunpack.c.l.b16 %v1136_v21  ;;  %v1122_v26 = vld [vmem:[%s1848_s1 + $0x38] sm:$0x3] }
   0x5   :  { %v178_v12 = vpack.c.b16 %v175_v7, %v175_v7  ;;  %v206_v27 = vunpack.c.l.b16 %v159_v22  ;;  %v243_v28 = vunpack.c.l.b16 %v1122_v26  ;;  %v1393_v29 = vld [vmem:[%s1847_s0 + $0x14] sm:$0xff]  ;;  %v315_v30 = vpack.c.b16 %v312_v20, %v312_v20  ;;  %v1391_v32 = vld [vmem:[%s1847_s0] sm:$0xff]  ;;  %v1395_v33 = vld [vmem:[%s1847_s0 + $0x28] sm:$0xff] }
   0x6   :  { %v59_v13 = vsel %vm57_vm0, %v50_v8, 0  ;;  %v93_v14 = vsel %vm57_vm0, %v86_v9, 0  ;;  %v133_v15 = vsel %vm57_vm0, %v126_v10, 0  ;;  %v346_v31 = vpack.c.b16 %v343_v25, %v343_v25  ;;  %v21_v34 = vld [vmem:[%s1849_s3] sm:$0xff]  ;;  %v1399_v35 = vld [vmem:[%s1848_s1 + $0x14] sm:$0xff]  ;;  %v1398_v57 = vld [vmem:[%s1848_s1 + $0x8] sm:$0xff] }
   0x7   :  { %66 = vmatpush.bf16.msra.mxu0 %v59_v13  ;;  %100 = vmatpush.bf16.msra.mxu1 %v93_v14  ;;  %v182_v18 = vsel %vm57_vm0, %v178_v12, 0  ;;  %v1178_v36 = vld [vmem:[%s1848_s1 + $0x24] sm:$0x3]  ;;  %v1206_v37 = vld [vmem:[%s1848_s1 + $0x4c] sm:$0x3]  ;;  %v209_v38 = vpack.c.b16 %v206_v27, %v206_v27  ;;  %v246_v39 = vpack.c.b16 %v243_v28, %v243_v28  ;;  %v319_v41 = vsel %vm57_vm0, %v315_v30, 0 }
   0x8   :  { %140 = vmatpush.bf16.msra.mxu2 %v133_v15  ;;  %189 = vmatpush.bf16.msra.mxu3 %v182_v18  ;;  %v1549_v40 = vld [vmem:[%s1850_s2 + $0x4] sm:$0xf]  ;;  %v350_v42 = vsel %vm57_vm0, %v346_v31, 0  ;;  %v1556_v43 = vld [vmem:[%s1850_s2] sm:$0xf]  ;;  %v454_v44 = vunpack.c.l.b16 %v1178_v36  ;;  %v491_v45 = vunpack.c.l.b16 %v1206_v37  ;;  %v1406_v51 = vld [vmem:[%s1847_s0 + $0x30] sm:$0xff] }
   0x9   :  { %151 = vperm.xlu0 %1440, %v21_v34   ;;  %v1164_v46 = vld [vmem:[%s1847_s0 + $0x4c] sm:$0x3]  ;;  %v1183_v47 = vld [vmem:[%s1848_s1 + $0x38] sm:$0x3]  ;;  %v1567_v48 = vld [vmem:[%s1850_s2 + $0x8] sm:$0xf] }
   0xa   :  { %v213_v49 = vsel %vm57_vm0, %v209_v38, 0  ;;  %v250_v50 = vsel %vm57_vm0, %v246_v39, 0  ;;  %v1404_v52 = vld [vmem:[%s1847_s0 + $0x1c] sm:$0xff]  ;;  %v380_v53 = vunpack.c.l.b16 %v1164_v46  ;;  %v423_v54 = vunpack.c.l.b16 %v1183_v47  ;;  %v1402_v58 = vld [vmem:[%s1848_s1 + $0x30] sm:$0xff]  ;;  %v1405_v59 = vld [vmem:[%s1847_s0 + $0x28] sm:$0xff] }
   0xb   :  { %67 = vmatpush.bf16.msra.mxu0 %v1394_v16  ;;  %101 = vmatpush.bf16.msra.mxu1 %v1392_v19  ;;  %v457_v55 = vpack.c.b16 %v454_v44, %v454_v44  ;;  %v494_v56 = vpack.c.b16 %v491_v45, %v491_v45  ;;  %v1403_v60 = vld [vmem:[%s1847_s0 + $0x14] sm:$0xff]  ;;  %v1397_v63 = vld [vmem:[%s1848_s1] sm:$0xff]  ;;  %v1401_v2 = vld [vmem:[%s1848_s1 + $0x28] sm:$0xff] }
   0xc   :  { %141 = vmatpush.bf16.msra.mxu2 %v1396_v23  ;;  %190 = vmatpush.bf16.msra.mxu3 %v1400_v24  ;;  %v383_v61 = vpack.c.b16 %v380_v53, %v380_v53  ;;  %v426_v62 = vpack.c.b16 %v423_v54, %v423_v54  ;;  %v1250_v3 = vld [vmem:[%s1847_s0 + $0x60] sm:$0x3]  ;;  %v1269_v4 = vld [vmem:[%s1848_s1 + $0x4c] sm:$0x3]  ;;  %v1222_v6 = vld [vmem:[%s1847_s0 + $0x38] sm:$0x3] }
   0xd   :  { %v461_v0 = vsel %vm57_vm0, %v457_v55, 0  ;;  %v498_v1 = vsel %vm57_vm0, %v494_v56, 0  ;;  %v1227_v5 = vld [vmem:[%s1847_s0 + $0x4c] sm:$0x3]  ;;  %v1410_v9 = vld [vmem:[%s1848_s1 + $0x1c] sm:$0xff]  ;;  %v1414_v10 = vld [vmem:[%s1848_s1 + $0x44] sm:$0xff]  ;;  %v629_v11 = vunpack.c.l.b16 %v1250_v3  ;;  %v672_v12 = vunpack.c.l.b16 %v1269_v4 }
   0xe   :  { %v387_v7 = vsel %vm57_vm0, %v383_v61, 0  ;;  %v430_v8 = vsel %vm57_vm0, %v426_v62, 0  ;;  %v561_v13 = vunpack.c.l.b16 %v1227_v5  ;;  %v592_v14 = vunpack.c.l.b16 %v1222_v6  ;;  %v1408_v15 = vld [vmem:[%s1847_s0 + $0x44] sm:$0xff]  ;;  %v1412_v16 = vld [vmem:[%s1848_s1 + $0x30] sm:$0xff]  ;;  %v1413_v20 = vld [vmem:[%s1848_s1 + $0x3c] sm:$0xff] }
   0xf   :  { %68 = vmatpush.bf16.msra.mxu0 %v1393_v29  ;;  %102 = vmatpush.bf16.msra.mxu1 %v1391_v32  ;;  %v632_v17 = vpack.c.b16 %v629_v11, %v629_v11  ;;  %v675_v18 = vpack.c.b16 %v672_v12, %v672_v12  ;;  %v1409_v19 = vld [vmem:[%s1848_s1 + $0x14] sm:$0xff]  ;;  %v1407_v23 = vld [vmem:[%s1847_s0 + $0x3c] sm:$0xff]  ;;  %v1411_v24 = vld [vmem:[%s1848_s1 + $0x28] sm:$0xff] }
  0x10   :  { %142 = vmatpush.bf16.msra.mxu2 %v1395_v33  ;;  %191 = vmatpush.bf16.msra.mxu3 %v1399_v35  ;;  %v564_v21 = vpack.c.b16 %v561_v13, %v561_v13  ;;  %v595_v22 = vpack.c.b16 %v592_v14, %v592_v14  ;;  %v1420_v29 = vld [vmem:[%s1847_s0 + $0x58] sm:$0xff]  ;;  %v1424_v30 = vld [vmem:[%s1848_s1 + $0x44] sm:$0xff]  ;;  %v1313_v32 = vld [vmem:[%s1847_s0 + $0x60] sm:$0x3] }
  0x11   :  { %v636_v25 = vsel %vm57_vm0, %v632_v17, 0  ;;  %v679_v26 = vsel %vm57_vm0, %v675_v18, 0  ;;  %v1418_v31 = vld [vmem:[%s1847_s0 + $0x44] sm:$0xff]  ;;  %v1308_v33 = vld [vmem:[%s1847_s0 + $0x4c] sm:$0x3]  ;;  %v1416_v34 = vld [vmem:[%s1847_s0 + $0x30] sm:$0xff]  ;;  %v810_v37 = vunpack.c.l.b16 %v1313_v32 }
  0x12   :  { %1071 = vmatmul.msk.bf16.vlgmr.msra.gmra.mxu0 %vm53_vm1, %v1549_v40  ;;  %1080 = vmatmul.msk.bf16.vlgmr.msra.gmra.mxu1 %vm53_vm1, %v1556_v43  ;;  %v568_v27 = vsel %vm57_vm0, %v564_v21, 0  ;;  %v599_v28 = vsel %vm57_vm0, %v595_v22, 0  ;;  %v1264_v35 = vld [vmem:[%s1848_s1 + $0x38] sm:$0x3]  ;;  %v1292_v36 = vld [vmem:[%s1848_s1 + $0x60] sm:$0x3]  ;;  %v841_v38 = vunpack.c.l.b16 %v1308_v33 }
  0x13   :  { %1094 = vmatmul.msk.bf16.vlgmr.msra.gmra.mxu2 %vm53_vm1, %v1567_v48  ;;  %1108 = vmatmul.msk.bf16.vlgmr.msra.gmra.mxu3 %vm53_vm1, %v1549_v40  ;;  %v1419_v39 = vld [vmem:[%s1847_s0 + $0x50] sm:$0xff]  ;;  %v740_v44 = vunpack.c.l.b16 %v1292_v36  ;;  %v1417_v45 = vld [vmem:[%s1847_s0 + $0x3c] sm:$0xff]  ;;  %v1415_v46 = vld [vmem:[%s1847_s0 + $0x28] sm:$0xff]  ;;  %v813_v47 = vpack.c.b16 %v810_v37, %v810_v37 }
  0x14   :  { %326 = vmatpush.bf16.msrb.mxu2 %v319_v41  ;;  %357 = vmatpush.bf16.msrb.mxu3 %v350_v42  ;;  %v1423_v41 = vld [vmem:[%s1848_s1 + $0x3c] sm:$0xff]  ;;  %v703_v42 = vunpack.c.l.b16 %v1264_v35  ;;  %v1378_v61 = vld [vmem:[%s1848_s1 + $0x74] sm:$0x3]  ;;  %v1438_v17 = vld [vmem:[%s1848_s1 + $0x6c] sm:$0xff] }
  0x15   :  { %220 = vmatpush.bf16.msrb.mxu0 %v213_v49  ;;  %257 = vmatpush.bf16.msrb.mxu1 %v250_v50  ;;  %v844_v49 = vpack.c.b16 %v841_v38, %v841_v38  ;;  %v1430_v56 = vld [vmem:[%s1847_s0 + $0x58] sm:$0xff]  ;;  %v1336_v62 = vld [vmem:[%s1847_s0 + $0x74] sm:$0x3]  ;;  %v989_v5 = vunpack.c.l.b16 %v1378_v61  ;;  %v1432_v18 = vld [vmem:[%s1847_s0 + $0x6c] sm:$0xff] }
  0x16   :  { %v706_v50 = vpack.c.b16 %v703_v42, %v703_v42  ;;  %v1425_v3 = vld [vmem:[%s1848_s1 + $0x50] sm:$0xff]  ;;  %v878_v6 = vunpack.c.l.b16 %v1336_v62  ;;  %v1437_v21 = vld [vmem:[%s1848_s1 + $0x64] sm:$0xff] }
  0x17   :  { %v848_v53 = vsel %vm57_vm0, %v844_v49, 0  ;;  %v1431_v22 = vld [vmem:[%s1847_s0 + $0x64] sm:$0xff] }
  0x18   :  { %327 = vmatpush.bf16.msrb.mxu2 %v1406_v51  ;;  %358 = vmatpush.bf16.msrb.mxu3 %v1404_v52  ;;  %v743_v51 = vpack.c.b16 %v740_v44, %v740_v44  ;;  %v817_v52 = vsel %vm57_vm0, %v813_v47, 0  ;;  %v710_v54 = vsel %vm57_vm0, %v706_v50, 0 }
  0x19   :  { %221 = vmatpush.bf16.msrb.mxu0 %v1398_v57  ;;  %258 = vmatpush.bf16.msrb.mxu1 %v1402_v58  ;;  %v1428_v57 = vld [vmem:[%s1847_s0 + $0x44] sm:$0xff]  ;;  %v1422_v58 = vld [vmem:[%s1848_s1 + $0x30] sm:$0xff] }
  0x1a   :  { %v747_v55 = vsel %vm57_vm0, %v743_v51, 0 }
  0x1c   :  { %328 = vmatpush.bf16.msrb.mxu2 %v1405_v59  ;;  %359 = vmatpush.bf16.msrb.mxu3 %v1403_v60  ;;  %v1426_v59 = vld [vmem:[%s1848_s1 + $0x58] sm:$0xff]  ;;  %v1350_v60 = vld [vmem:[%s1848_s1 + $0x4c] sm:$0x3] }
  0x1d   :  { %222 = vmatpush.bf16.msrb.mxu0 %v1397_v63  ;;  %259 = vmatpush.bf16.msrb.mxu1 %v1401_v2  ;;  %v1355_v63 = vld [vmem:[%s1848_s1 + $0x60] sm:$0x3]  ;;  %v1421_v2 = vld [vmem:[%s1848_s1 + $0x28] sm:$0xff]  ;;  %v952_v4 = vunpack.c.l.b16 %v1350_v60 }
  0x20   :  { %468 = vmatpush.bf16.msra.mxu2 %v461_v0  ;;  %505 = vmatpush.bf16.msra.mxu3 %v498_v1  ;;  %v1429_v0 = vld [vmem:[%s1847_s0 + $0x50] sm:$0xff]  ;;  %v1427_v1 = vld [vmem:[%s1847_s0 + $0x3c] sm:$0xff] }
  0x21   :  { %394 = vmatpush.bf16.msra.mxu0 %v387_v7  ;;  %437 = vmatpush.bf16.msra.mxu1 %v430_v8  ;;  %v921_v7 = vunpack.c.l.b16 %v1355_v63  ;;  %v955_v8 = vpack.c.b16 %v952_v4, %v952_v4 }
  0x22   :  { %1117 = vmatmul.msk.bf16.vlgmr.msrb.gmra.mxu0 %vm53_vm1, %v1556_v43  ;;  %1131 = vmatmul.msk.bf16.vlgmr.msrb.gmra.mxu1 %vm53_vm1, %v1567_v48 }
  0x23   :  { %1150 = vmatmul.msk.bf16.vlgmr.msrb.gmra.mxu2 %vm53_vm1, %v1549_v40  ;;  %1159 = vmatmul.msk.bf16.vlgmr.msrb.gmra.mxu3 %vm53_vm1, %v1556_v43  ;;  %v924_v11 = vpack.c.b16 %v921_v7, %v921_v7  ;;  %v959_v12 = vsel %vm57_vm0, %v955_v8, 0 }
  0x24   :  { %469 = vmatpush.bf16.msra.mxu2 %v1410_v9  ;;  %506 = vmatpush.bf16.msra.mxu3 %v1414_v10  ;;  %v992_v9 = vpack.c.b16 %v989_v5, %v989_v5  ;;  %v881_v10 = vpack.c.b16 %v878_v6, %v878_v6 }
  0x25   :  { %395 = vmatpush.bf16.msra.mxu0 %v1408_v15  ;;  %438 = vmatpush.bf16.msra.mxu1 %v1412_v16  ;;  %v928_v15 = vsel %vm57_vm0, %v924_v11, 0  ;;  %v1434_v16 = vld [vmem:[%s1848_s1 + $0x44] sm:$0xff] }
  0x26   :  { %v996_v13 = vsel %vm57_vm0, %v992_v9, 0  ;;  %v885_v14 = vsel %vm57_vm0, %v881_v10, 0 }
  0x28   :  { %470 = vmatpush.bf16.msra.mxu2 %v1409_v19  ;;  %507 = vmatpush.bf16.msra.mxu3 %v1413_v20  ;;  %v1436_v19 = vld [vmem:[%s1848_s1 + $0x58] sm:$0xff] }
  0x29   :  { %396 = vmatpush.bf16.msra.mxu0 %v1407_v23  ;;  %439 = vmatpush.bf16.msra.mxu1 %v1411_v24  ;;  %v1433_v20 = vld [vmem:[%s1848_s1 + $0x3c] sm:$0xff]  ;;  %v1435_v23 = vld [vmem:[%s1848_s1 + $0x50] sm:$0xff] }
  0x2c   :  { %643 = vmatpush.bf16.msrb.mxu2 %v636_v25  ;;  %686 = vmatpush.bf16.msrb.mxu3 %v679_v26 }
  0x2d   :  { %575 = vmatpush.bf16.msrb.mxu0 %v568_v27  ;;  %606 = vmatpush.bf16.msrb.mxu1 %v599_v28 }
  0x30   :  { %644 = vmatpush.bf16.msrb.mxu2 %v1420_v29  ;;  %687 = vmatpush.bf16.msrb.mxu3 %v1424_v30 }
  0x31   :  { %576 = vmatpush.bf16.msrb.mxu0 %v1418_v31  ;;  %607 = vmatpush.bf16.msrb.mxu1 %v1416_v34 }
  0x32   :  { %1173 = vmatmul.msk.bf16.vlgmr.msra.gmra.mxu0 %vm53_vm1, %v1567_v48  ;;  %1192 = vmatmul.msk.bf16.vlgmr.msra.gmra.mxu1 %vm53_vm1, %v1549_v40 }
  0x33   :  { %1201 = vmatmul.msk.bf16.vlgmr.msra.gmra.mxu2 %vm53_vm1, %v1556_v43  ;;  %1215 = vmatmul.msk.bf16.vlgmr.msra.gmra.mxu3 %vm53_vm1, %v1567_v48 }
  0x34   :  { %645 = vmatpush.bf16.msrb.mxu2 %v1419_v39  ;;  %688 = vmatpush.bf16.msrb.mxu3 %v1423_v41 }
  0x35   :  { %577 = vmatpush.bf16.msrb.mxu0 %v1417_v45  ;;  %608 = vmatpush.bf16.msrb.mxu1 %v1415_v46 }
  0x38   :  { %824 = vmatpush.bf16.msra.mxu2 %v817_v52  ;;  %855 = vmatpush.bf16.msra.mxu3 %v848_v53 }
  0x39   :  { %717 = vmatpush.bf16.msra.mxu0 %v710_v54  ;;  %754 = vmatpush.bf16.msra.mxu1 %v747_v55 }
  0x3c   :  { %825 = vmatpush.bf16.msra.mxu2 %v1430_v56  ;;  %856 = vmatpush.bf16.msra.mxu3 %v1428_v57 }
  0x3d   :  { %718 = vmatpush.bf16.msra.mxu0 %v1422_v58  ;;  %755 = vmatpush.bf16.msra.mxu1 %v1426_v59 }
  0x40   :  { %826 = vmatpush.bf16.msra.mxu2 %v1429_v0  ;;  %857 = vmatpush.bf16.msra.mxu3 %v1427_v1 }
  0x41   :  { %719 = vmatpush.bf16.msra.mxu0 %v1421_v2  ;;  %756 = vmatpush.bf16.msra.mxu1 %v1425_v3 }
  0x42   :  { %1236 = vmatmul.msk.bf16.vlgmr.msrb.gmra.mxu0 %vm53_vm1, %v1549_v40  ;;  %1245 = vmatmul.msk.bf16.vlgmr.msrb.gmra.mxu1 %vm53_vm1, %v1556_v43 }
  0x43   :  { %1259 = vmatmul.msk.bf16.vlgmr.msrb.gmra.mxu2 %vm53_vm1, %v1567_v48  ;;  %1278 = vmatmul.msk.bf16.vlgmr.msrb.gmra.mxu3 %vm53_vm1, %v1549_v40 }
  0x44   :  { %966 = vmatpush.bf16.msrb.mxu2 %v959_v12  ;;  %1003 = vmatpush.bf16.msrb.mxu3 %v996_v13 }
  0x45   :  { %892 = vmatpush.bf16.msrb.mxu0 %v885_v14  ;;  %935 = vmatpush.bf16.msrb.mxu1 %v928_v15 }
  0x48   :  { %967 = vmatpush.bf16.msrb.mxu2 %v1434_v16  ;;  %1004 = vmatpush.bf16.msrb.mxu3 %v1438_v17 }
  0x49   :  { %893 = vmatpush.bf16.msrb.mxu0 %v1432_v18  ;;  %936 = vmatpush.bf16.msrb.mxu1 %v1436_v19 }
  0x4c   :  { %968 = vmatpush.bf16.msrb.mxu2 %v1433_v20  ;;  %1005 = vmatpush.bf16.msrb.mxu3 %v1437_v21 }
  0x4d   :  { %894 = vmatpush.bf16.msrb.mxu0 %v1431_v22  ;;  %937 = vmatpush.bf16.msrb.mxu1 %v1435_v23 }
  0x52   :  { %1287 = vmatmul.msk.bf16.vlgmr.msra.gmra.mxu0 %vm53_vm1, %v1556_v43  ;;  %1301 = vmatmul.msk.bf16.vlgmr.msra.gmra.mxu1 %vm53_vm1, %v1567_v48 }
  0x53   :  { %1322 = vmatmul.msk.bf16.vlgmr.msra.gmra.mxu2 %vm53_vm1, %v1549_v40  ;;  %1331 = vmatmul.msk.bf16.vlgmr.msra.gmra.mxu3 %vm53_vm1, %v1556_v43 }
  0x62   :  { %1345 = vmatmul.msk.bf16.vlgmr.msrb.gmra.mxu0 %vm53_vm1, %v1567_v48  ;;  %1364 = vmatmul.msk.bf16.vlgmr.msrb.gmra.mxu1 %vm53_vm1, %v1549_v40 }
  0x63   :  { %1373 = vmatmul.msk.bf16.vlgmr.msrb.gmra.mxu2 %vm53_vm1, %v1556_v43  ;;  %1387 = vmatmul.msk.bf16.vlgmr.msrb.gmra.mxu3 %vm53_vm1, %v1567_v48 }
  0x7b   :  { %v1791_v27 = vpop.permute.xlu0 %151 }
  0x8f   :  { %v70_v24 = vpop.f32.mrf.mxu0  ;;  %v104_v25 = vpop.f32.mrf.mxu1 }
  0x90   :  { %v105_v26 = vadd.f32 %v104_v25, %v70_v24 }
  0x96   :  { %v144_v28 = vpop.f32.mrf.mxu2  ;;  %v193_v29 = vpop.f32.mrf.mxu3 }
  0x97   :  { %v148_v30 = vadd.f32 %v144_v28, %v105_v26  ;;  %v72_v31 = vpop.f32.mrf.mxu0  ;;  %v106_v32 = vpop.f32.mrf.mxu1 }
  0x99   :  { %v154_v33 = vadd.f32 %v1791_v27, %v148_v30 }
  0x9b   :  { %268 = vst.msk [vmem:[%s1851_s4] sm:$0xff] %vm267_vm2, %v154_v33  ;;  %v270_v42 = vmul.f32 %v154_v33, %v154_v33 }
  0x9e   :  { %v146_v40 = vpop.f32.mrf.mxu2  ;;  %v195_v43 = vpop.f32.mrf.mxu3 }
  0x9f   :  { %v224_v48 = vpop.f32.mrf.mxu0  ;;  %v261_v34 = vpop.f32.mrf.mxu1 }
  0xa0   :  { %v225_v35 = vadd.f32 %v224_v48, %v193_v29 }
  0xa2   :  { %v265_v36 = vadd.f32 %v261_v34, %v225_v35 }
  0xa4   :  { %v266_v37 = vadd.f32 %v265_v36, %v1791_v27 }
  0xa6   :  { %269 = vst.msk [vmem:[%s1852_s5] sm:$0xff] %vm267_vm2, %v266_v37  ;;  %v271_v38 = vmul.f32 %v266_v37, %v266_v37  ;;  %v330_v39 = vpop.f32.mrf.mxu2  ;;  %v361_v41 = vpop.f32.mrf.mxu3 }
  0xa7   :  { %v226_v44 = vpop.f32.mrf.mxu0  ;;  %v263_v45 = vpop.f32.mrf.mxu1  ;;  %v362_v50 = vadd.f32 %v361_v41, %v330_v39 }
  0xa8   :  { %v272_v46 = vadd.f32 %v271_v38, %v270_v42 }
  0xaa   :  { %v289_v47 = vsel %vm267_vm2, %v272_v46, 0.0  ;;  %v273_v49 = vadd.f32 1e-20, %v272_v46 }
  0xab   :  { %290 = vadd.xlane.f32.xlu1 %v289_v47 }
  0xac   :  { %1441 = vrsqrt.f32 %v273_v49  ;;  %vm280_vm4 = vweird.f32 %v273_v49 }
  0xae   :  { %v332_v51 = vpop.f32.mrf.mxu2  ;;  %v363_v52 = vpop.f32.mrf.mxu3 }
  0xaf   :  { %v398_v53 = vpop.f32.mrf.mxu0  ;;  %v441_v54 = vpop.f32.mrf.mxu1 }
  0xb0   :  { %v402_v55 = vadd.f32 %v398_v53, %v362_v50 }
  0xb2   :  { %v1442_v56 = vpop.eup %1441  ;;  %v403_v57 = vadd.f32 %v402_v55, %v1791_v27 }
  0xb3   :  { %v275_v58 = vmul.f32 %v1442_v56, %v273_v49  ;;  %vm281_vm3 = vweird.f32 %v1442_v56 }
  0xb4   :  { %1216 = vst.msk [vmem:[%s1851_s4 + $0x8] sm:$0xff] %vm267_vm2, %v403_v57  ;;  %vm282_vm5 = vmor %vm280_vm4, %vm281_vm3  ;;  %v519_v6 = vmul.f32 %v403_v57, %v403_v57 }
  0xb5   :  { %v276_v59 = vmul.f32 %v1442_v56, %v275_v58 }
  0xb6   :  { %v472_v60 = vpop.f32.mrf.mxu2  ;;  %v509_v61 = vpop.f32.mrf.mxu3 }
  0xb7   :  { %v473_v62 = vadd.f32 %v472_v60, %v441_v54  ;;  %v400_v63 = vpop.f32.mrf.mxu0  ;;  %v443_v0 = vpop.f32.mrf.mxu1  ;;  %v277_v1 = vmul.f32 0.5, %v276_v59 }
  0xb9   :  { %v513_v2 = vadd.f32 %v509_v61, %v473_v62  ;;  %v278_v3 = vsub.f32 1.5, %v277_v1 }
  0xbb   :  { %v514_v4 = vadd.f32 %v513_v2, %v1791_v27  ;;  %v279_v5 = vmul.f32 %v1442_v56, %v278_v3 }
  0xbd   :  { %1217 = vst.msk [vmem:[%s1852_s5 + $0x8] sm:$0xff] %vm267_vm2, %v514_v4  ;;  %v520_v7 = vmul.f32 %v514_v4, %v514_v4  ;;  %v283_v8 = vsel %vm282_vm5, %v1442_v56, %v279_v5 }
  0xbe   :  { %v474_v9 = vpop.f32.mrf.mxu2  ;;  %v511_v10 = vpop.f32.mrf.mxu3  ;;  %v284_v11 = vmul.f32 %v283_v8, %v272_v46 }
  0xbf   :  { %v579_v12 = vpop.f32.mrf.mxu0  ;;  %v610_v13 = vpop.f32.mrf.mxu1  ;;  %v521_v14 = vadd.f32 %v520_v7, %v519_v6 }
  0xc0   :  { %v285_v15 = vsel %vm267_vm2, %v284_v11, 0.0  ;;  %v611_v18 = vadd.f32 %v610_v13, %v579_v12 }
  0xc1   :  { %v538_v16 = vsel %vm267_vm2, %v521_v14, 0.0  ;;  %v522_v17 = vadd.f32 1e-20, %v521_v14  ;;  %286 = vadd.xlane.f32.xlu0 %v285_v15 }
  0xc2   :  { %539 = vadd.xlane.f32.xlu2 %v538_v16 }
  0xc3   :  { %1443 = vrsqrt.f32 %v522_v17  ;;  %vm529_vm7 = vweird.f32 %v522_v17 }
  0xc6   :  { %v647_v19 = vpop.f32.mrf.mxu2  ;;  %v690_v20 = vpop.f32.mrf.mxu3 }
  0xc7   :  { %v651_v21 = vadd.f32 %v647_v19, %v611_v18  ;;  %v581_v22 = vpop.f32.mrf.mxu0  ;;  %v612_v23 = vpop.f32.mrf.mxu1 }
  0xc9   :  { %v1444_v24 = vpop.eup %1443  ;;  %v652_v25 = vadd.f32 %v651_v21, %v1791_v27 }
  0xca   :  { %v524_v26 = vmul.f32 %v1444_v24, %v522_v17  ;;  %vm530_vm6 = vweird.f32 %v1444_v24 }
  0xcb   :  { %1302 = vst.msk [vmem:[%s1851_s4 + $0x10] sm:$0xff] %vm267_vm2, %v652_v25  ;;  %vm531_vm8 = vmor %vm529_vm7, %vm530_vm6  ;;  %v768_v38 = vmul.f32 %v652_v25, %v652_v25 }
  0xcc   :  { %v525_v28 = vmul.f32 %v1444_v24, %v524_v26 }
  0xce   :  { %v649_v29 = vpop.f32.mrf.mxu2  ;;  %v692_v30 = vpop.f32.mrf.mxu3  ;;  %v526_v31 = vmul.f32 0.5, %v525_v28 }
  0xcf   :  { %v721_v32 = vpop.f32.mrf.mxu0  ;;  %v758_v33 = vpop.f32.mrf.mxu1 }
  0xd0   :  { %v722_v40 = vadd.f32 %v721_v32, %v690_v20  ;;  %v527_v43 = vsub.f32 1.5, %v526_v31 }
  0xd2   :  { %v762_v48 = vadd.f32 %v758_v33, %v722_v40  ;;  %v528_v34 = vmul.f32 %v1444_v24, %v527_v43 }
  0xd4   :  { %v763_v35 = vadd.f32 %v762_v48, %v1791_v27  ;;  %v532_v36 = vsel %vm531_vm8, %v1444_v24, %v528_v34 }
  0xd5   :  { %v533_v37 = vmul.f32 %v532_v36, %v521_v14 }
  0xd6   :  { %1303 = vst.msk [vmem:[%s1852_s5 + $0x10] sm:$0xff] %vm267_vm2, %v763_v35  ;;  %v769_v39 = vmul.f32 %v763_v35, %v763_v35  ;;  %v828_v41 = vpop.f32.mrf.mxu2  ;;  %v859_v42 = vpop.f32.mrf.mxu3 }
  0xd7   :  { %v723_v44 = vpop.f32.mrf.mxu0  ;;  %v760_v45 = vpop.f32.mrf.mxu1  ;;  %v534_v46 = vsel %vm267_vm2, %v533_v37, 0.0  ;;  %v860_v50 = vadd.f32 %v859_v42, %v828_v41 }
  0xd8   :  { %535 = vadd.xlane.f32.xlu1 %v534_v46  ;;  %v770_v47 = vadd.f32 %v769_v39, %v768_v38 }
  0xda   :  { %v771_v49 = vadd.f32 1e-20, %v770_v47  ;;  %v787_v55 = vsel %vm267_vm2, %v770_v47, 0.0 }
  0xdc   :  { %1445 = vrsqrt.f32 %v771_v49  ;;  %vm778_vm10 = vweird.f32 %v771_v49 }
  0xde   :  { %v830_v51 = vpop.f32.mrf.mxu2  ;;  %v861_v52 = vpop.f32.mrf.mxu3 }
  0xdf   :  { %v896_v53 = vpop.f32.mrf.mxu0  ;;  %v939_v54 = vpop.f32.mrf.mxu1 }
  0xe0   :  { %v900_v56 = vadd.f32 %v896_v53, %v860_v50  ;;  %788 = vadd.xlane.f32.xlu1 %v787_v55 }
  0xe2   :  { %v1446_v57 = vpop.eup %1445  ;;  %v901_v58 = vadd.f32 %v900_v56, %v1791_v27 }
  0xe3   :  { %v773_v59 = vmul.f32 %v1446_v57, %v771_v49  ;;  %vm779_vm9 = vweird.f32 %v1446_v57 }
  0xe4   :  { %1388 = vst.msk [vmem:[%s1851_s4 + $0x18] sm:$0xff] %vm267_vm2, %v901_v58  ;;  %vm780_vm11 = vmor %vm778_vm10, %vm779_vm9  ;;  %v1017_v7 = vmul.f32 %v901_v58, %v901_v58 }
  0xe5   :  { %v774_v60 = vmul.f32 %v1446_v57, %v773_v59 }
  0xe6   :  { %v970_v61 = vpop.f32.mrf.mxu2  ;;  %v1007_v62 = vpop.f32.mrf.mxu3 }
  0xe7   :  { %v971_v63 = vadd.f32 %v970_v61, %v939_v54  ;;  %v898_v0 = vpop.f32.mrf.mxu0  ;;  %v941_v1 = vpop.f32.mrf.mxu1  ;;  %v775_v2 = vmul.f32 0.5, %v774_v60 }
  0xe9   :  { %v1011_v3 = vadd.f32 %v1007_v62, %v971_v63  ;;  %v776_v4 = vsub.f32 1.5, %v775_v2 }
  0xeb   :  { %v1012_v5 = vadd.f32 %v1011_v3, %v1791_v27  ;;  %v777_v6 = vmul.f32 %v1446_v57, %v776_v4 }
  0xed   :  { %1389 = vst.msk [vmem:[%s1852_s5 + $0x18] sm:$0xff] %vm267_vm2, %v1012_v5  ;;  %v1018_v8 = vmul.f32 %v1012_v5, %v1012_v5  ;;  %v781_v9 = vsel %vm780_vm11, %v1446_v57, %v777_v6 }
  0xee   :  { %v972_v10 = vpop.f32.mrf.mxu2  ;;  %v1009_v11 = vpop.f32.mrf.mxu3  ;;  %v782_v12 = vmul.f32 %v781_v9, %v770_v47 }
  0xef   :  { %v1019_v13 = vadd.f32 %v1018_v8, %v1017_v7 }
  0xf0   :  { %v783_v14 = vsel %vm267_vm2, %v782_v12, 0.0 }
  0xf1   :  { %784 = vadd.xlane.f32.xlu2 %v783_v14  ;;  %v1020_v15 = vadd.f32 1e-20, %v1019_v13  ;;  %v1036_v27 = vsel %vm267_vm2, %v1019_v13, 0.0 }
  0xf2   :  { %1037 = vadd.xlane.f32.xlu1 %v1036_v27 }
  0xf3   :  { %1447 = vrsqrt.f32 %v1020_v15  ;;  %vm1027_vm13 = vweird.f32 %v1020_v15 }
  0xf9   :  { %v1448_v16 = vpop.eup %1447 }
  0xfa   :  { %v1022_v17 = vmul.f32 %v1448_v16, %v1020_v15  ;;  %vm1028_vm12 = vweird.f32 %v1448_v16 }
  0xfb   :  { %vm1029_vm14 = vmor %vm1027_vm13, %vm1028_vm12 }
  0xfc   :  { %v1023_v18 = vmul.f32 %v1448_v16, %v1022_v17 }
  0xfe   :  { %v1024_v19 = vmul.f32 0.5, %v1023_v18 }
 0x100   :  { %v1025_v20 = vsub.f32 1.5, %v1024_v19 }
 0x102   :  { %v1026_v21 = vmul.f32 %v1448_v16, %v1025_v20 }
 0x104   :  { %v1030_v22 = vsel %vm1029_vm14, %v1448_v16, %v1026_v21 }
 0x105   :  { %v1031_v23 = vmul.f32 %v1030_v22, %v1019_v13 }
 0x107   :  { %v1032_v24 = vsel %vm267_vm2, %v1031_v23, 0.0 }
 0x108   :  { %1033 = vadd.xlane.f32.xlu2 %v1032_v24 }
 0x11e   :  { %v291_v25 = vpop.xlane.xlu1 %290 }
 0x134   :  { %v287_v43 = vpop.xlane.xlu0 %286 }
 0x135   :  { %v540_v29 = vpop.xlane.xlu2 %539 }
 0x136   :  { %v541_v30 = vadd.f32 %v540_v29, %v291_v25 }
 0x14b   :  { %v536_v26 = vpop.xlane.xlu1 %535 }
 0x14c   :  { %v537_v48 = vadd.f32 %v536_v26, %v287_v43 }
 0x153   :  { %v789_v28 = vpop.xlane.xlu1 %788 }
 0x154   :  { %v790_v31 = vadd.f32 %v789_v28, %v541_v30 }
 0x164   :  { %v785_v40 = vpop.xlane.xlu2 %784 }
 0x165   :  { %v1038_v32 = vpop.xlane.xlu1 %1037  ;;  %v786_v34 = vadd.f32 %v785_v40, %v537_v48 }
 0x166   :  { %v1039_v33 = vadd.f32 %v1038_v32, %v790_v31 }
 0x168   :  { %1390 = vst.msk [vmem:[%s1853_s6 + $0x8] sm:$0xff] %vm1040_vm15, %v1039_v33 }
 0x17b   :  { %v1034_v35 = vpop.xlane.xlu2 %1033 }
 0x17c   :  { %v1035_v36 = vadd.f32 %v1034_v35, %v786_v34 }
 0x17e   :  { %1041 = vst.msk [vmem:[%s1853_s6] sm:$0xff] %vm1040_vm15, %v1035_v36 }

// kernel: fc_forward.12
= control target key start
LH: loop header
LB: loop body
LE: loop exit
PB: predicated region body
PF: predicated region fallthrough
CT: control target
= control target key end

     0   :  { %s562_s18 = smov 0   ;;  %s564_s19 = smov 0   ;;  %s611_s0 = inlined_call_operand.vmem [shape: f32[4,8,8], index: 0, kind: input, shape index: {}]   ;;  %s612_s1 = inlined_call_operand.vmem [shape: f32[4,8,8], index: 1, kind: input, shape index: {}]   ;;  %s613_s2 = inlined_call_operand.vmem [shape: f32[8,1], index: 2, kind: input, shape index: {}]   ;;  %s614_s3 = inlined_call_operand.vmem [shape: f32[8,1], index: 3, kind: input, shape index: {}]   ;;  %s615_s4 = inlined_call_operand.vmem [shape: bf16[4,8,8], index: 4, kind: output, shape index: {0}]   ;;  %s616_s5 = inlined_call_operand.vmem [shape: bf16[4,8,8], index: 5, kind: output, shape index: {1}]  }
   0x1   :  { %s566_s20 = smov 0  }
   0x2 LB: > { %s28_s21 = sadd.s32 1, %s525_s19  ;;  %p472_p0 = scmp.ge.s32.totalorder %s529_s20, 1  ;;  %s529_s20 = sphi %s566_s20, %s16_s20   ;;  %s525_s19 = sphi %s564_s19, %s618_s19   ;;  %s521_s18 = sphi %s562_s18, %s617_s18  }
   0x3   : > { %p30_p1 = scmp.ge.s32.totalorder %s28_s21, 4  ;;  %p224_p2 = scmp.lt.s32.totalorder %s529_s20, 5 }
   0x5   : > { %s620_s21 = smov (%p30_p1, %s28_s21), 0  ;;  %p225_p3 = pnand %p472_p0, %p224_p2 }
   0x6   : > { %p270_p4 = scmp.lt.s32.totalorder (!%p225_p3), %s521_s18, 3 }
   0x7   : > { %228 = sbr.rel (%p225_p3) target bundleno = 149 (0x95), region = 36 }
   0xc   : > { %v315_v0 = vld [vmem:[%s613_s2] sm:$0xff]  ;;  %v531_v1 = vmov 0   ;;  %s622_s18 = smov (!%p270_p4, %s521_s18), 3  ;;  %vm333_vm3 = vcmask 60416  }
   0xd   : > { %504 = vset.pattern.permute.xlu0 %v531_v1  ;;  %v322_v2 = vld [vmem:[%s614_s3] sm:$0xff]  ;;  %s473_s26 = sshll.u32 %s622_s18, 3  ;;  %s475_s8 = sshll.u32 %s622_s18, 2 }
   0xe   : > { %318 = vperm.xlu0 %504, %v315_v0   ;;  %s276_s29 = scalar_lea.vmem %s611_s0, %s473_s26  ;;  %s283_s7 = scalar_lea.vmem %s612_s1, %s473_s26 }
   0xf   : > { %v298_v3 = vld [vmem:[%s276_s29] sm:$0xff]  ;;  %s290_s11 = scalar_lea.vmem %s615_s4, %s475_s8  ;;  %s297_s14 = scalar_lea.vmem %s616_s5, %s475_s8 }
  0x10   : > { %v299_v4 = vld [vmem:[%s283_s7] sm:$0xff]  ;;  %v300_v5 = vmul.f32 %v298_v3, %v298_v3 }
  0x11   : > { %v301_v6 = vmul.f32 %v299_v4, %v299_v4 }
  0x13   : > { %v302_v7 = vadd.f32 %v301_v6, %v300_v5 }
  0x15   : > { %v303_v8 = vadd.f32 1e-20, %v302_v7 }
  0x16   : > { %325 = vperm.xlu0 %504, %v322_v2  }
  0x17   : > { %505 = vrsqrt.f32 %v303_v8  ;;  %vm310_vm0 = vweird.f32 %v303_v8 }
  0x1d   : > { %v506_v9 = vpop.eup %505 }
  0x1e   : > { %v305_v10 = vmul.f32 %v506_v9, %v303_v8  ;;  %vm311_vm1 = vweird.f32 %v506_v9 }
  0x1f   : > { %vm312_vm2 = vmor %vm310_vm0, %vm311_vm1 }
  0x20   : > { %v306_v11 = vmul.f32 %v506_v9, %v305_v10 }
  0x22   : > { %v307_v12 = vmul.f32 0.5, %v306_v11 }
  0x24   : > { %v308_v13 = vsub.f32 1.5, %v307_v12 }
  0x26   : > { %v309_v14 = vmul.f32 %v506_v9, %v308_v13 }
  0x28   : > { %v313_v16 = vsel %vm312_vm2, %v506_v9, %v309_v14 }
  0x29   : > { %v314_v17 = vmul.f32 %v313_v16, %v302_v7 }
  0x80   : > { %v319_v15 = vpop.permute.xlu0 %318 }
  0x81   : > { %v321_v18 = vmul.f32 %v319_v15, %v314_v17 }
  0x88   : > { %v326_v19 = vpop.permute.xlu0 %325 }
  0x89   : > { %v328_v20 = vadd.f32 %v326_v19, %v321_v18 }
  0x8b   : > { %v329_v21 = vmax.f32 %v328_v20, 0.0 }
  0x8d   : > { %v330_v22 = vmul.f32 %v329_v21, %v313_v16 }
  0x8f   : > { %v331_v23 = vmul.f32 %v330_v22, %v298_v3  ;;  %v335_v24 = vmul.f32 %v330_v22, %v299_v4 }
  0x91   : > { %v332_v25 = vpack.c.bf16 %v331_v23, %v331_v23  ;;  %v336_v26 = vpack.c.bf16 %v335_v24, %v335_v24 }
  0x93   : > { %334 = vst.msk [vmem:[%s290_s11] sm:$0xf] %vm333_vm3, %v332_v25 }
  0x94   : > { %337 = vst.msk [vmem:[%s297_s14] sm:$0xf] %vm333_vm3, %v336_v26 }
  0x95 PF: > { %s16_s20 = sadd.s32 1, %s529_s20   ;;  %s617_s18 = smov %s525_s19 }
  0x96   : > { %p13_p5 = scmp.ge.s32.totalorder %s16_s20, 6   ;;  %s618_s19 = smov %s620_s21 }
  0x98   :  { %15 = sbr.rel (!%p13_p5) target bundleno = 2 (0x2), region = 81 }

// kernel: fc_forward.13
= control target key start
LH: loop header
LB: loop body
LE: loop exit
PB: predicated region body
PF: predicated region fallthrough
CT: control target
= control target key end

     0   :  { %s245_s0 = inlined_call_operand.vmem [shape: bf16[2,128], index: 0, kind: input, shape index: {}]   ;;  %s246_s1 = inlined_call_operand.vmem [shape: bf16[2,128], index: 1, kind: input, shape index: {}]   ;;  %s247_s2 = inlined_call_operand.vmem [shape: f32[1,128], index: 2, kind: input, shape index: {}]   ;;  %s248_s3 = inlined_call_operand.<no memory space> [shape: f32[1,1], index: 3, kind: input, shape index: {}]   ;;  %s249_s4 = inlined_call_operand.vmem [shape: f32[2,1], index: 4, kind: output, shape index: {0}]   ;;  %s250_s5 = inlined_call_operand.hbm [shape: f32[2,1], index: 5, kind: output, shape index: {1}]   ;;  %s251_s6 = inlined_call_operand.hbm [shape: f32[2,1], index: 6, kind: output, shape index: {2}]  }
   0x1   :  { %v12_v0 = vstv %s248_s3 }
   0x2   :  { %13 = vst [vmem:[#allocation4] sm:$0x1] %v12_v0 }
   0x3   :  { %14 = vsyncpa [#allocation6], 0  ;;  %v32_v1 = vld [vmem:[%s245_s0] sm:$0x1]  ;;  %vm41_vm0 = vcmask 1041408  }
   0x4   :  { %v123_v2 = vld [vmem:[%s247_s2] ss:$0 sm:$0xff]  ;;  %v33_v3 = vunpack.c.l.bf16 %v32_v1 }
   0x5   :  { %v34_v4 = vld [vmem:[%s246_s1] sm:$0x1] }
   0x6   :  { %15 = vsyncpa [#allocation8], 0  ;;  %v40_v5 = vmul.f32 %v123_v2, %v33_v3  ;;  %v35_v6 = vunpack.c.l.bf16 %v34_v4  ;;  %vm28_vm1 = vcmask 1024   ;;  %v179_v10 = vmov 0.0   ;;  %s180_s0 = smov [#allocation5]   ;;  %s93_s29 = sshll.u32 %s250_s5, 4  ;;  %s94_s29 = int_to_ptr.hbm [resolvable:$true] %s93_s29 }
   0x7   :  { %29 = vst.msk [vmem:[#allocation2] sm:$0x3] %vm28_vm1, %v179_v10  ;;  %s91_s1 = sshll.u32 %s180_s0, 4  ;;  %s181_s30 = smov [#allocation7]   ;;  %s92_s1 = int_to_ptr.vmem [resolvable:$true] %s91_s1 }
   0x8   :  { %v42_v7 = vsel %vm41_vm0, %v40_v5, 0.0  ;;  %v49_v8 = vmul.f32 %v123_v2, %v35_v6  ;;  %30 = vst.msk [vmem:[#allocation3] sm:$0x3] %vm28_vm1, %v179_v10  ;;  %s102_s7 = sshll.u32 %s181_s30, 4  ;;  %s104_s10 = sshll.u32 %s251_s6, 4  ;;  %s103_s7 = int_to_ptr.vmem [resolvable:$true] %s102_s7  ;;  %s105_s10 = int_to_ptr.hbm [resolvable:$true] %s104_s10 }
   0x9   :  { %43 = vadd.xlane.f32.xlu0 %v42_v7  ;;  %v124_v15 = vld [vmem:[#allocation4] ss:$0 sm:$0xff] }
   0xa   :  { %v50_v9 = vsel %vm41_vm0, %v49_v8, 0.0 }
   0xe   :  { %v36_v11 = vld [vmem:[#allocation2] sm:$0x3] }
   0xf   :  { %v48_v14 = vld [vmem:[#allocation3] sm:$0x3] }
  0x11   :  { %51 = vadd.xlane.f32.xlu0 %v50_v9 }
  0x7c   :  { %v44_v12 = vpop.xlane.xlu0 %43 }
  0x7d   :  { %v45_v13 = vadd.f32 %v44_v12, %v36_v11 }
  0x7f   :  { %47 = vst.msk [vmem:[#allocation2] sm:$0x3] %vm28_vm1, %v45_v13 }
  0x84   :  { %v52_v16 = vpop.xlane.xlu0 %51 }
  0x85   :  { %v53_v17 = vadd.f32 %v52_v16, %v48_v14 }
  0x86   :  { %v58_v18 = vld [vmem:[#allocation2] sm:$0x3] }
  0x87   :  { %54 = vst.msk [vmem:[#allocation3] sm:$0x3] %vm28_vm1, %v53_v17  ;;  %v63_v19 = vadd.f32 %v124_v15, %v58_v18 }
  0x89   :  { %66 = vst.msk [vmem:[#allocation5] sm:$0x3] %vm28_vm1, %v63_v19  ;;  %v68_v22 = vmul.f32 %v63_v19, %v63_v19 }
  0x8a   :  { %96 = dma.vmem_to_hbm [thread:$0]  %s92_s1, 32, %s94_s29, [#allocation6]  }
  0x8e   :  { %v64_v20 = vld [vmem:[#allocation3] sm:$0x3] }
  0x8f   :  { %v65_v21 = vadd.f32 %v124_v15, %v64_v20 }
  0x91   :  { %67 = vst.msk [vmem:[#allocation7] sm:$0x3] %vm28_vm1, %v65_v21  ;;  %v69_v23 = vmul.f32 %v65_v21, %v65_v21 }
  0x92   :  { %107 = dma.vmem_to_hbm [thread:$0]  %s103_s7, 32, %s105_s10, [#allocation8]  }
  0x93   :  { %v70_v24 = vadd.f32 %v69_v23, %v68_v22 }
  0x95   :  { %125 = vrsqrt.f32 %v70_v24  ;;  %vm78_vm2 = vcmp.eq.f32.partialorder %v70_v24, inf  ;;  %v81_v32 = vand.u32 2147483648, %v70_v24  ;;  %vm80_vm3 = vcmp.eq.f32.partialorder %v70_v24, 0.0 }
  0x9b   :  { %v126_v25 = vpop.eup %125 }
  0x9c   :  { %v72_v26 = vmul.f32 %v126_v25, %v70_v24 }
  0x9e   :  { %v73_v27 = vmul.f32 %v126_v25, %v72_v26 }
  0xa0   :  { %v74_v28 = vmul.f32 0.5, %v73_v27 }
  0xa2   :  { %v75_v29 = vsub.f32 1.5, %v74_v28 }
  0xa4   :  { %v76_v30 = vmul.f32 %v126_v25, %v75_v29 }
  0xa6   :  { %v77_v31 = vmul.f32 %v76_v30, %v70_v24 }
  0xa8   :  { %v79_v33 = vsel %vm78_vm2, %v70_v24, %v77_v31 }
  0xa9   :  { %v82_v34 = vsel %vm80_vm3, %v81_v32, %v79_v33 }
  0xaa   :  { %83 = vst.msk [vmem:[%s249_s4] sm:$0x3] %vm28_vm1, %v82_v34 }
  0xab   :  { %175 = dma.done.wait [#allocation6], 32  }
  0xac   :  { %176 = vsyncadd [#allocation6], 4294967264 }
  0xad   :  { %177 = dma.done.wait [#allocation8], 32  }
  0xae   :  { %178 = vsyncadd [#allocation8], 4294967264 }
  0xaf   :  { %118 = vsyncpa [#allocation6], 1 }
  0xb0   :  { %119 = vsyncpa [#allocation8], 1 }

// kernel: fc_forward.11
= control target key start
LH: loop header
LB: loop body
LE: loop exit
PB: predicated region body
PF: predicated region fallthrough
CT: control target
= control target key end

     0   :  { %vm77_vm0 = vcmask 1043456   ;;  %v2161_v36 = vmov 0   ;;  %vm73_vm1 = vcmask 588800   ;;  %vm363_vm2 = vcmask 64512   ;;  %s2703_s0 = inlined_call_operand.vmem [shape: bf16[6,72,8], index: 0, kind: input, shape index: {}]   ;;  %s2704_s1 = inlined_call_operand.vmem [shape: bf16[6,72,8], index: 1, kind: input, shape index: {}]   ;;  %s2705_s3 = inlined_call_operand.vmem [shape: f32[8,1], index: 3, kind: input, shape index: {}]   ;;  %s2706_s2 = inlined_call_operand.vmem [shape: bf16[3,8,72], index: 2, kind: input, shape index: {}]   ;;  %s2707_s4 = inlined_call_operand.vmem [shape: f32[4,8,8], index: 4, kind: output, shape index: {0}]   ;;  %s2708_s5 = inlined_call_operand.vmem [shape: f32[4,8,8], index: 5, kind: output, shape index: {1}]   ;;  %s2709_s6 = inlined_call_operand.vmem [shape: f32[1,2,8,1], index: 6, kind: output, shape index: {2}]  }
   0x1   :  { %v1450_v0 = vld [vmem:[%s2703_s0 + $0x44] sm:$0xf]  ;;  %v35_v1 = vld [vmem:[%s2703_s0 + $0x20] sm:$0xf]  ;;  %v1493_v2 = vld [vmem:[%s2703_s0 + $0x68] sm:$0xf]  ;;  %2152 = vset.pattern.permute.xlu0 %v2161_v36 }
   0x2   :  { %v63_v3 = vunpack.c.l.b16 %v1450_v0  ;;  %v111_v4 = vunpack.c.l.b16 %v35_v1  ;;  %v167_v5 = vunpack.c.l.b16 %v1493_v2  ;;  %v1519_v6 = vld [vmem:[%s2704_s1 + $0x44] sm:$0xf]  ;;  %v2062_v16 = vld [vmem:[%s2703_s0 + $0x3c] sm:$0xff]  ;;  %v2061_v20 = vld [vmem:[%s2703_s0 + $0x34] sm:$0xff]  ;;  %vm1424_vm15 = vcmask 7168  }
   0x3   :  { %v239_v7 = vunpack.c.l.b16 %v1519_v6  ;;  %v2058_v17 = vld [vmem:[%s2703_s0 + $0x18] sm:$0xff]  ;;  %v2066_v18 = vld [vmem:[%s2703_s0 + $0x60] sm:$0xff]  ;;  %v2057_v21 = vld [vmem:[%s2703_s0 + $0x10] sm:$0xff] }
   0x4   :  { %v68_v8 = vpack.c.b16 %v63_v3, %v63_v3  ;;  %v116_v9 = vpack.c.b16 %v111_v4, %v111_v4  ;;  %v172_v10 = vpack.c.b16 %v167_v5, %v167_v5  ;;  %v2074_v19 = vld [vmem:[%s2704_s1 + $0x3c] sm:$0xff]  ;;  %v1562_v24 = vld [vmem:[%s2704_s1 + $0x68] sm:$0xf]  ;;  %v2073_v25 = vld [vmem:[%s2704_s1 + $0x34] sm:$0xff] }
   0x5   :  { %v244_v11 = vpack.c.b16 %v239_v7, %v239_v7  ;;  %v2065_v22 = vld [vmem:[%s2703_s0 + $0x58] sm:$0xff]  ;;  %v211_v23 = vld [vmem:[%s2704_s1 + $0x20] sm:$0xf]  ;;  %v1597_v26 = vld [vmem:[%s2703_s0 + $0x68] sm:$0xf]  ;;  %v335_v29 = vunpack.c.l.b16 %v1562_v24 }
   0x6   :  { %v79_v12 = vsel %vm77_vm0, %v68_v8, 0  ;;  %v125_v13 = vsel %vm77_vm0, %v116_v9, 0  ;;  %v181_v14 = vsel %vm77_vm0, %v172_v10, 0  ;;  %v1588_v27 = vld [vmem:[%s2703_s0 + $0x44] sm:$0xf]  ;;  %v282_v28 = vunpack.c.l.b16 %v211_v23  ;;  %v2060_v30 = vld [vmem:[%s2703_s0 + $0x2c] sm:$0xff] }
   0x7   :  { %84 = vmatpush.bf16.msra.mxu0 %v79_v12  ;;  %130 = vmatpush.bf16.msra.mxu1 %v125_v13  ;;  %v250_v15 = vsel %vm77_vm0, %v244_v11, 0  ;;  %v2056_v31 = vld [vmem:[%s2703_s0 + $0x8] sm:$0xff]  ;;  %v424_v32 = vunpack.c.l.b16 %v1597_v26  ;;  %v467_v33 = vunpack.c.l.b16 %v1588_v27  ;;  %v2064_v34 = vld [vmem:[%s2703_s0 + $0x50] sm:$0xff]  ;;  %v340_v38 = vpack.c.b16 %v335_v29, %v335_v29  ;;  %v2055_v40 = vld [vmem:[%s2703_s0] sm:$0xff] }
   0x8   :  { %186 = vmatpush.bf16.msra.mxu2 %v181_v14  ;;  %255 = vmatpush.bf16.msra.mxu3 %v250_v15  ;;  %v2072_v35 = vld [vmem:[%s2704_s1 + $0x2c] sm:$0xff]  ;;  %v287_v37 = vpack.c.b16 %v282_v28, %v282_v28  ;;  %v2059_v39 = vld [vmem:[%s2703_s0 + $0x24] sm:$0xff]  ;;  %v2070_v52 = vld [vmem:[%s2704_s1 + $0x18] sm:$0xff] }
   0x9   :  { %v429_v41 = vpack.c.b16 %v424_v32, %v424_v32  ;;  %v472_v42 = vpack.c.b16 %v467_v33, %v467_v33  ;;  %v2063_v43 = vld [vmem:[%s2703_s0 + $0x48] sm:$0xff]  ;;  %v21_v45 = vld [vmem:[%s2705_s3] sm:$0xff]  ;;  %v346_v47 = vsel %vm77_vm0, %v340_v38, 0  ;;  %v2069_v57 = vld [vmem:[%s2704_s1 + $0x10] sm:$0xff] }
   0xa   :  { %v2071_v44 = vld [vmem:[%s2704_s1 + $0x24] sm:$0xff]  ;;  %199 = vperm.xlu0 %2152, %v21_v45   ;;  %v293_v46 = vsel %vm77_vm0, %v287_v37, 0  ;;  %v2299_v54 = vld [vmem:[%s2706_s2] sm:$0xf]  ;;  %v2077_v58 = vld [vmem:[%s2704_s1 + $0x58] sm:$0xff] }
   0xb   :  { %85 = vmatpush.bf16.msra.mxu0 %v2062_v16  ;;  %131 = vmatpush.bf16.msra.mxu1 %v2058_v17  ;;  %v435_v48 = vsel %vm77_vm0, %v429_v41, 0  ;;  %v478_v49 = vsel %vm77_vm0, %v472_v42, 0  ;;  %v2283_v50 = vld [vmem:[%s2706_s2 + $0x8] sm:$0xf]  ;;  %v2288_v51 = vld [vmem:[%s2706_s2 + $0x4] sm:$0xf] }
   0xc   :  { %187 = vmatpush.bf16.msra.mxu2 %v2066_v18  ;;  %256 = vmatpush.bf16.msra.mxu3 %v2074_v19  ;;  %v2078_v53 = vld [vmem:[%s2704_s1 + $0x60] sm:$0xff]  ;;  %v2085_v59 = vld [vmem:[%s2703_s0 + $0x58] sm:$0xff]  ;;  %v1640_v60 = vld [vmem:[%s2703_s0 + $0x8c] sm:$0xf] }
   0xd   :  { %v2086_v55 = vld [vmem:[%s2703_s0 + $0x60] sm:$0xff]  ;;  %v1675_v61 = vld [vmem:[%s2704_s1 + $0x68] sm:$0xf]  ;;  %v2081_v62 = vld [vmem:[%s2703_s0 + $0x34] sm:$0xff]  ;;  %v520_v1 = vunpack.c.l.b16 %v1640_v60 }
   0xe   :  { %v2082_v56 = vld [vmem:[%s2703_s0 + $0x3c] sm:$0xff]  ;;  %v1666_v63 = vld [vmem:[%s2704_s1 + $0x44] sm:$0xf]  ;;  %v1718_v0 = vld [vmem:[%s2704_s1 + $0x8c] sm:$0xf]  ;;  %v583_v2 = vunpack.c.l.b16 %v1675_v61 }
   0xf   :  { %86 = vmatpush.bf16.msra.mxu0 %v2061_v20  ;;  %132 = vmatpush.bf16.msra.mxu1 %v2057_v21  ;;  %v2068_v3 = vld [vmem:[%s2704_s1 + $0x8] sm:$0xff]  ;;  %v2076_v4 = vld [vmem:[%s2704_s1 + $0x50] sm:$0xff]  ;;  %v626_v5 = vunpack.c.l.b16 %v1666_v63  ;;  %v679_v6 = vunpack.c.l.b16 %v1718_v0  ;;  %v525_v9 = vpack.c.b16 %v520_v1, %v520_v1  ;;  %v2067_v11 = vld [vmem:[%s2704_s1] sm:$0xff] }
  0x10   :  { %188 = vmatpush.bf16.msra.mxu2 %v2065_v22  ;;  %257 = vmatpush.bf16.msra.mxu3 %v2073_v25  ;;  %v2084_v7 = vld [vmem:[%s2703_s0 + $0x50] sm:$0xff]  ;;  %v588_v10 = vpack.c.b16 %v583_v2, %v583_v2  ;;  %v2075_v12 = vld [vmem:[%s2704_s1 + $0x48] sm:$0xff]  ;;  %v2098_v22 = vld [vmem:[%s2704_s1 + $0x60] sm:$0xff] }
  0x11   :  { %v2080_v8 = vld [vmem:[%s2703_s0 + $0x2c] sm:$0xff]  ;;  %v631_v13 = vpack.c.b16 %v626_v5, %v626_v5  ;;  %v684_v14 = vpack.c.b16 %v679_v6, %v679_v6  ;;  %v2079_v16 = vld [vmem:[%s2703_s0 + $0x24] sm:$0xff]  ;;  %v531_v17 = vsel %vm77_vm0, %v525_v9, 0  ;;  %v2094_v23 = vld [vmem:[%s2704_s1 + $0x3c] sm:$0xff] }
  0x12   :  { %v2083_v15 = vld [vmem:[%s2703_s0 + $0x48] sm:$0xff]  ;;  %v594_v18 = vsel %vm77_vm0, %v588_v10, 0  ;;  %v2089_v25 = vld [vmem:[%s2703_s0 + $0x7c] sm:$0xff]  ;;  %v2093_v27 = vld [vmem:[%s2704_s1 + $0x34] sm:$0xff] }
  0x13   :  { %87 = vmatpush.bf16.msra.mxu0 %v2060_v30  ;;  %133 = vmatpush.bf16.msra.mxu1 %v2056_v31  ;;  %v637_v19 = vsel %vm77_vm0, %v631_v13, 0  ;;  %v690_v20 = vsel %vm77_vm0, %v684_v14, 0  ;;  %v2090_v21 = vld [vmem:[%s2703_s0 + $0x84] sm:$0xff]  ;;  %v2097_v26 = vld [vmem:[%s2704_s1 + $0x58] sm:$0xff]  ;;  %v1755_v28 = vld [vmem:[%s2703_s0 + $0x8c] sm:$0xf] }
  0x14   :  { %189 = vmatpush.bf16.msra.mxu2 %v2064_v34  ;;  %258 = vmatpush.bf16.msra.mxu3 %v2072_v35  ;;  %v2102_v24 = vld [vmem:[%s2704_s1 + $0x84] sm:$0xff]  ;;  %v2101_v30 = vld [vmem:[%s2704_s1 + $0x7c] sm:$0xff]  ;;  %v1798_v31 = vld [vmem:[%s2703_s0 + $0xb0] sm:$0xf]  ;;  %v769_v33 = vunpack.c.l.b16 %v1755_v28 }
  0x15   :  { %v1746_v29 = vld [vmem:[%s2703_s0 + $0x68] sm:$0xf]  ;;  %v1833_v32 = vld [vmem:[%s2704_s1 + $0x8c] sm:$0xf]  ;;  %v2088_v35 = vld [vmem:[%s2703_s0 + $0x74] sm:$0xff]  ;;  %v865_v37 = vunpack.c.l.b16 %v1798_v31 }
  0x16   :  { %v812_v34 = vunpack.c.l.b16 %v1746_v29  ;;  %v2096_v36 = vld [vmem:[%s2704_s1 + $0x50] sm:$0xff]  ;;  %v928_v38 = vunpack.c.l.b16 %v1833_v32  ;;  %v774_v41 = vpack.c.b16 %v769_v33, %v769_v33  ;;  %v2109_v60 = vld [vmem:[%s2703_s0 + $0x7c] sm:$0xff]  ;;  %v1824_v63 = vld [vmem:[%s2704_s1 + $0x68] sm:$0xf] }
  0x17   :  { %88 = vmatpush.bf16.msra.mxu0 %v2059_v39  ;;  %134 = vmatpush.bf16.msra.mxu1 %v2055_v40  ;;  %v2092_v39 = vld [vmem:[%s2704_s1 + $0x2c] sm:$0xff]  ;;  %v2100_v40 = vld [vmem:[%s2704_s1 + $0x74] sm:$0xff]  ;;  %v870_v45 = vpack.c.b16 %v865_v37, %v865_v37  ;;  %v2121_v1 = vld [vmem:[%s2704_s1 + $0x7c] sm:$0xff] }
  0x18   :  { %190 = vmatpush.bf16.msra.mxu2 %v2063_v43  ;;  %259 = vmatpush.bf16.msra.mxu3 %v2071_v44  ;;  %v817_v42 = vpack.c.b16 %v812_v34, %v812_v34  ;;  %v2087_v43 = vld [vmem:[%s2703_s0 + $0x6c] sm:$0xff]  ;;  %v2105_v61 = vld [vmem:[%s2703_s0 + $0x58] sm:$0xff]  ;;  %v2125_v29 = vld [vmem:[%s2704_s1 + $0xa0] sm:$0xff] }
  0x19   :  { %v2095_v44 = vld [vmem:[%s2704_s1 + $0x48] sm:$0xff]  ;;  %v1876_v0 = vld [vmem:[%s2704_s1 + $0xb0] sm:$0xf]  ;;  %v2108_v6 = vld [vmem:[%s2703_s0 + $0x74] sm:$0xff] }
  0x1a   :  { %1467 = vmatmul.msk.bf16.vlgmr.msra.gmra.mxu0 %vm73_vm1, %v2288_v51  ;;  %1484 = vmatmul.msk.bf16.vlgmr.msra.gmra.mxu1 %vm73_vm1, %v2299_v54  ;;  %v1913_v2 = vld [vmem:[%s2703_s0 + $0xb0] sm:$0xf]  ;;  %v1024_v5 = vunpack.c.l.b16 %v1876_v0  ;;  %v2112_v10 = vld [vmem:[%s2703_s0 + $0x98] sm:$0xff]  ;;  %v1956_v31 = vld [vmem:[%s2703_s0 + $0xd4] sm:$0xf] }
  0x1b   :  { %298 = vmatpush.bf16.msrb.mxu0 %v293_v46  ;;  %351 = vmatpush.bf16.msrb.mxu1 %v346_v47  ;;  %v933_v46 = vpack.c.b16 %v928_v38, %v928_v38  ;;  %v2091_v47 = vld [vmem:[%s2704_s1 + $0x24] sm:$0xff]  ;;  %v2107_v14 = vld [vmem:[%s2703_s0 + $0x6c] sm:$0xff]  ;;  %v2117_v28 = vld [vmem:[%s2704_s1 + $0x58] sm:$0xff] }
  0x1c   :  { %440 = vmatpush.bf16.msrb.mxu2 %v435_v48  ;;  %483 = vmatpush.bf16.msrb.mxu3 %v478_v49  ;;  %v2099_v48 = vld [vmem:[%s2704_s1 + $0x6c] sm:$0xff]  ;;  %v780_v49 = vsel %vm77_vm0, %v774_v41, 0  ;;  %v1029_v13 = vpack.c.b16 %v1024_v5, %v1024_v5  ;;  %v2129_v33 = vld [vmem:[%s2703_s0 + $0x7c] sm:$0xff]  ;;  %v2140_v5 = vld [vmem:[%s2704_s1 + $0x74] sm:$0xff] }
  0x1d   :  { %1510 = vmatmul.msk.bf16.vlgmr.msra.gmra.mxu2 %vm73_vm1, %v2283_v50  ;;  %1536 = vmatmul.msk.bf16.vlgmr.msra.gmra.mxu3 %vm73_vm1, %v2288_v51  ;;  %v1991_v32 = vld [vmem:[%s2704_s1 + $0xb0] sm:$0xf]  ;;  %v1982_v34 = vld [vmem:[%s2704_s1 + $0x8c] sm:$0xf]  ;;  %v2145_v0 = vld [vmem:[%s2704_s1 + $0xa0] sm:$0xff] }
  0x1e   :  { %v1273_v37 = vunpack.c.l.b16 %v1991_v32  ;;  %v2116_v38 = vld [vmem:[%s2704_s1 + $0x50] sm:$0xff] }
  0x1f   :  { %299 = vmatpush.bf16.msrb.mxu0 %v2070_v52  ;;  %352 = vmatpush.bf16.msrb.mxu1 %v2078_v53  ;;  %v823_v52 = vsel %vm77_vm0, %v817_v42, 0  ;;  %v876_v53 = vsel %vm77_vm0, %v870_v45, 0  ;;  %v2132_v42 = vld [vmem:[%s2703_s0 + $0x98] sm:$0xff] }
  0x20   :  { %441 = vmatpush.bf16.msrb.mxu2 %v2086_v55  ;;  %484 = vmatpush.bf16.msrb.mxu3 %v2082_v56  ;;  %v939_v55 = vsel %vm77_vm0, %v933_v46, 0  ;;  %v2110_v56 = vld [vmem:[%s2703_s0 + $0x84] sm:$0xff]  ;;  %v1278_v45 = vpack.c.b16 %v1273_v37, %v1273_v37 }
  0x21   :  { %v2115_v46 = vld [vmem:[%s2704_s1 + $0x48] sm:$0xff] }
  0x23   :  { %300 = vmatpush.bf16.msrb.mxu0 %v2069_v57  ;;  %353 = vmatpush.bf16.msrb.mxu1 %v2077_v58  ;;  %v2106_v57 = vld [vmem:[%s2703_s0 + $0x60] sm:$0xff]  ;;  %v2114_v58 = vld [vmem:[%s2703_s0 + $0xa8] sm:$0xff] }
  0x24   :  { %442 = vmatpush.bf16.msrb.mxu2 %v2085_v59  ;;  %485 = vmatpush.bf16.msrb.mxu3 %v2081_v62  ;;  %v2122_v59 = vld [vmem:[%s2704_s1 + $0x84] sm:$0xff] }
  0x25   :  { %v2113_v62 = vld [vmem:[%s2703_s0 + $0xa0] sm:$0xff] }
  0x27   :  { %301 = vmatpush.bf16.msrb.mxu0 %v2068_v3  ;;  %354 = vmatpush.bf16.msrb.mxu1 %v2076_v4  ;;  %v1904_v3 = vld [vmem:[%s2703_s0 + $0x8c] sm:$0xf]  ;;  %v971_v4 = vunpack.c.l.b16 %v1824_v63  ;;  %v2137_v63 = vld [vmem:[%s2703_s0 + $0xc4] sm:$0xff] }
  0x28   :  { %443 = vmatpush.bf16.msrb.mxu2 %v2084_v7  ;;  %486 = vmatpush.bf16.msrb.mxu3 %v2080_v8  ;;  %v2104_v7 = vld [vmem:[%s2703_s0 + $0x50] sm:$0xff]  ;;  %v1114_v8 = vunpack.c.l.b16 %v1913_v2  ;;  %v1157_v9 = vunpack.c.l.b16 %v1904_v3  ;;  %v2149_v2 = vld [vmem:[%s2704_s1 + $0xc4] sm:$0xff]  ;;  %v2136_v3 = vld [vmem:[%s2703_s0 + $0xbc] sm:$0xff] }
  0x2b   :  { %302 = vmatpush.bf16.msrb.mxu0 %v2067_v11  ;;  %355 = vmatpush.bf16.msrb.mxu1 %v2075_v12  ;;  %v2120_v11 = vld [vmem:[%s2704_s1 + $0x74] sm:$0xff]  ;;  %v976_v12 = vpack.c.b16 %v971_v4, %v971_v4 }
  0x2c   :  { %444 = vmatpush.bf16.msrb.mxu2 %v2083_v15  ;;  %487 = vmatpush.bf16.msrb.mxu3 %v2079_v16  ;;  %v2103_v15 = vld [vmem:[%s2703_s0 + $0x48] sm:$0xff]  ;;  %v1119_v16 = vpack.c.b16 %v1114_v8, %v1114_v8  ;;  %v2144_v4 = vld [vmem:[%s2704_s1 + $0x98] sm:$0xff]  ;;  %v2143_v8 = vld [vmem:[%s2704_s1 + $0x90] sm:$0xff] }
  0x2e   :  { %1553 = vmatmul.msk.bf16.vlgmr.msrb.gmra.mxu0 %vm73_vm1, %v2299_v54  ;;  %1579 = vmatmul.msk.bf16.vlgmr.msrb.gmra.mxu1 %vm73_vm1, %v2283_v50 }
  0x2f   :  { %536 = vmatpush.bf16.msra.mxu0 %v531_v17  ;;  %599 = vmatpush.bf16.msra.mxu1 %v594_v18  ;;  %v1162_v17 = vpack.c.b16 %v1157_v9, %v1157_v9  ;;  %v2111_v18 = vld [vmem:[%s2703_s0 + $0x90] sm:$0xff] }
  0x30   :  { %642 = vmatpush.bf16.msra.mxu2 %v637_v19  ;;  %695 = vmatpush.bf16.msra.mxu3 %v690_v20  ;;  %v2119_v19 = vld [vmem:[%s2704_s1 + $0x6c] sm:$0xff]  ;;  %v982_v20 = vsel %vm77_vm0, %v976_v12, 0 }
  0x31   :  { %1614 = vmatmul.msk.bf16.vlgmr.msrb.gmra.mxu2 %vm73_vm1, %v2288_v51  ;;  %1631 = vmatmul.msk.bf16.vlgmr.msrb.gmra.mxu3 %vm73_vm1, %v2299_v54  ;;  %v2139_v9 = vld [vmem:[%s2704_s1 + $0x6c] sm:$0xff] }
  0x33   :  { %537 = vmatpush.bf16.msra.mxu0 %v2090_v21  ;;  %600 = vmatpush.bf16.msra.mxu1 %v2098_v22  ;;  %v1035_v21 = vsel %vm77_vm0, %v1029_v13, 0  ;;  %v1125_v22 = vsel %vm77_vm0, %v1119_v16, 0 }
  0x34   :  { %643 = vmatpush.bf16.msra.mxu2 %v2094_v23  ;;  %696 = vmatpush.bf16.msra.mxu3 %v2102_v24  ;;  %v1168_v23 = vsel %vm77_vm0, %v1162_v17, 0  ;;  %v2118_v24 = vld [vmem:[%s2704_s1 + $0x60] sm:$0xff] }
  0x37   :  { %538 = vmatpush.bf16.msra.mxu0 %v2089_v25  ;;  %601 = vmatpush.bf16.msra.mxu1 %v2097_v26  ;;  %v2126_v25 = vld [vmem:[%s2704_s1 + $0xa8] sm:$0xff] }
  0x38   :  { %644 = vmatpush.bf16.msra.mxu2 %v2093_v27  ;;  %697 = vmatpush.bf16.msra.mxu3 %v2101_v30  ;;  %v2134_v26 = vld [vmem:[%s2703_s0 + $0xa8] sm:$0xff]  ;;  %v2133_v30 = vld [vmem:[%s2703_s0 + $0xa0] sm:$0xff] }
  0x39   :  { %v2130_v27 = vld [vmem:[%s2703_s0 + $0x84] sm:$0xff] }
  0x3b   :  { %539 = vmatpush.bf16.msra.mxu0 %v2088_v35  ;;  %602 = vmatpush.bf16.msra.mxu1 %v2096_v36  ;;  %v2034_v35 = vld [vmem:[%s2704_s1 + $0xd4] sm:$0xf]  ;;  %v1210_v36 = vunpack.c.l.b16 %v1956_v31 }
  0x3c   :  { %645 = vmatpush.bf16.msra.mxu2 %v2092_v39  ;;  %698 = vmatpush.bf16.msra.mxu3 %v2100_v40  ;;  %v2124_v39 = vld [vmem:[%s2704_s1 + $0x98] sm:$0xff]  ;;  %v1316_v40 = vunpack.c.l.b16 %v1982_v34  ;;  %v1369_v41 = vunpack.c.l.b16 %v2034_v35 }
  0x3f   :  { %540 = vmatpush.bf16.msra.mxu0 %v2087_v43  ;;  %603 = vmatpush.bf16.msra.mxu1 %v2095_v44  ;;  %v2128_v43 = vld [vmem:[%s2703_s0 + $0x74] sm:$0xff]  ;;  %v1215_v44 = vpack.c.b16 %v1210_v36, %v1210_v36 }
  0x40   :  { %646 = vmatpush.bf16.msra.mxu2 %v2091_v47  ;;  %699 = vmatpush.bf16.msra.mxu3 %v2099_v48  ;;  %v2123_v47 = vld [vmem:[%s2704_s1 + $0x90] sm:$0xff]  ;;  %v1321_v48 = vpack.c.b16 %v1316_v40, %v1316_v40 }
  0x42   :  { %1657 = vmatmul.msk.bf16.vlgmr.msra.gmra.mxu0 %vm73_vm1, %v2283_v50  ;;  %1692 = vmatmul.msk.bf16.vlgmr.msra.gmra.mxu1 %vm73_vm1, %v2288_v51 }
  0x43   :  { %785 = vmatpush.bf16.msrb.mxu0 %v780_v49  ;;  %828 = vmatpush.bf16.msrb.mxu1 %v823_v52  ;;  %v1374_v49 = vpack.c.b16 %v1369_v41, %v1369_v41  ;;  %v2131_v52 = vld [vmem:[%s2703_s0 + $0x90] sm:$0xff] }
  0x44   :  { %881 = vmatpush.bf16.msrb.mxu2 %v876_v53  ;;  %944 = vmatpush.bf16.msrb.mxu3 %v939_v55  ;;  %v2127_v53 = vld [vmem:[%s2703_s0 + $0x6c] sm:$0xff]  ;;  %v1221_v55 = vsel %vm77_vm0, %v1215_v44, 0 }
  0x45   :  { %1709 = vmatmul.msk.bf16.vlgmr.msra.gmra.mxu2 %vm73_vm1, %v2299_v54  ;;  %1735 = vmatmul.msk.bf16.vlgmr.msra.gmra.mxu3 %vm73_vm1, %v2283_v50 }
  0x47   :  { %786 = vmatpush.bf16.msrb.mxu0 %v2110_v56  ;;  %829 = vmatpush.bf16.msrb.mxu1 %v2106_v57  ;;  %v1284_v56 = vsel %vm77_vm0, %v1278_v45, 0  ;;  %v1327_v57 = vsel %vm77_vm0, %v1321_v48, 0 }
  0x48   :  { %882 = vmatpush.bf16.msrb.mxu2 %v2114_v58  ;;  %945 = vmatpush.bf16.msrb.mxu3 %v2122_v59  ;;  %v1380_v58 = vsel %vm77_vm0, %v1374_v49, 0  ;;  %v2138_v59 = vld [vmem:[%s2703_s0 + $0xcc] sm:$0xff] }
  0x4b   :  { %787 = vmatpush.bf16.msrb.mxu0 %v2109_v60  ;;  %830 = vmatpush.bf16.msrb.mxu1 %v2105_v61  ;;  %v2146_v60 = vld [vmem:[%s2704_s1 + $0xa8] sm:$0xff] }
  0x4c   :  { %883 = vmatpush.bf16.msrb.mxu2 %v2113_v62  ;;  %946 = vmatpush.bf16.msrb.mxu3 %v2121_v1  ;;  %v2142_v61 = vld [vmem:[%s2704_s1 + $0x84] sm:$0xff]  ;;  %v2150_v62 = vld [vmem:[%s2704_s1 + $0xcc] sm:$0xff]  ;;  %v2141_v1 = vld [vmem:[%s2704_s1 + $0x7c] sm:$0xff] }
  0x4f   :  { %788 = vmatpush.bf16.msrb.mxu0 %v2108_v6  ;;  %831 = vmatpush.bf16.msrb.mxu1 %v2104_v7  ;;  %v2148_v6 = vld [vmem:[%s2704_s1 + $0xbc] sm:$0xff]  ;;  %v2135_v7 = vld [vmem:[%s2703_s0 + $0xb4] sm:$0xff] }
  0x50   :  { %884 = vmatpush.bf16.msrb.mxu2 %v2112_v10  ;;  %947 = vmatpush.bf16.msrb.mxu3 %v2120_v11  ;;  %v2147_v10 = vld [vmem:[%s2704_s1 + $0xb4] sm:$0xff] }
  0x53   :  { %789 = vmatpush.bf16.msrb.mxu0 %v2107_v14  ;;  %832 = vmatpush.bf16.msrb.mxu1 %v2103_v15 }
  0x54   :  { %885 = vmatpush.bf16.msrb.mxu2 %v2111_v18  ;;  %948 = vmatpush.bf16.msrb.mxu3 %v2119_v19 }
  0x56   :  { %1789 = vmatmul.msk.bf16.vlgmr.msrb.gmra.mxu1 %vm73_vm1, %v2299_v54  ;;  %1772 = vmatmul.msk.bf16.vlgmr.msrb.gmra.mxu0 %vm73_vm1, %v2288_v51 }
  0x57   :  { %987 = vmatpush.bf16.msra.mxu0 %v982_v20  ;;  %1040 = vmatpush.bf16.msra.mxu1 %v1035_v21 }
  0x58   :  { %1130 = vmatpush.bf16.msra.mxu2 %v1125_v22  ;;  %1173 = vmatpush.bf16.msra.mxu3 %v1168_v23 }
  0x59   :  { %1815 = vmatmul.msk.bf16.vlgmr.msrb.gmra.mxu2 %vm73_vm1, %v2283_v50  ;;  %1850 = vmatmul.msk.bf16.vlgmr.msrb.gmra.mxu3 %vm73_vm1, %v2288_v51 }
  0x5b   :  { %988 = vmatpush.bf16.msra.mxu0 %v2118_v24  ;;  %1041 = vmatpush.bf16.msra.mxu1 %v2126_v25 }
  0x5c   :  { %1131 = vmatpush.bf16.msra.mxu2 %v2134_v26  ;;  %1174 = vmatpush.bf16.msra.mxu3 %v2130_v27 }
  0x5f   :  { %989 = vmatpush.bf16.msra.mxu0 %v2117_v28  ;;  %1042 = vmatpush.bf16.msra.mxu1 %v2125_v29 }
  0x60   :  { %1132 = vmatpush.bf16.msra.mxu2 %v2133_v30  ;;  %1175 = vmatpush.bf16.msra.mxu3 %v2129_v33 }
  0x63   :  { %990 = vmatpush.bf16.msra.mxu0 %v2116_v38  ;;  %1043 = vmatpush.bf16.msra.mxu1 %v2124_v39 }
  0x64   :  { %1133 = vmatpush.bf16.msra.mxu2 %v2132_v42  ;;  %1176 = vmatpush.bf16.msra.mxu3 %v2128_v43 }
  0x67   :  { %991 = vmatpush.bf16.msra.mxu0 %v2115_v46  ;;  %1044 = vmatpush.bf16.msra.mxu1 %v2123_v47 }
  0x68   :  { %1134 = vmatpush.bf16.msra.mxu2 %v2131_v52  ;;  %1177 = vmatpush.bf16.msra.mxu3 %v2127_v53 }
  0x6a   :  { %1867 = vmatmul.msk.bf16.vlgmr.msra.gmra.mxu0 %vm73_vm1, %v2299_v54  ;;  %1893 = vmatmul.msk.bf16.vlgmr.msra.gmra.mxu1 %vm73_vm1, %v2283_v50 }
  0x6b   :  { %1226 = vmatpush.bf16.msrb.mxu0 %v1221_v55  ;;  %1289 = vmatpush.bf16.msrb.mxu1 %v1284_v56 }
  0x6c   :  { %1332 = vmatpush.bf16.msrb.mxu2 %v1327_v57  ;;  %1385 = vmatpush.bf16.msrb.mxu3 %v1380_v58 }
  0x6d   :  { %1930 = vmatmul.msk.bf16.vlgmr.msra.gmra.mxu2 %vm73_vm1, %v2288_v51  ;;  %1947 = vmatmul.msk.bf16.vlgmr.msra.gmra.mxu3 %vm73_vm1, %v2299_v54 }
  0x6f   :  { %1227 = vmatpush.bf16.msrb.mxu0 %v2138_v59  ;;  %1290 = vmatpush.bf16.msrb.mxu1 %v2146_v60 }
  0x70   :  { %1333 = vmatpush.bf16.msrb.mxu2 %v2142_v61  ;;  %1386 = vmatpush.bf16.msrb.mxu3 %v2150_v62 }
  0x73   :  { %1228 = vmatpush.bf16.msrb.mxu0 %v2137_v63  ;;  %1291 = vmatpush.bf16.msrb.mxu1 %v2145_v0 }
  0x74   :  { %1334 = vmatpush.bf16.msrb.mxu2 %v2141_v1  ;;  %1387 = vmatpush.bf16.msrb.mxu3 %v2149_v2 }
  0x77   :  { %1229 = vmatpush.bf16.msrb.mxu0 %v2136_v3  ;;  %1292 = vmatpush.bf16.msrb.mxu1 %v2144_v4 }
  0x78   :  { %1335 = vmatpush.bf16.msrb.mxu2 %v2140_v5  ;;  %1388 = vmatpush.bf16.msrb.mxu3 %v2148_v6 }
  0x7b   :  { %1230 = vmatpush.bf16.msrb.mxu0 %v2135_v7  ;;  %1293 = vmatpush.bf16.msrb.mxu1 %v2143_v8 }
  0x7c   :  { %1336 = vmatpush.bf16.msrb.mxu2 %v2139_v9  ;;  %1389 = vmatpush.bf16.msrb.mxu3 %v2147_v10  ;;  %v2647_v14 = vpop.permute.xlu0 %199 }
  0x7e   :  { %1973 = vmatmul.msk.bf16.vlgmr.msrb.gmra.mxu0 %vm73_vm1, %v2283_v50  ;;  %2008 = vmatmul.msk.bf16.vlgmr.msrb.gmra.mxu1 %vm73_vm1, %v2288_v51 }
  0x7f   :  { %2025 = vmatmul.msk.bf16.vlgmr.msrb.gmra.mxu2 %vm73_vm1, %v2299_v54  ;;  %2051 = vmatmul.msk.bf16.vlgmr.msrb.gmra.mxu3 %vm73_vm1, %v2283_v50 }
  0x97   :  { %v90_v11 = vpop.f32.mrf.mxu0  ;;  %v136_v12 = vpop.f32.mrf.mxu1 }
  0x98   :  { %v137_v13 = vadd.f32 %v136_v12, %v90_v11 }
  0x9f   :  { %v92_v18 = vpop.f32.mrf.mxu0  ;;  %v138_v19 = vpop.f32.mrf.mxu1 }
  0xa0   :  { %v192_v15 = vpop.f32.mrf.mxu2  ;;  %v261_v16 = vpop.f32.mrf.mxu3 }
  0xa1   :  { %v196_v17 = vadd.f32 %v192_v15, %v137_v13 }
  0xa3   :  { %v202_v20 = vadd.f32 %v2647_v14, %v196_v17 }
  0xa5   :  { %364 = vst.msk [vmem:[%s2707_s4] sm:$0xff] %vm363_vm2, %v202_v20  ;;  %v366_v28 = vmul.f32 %v202_v20, %v202_v20 }
  0xa8   :  { %v194_v51 = vpop.f32.mrf.mxu2  ;;  %v263_v50 = vpop.f32.mrf.mxu3 }
  0xab   :  { %v304_v54 = vpop.f32.mrf.mxu0  ;;  %v357_v22 = vpop.f32.mrf.mxu1 }
  0xac   :  { %v305_v21 = vadd.f32 %v304_v54, %v261_v16 }
  0xae   :  { %v361_v23 = vadd.f32 %v357_v22, %v305_v21 }
  0xb0   :  { %v362_v24 = vadd.f32 %v361_v23, %v2647_v14 }
  0xb2   :  { %365 = vst.msk [vmem:[%s2708_s5] sm:$0xff] %vm363_vm2, %v362_v24  ;;  %v367_v26 = vmul.f32 %v362_v24, %v362_v24 }
  0xb3   :  { %v306_v29 = vpop.f32.mrf.mxu0  ;;  %v359_v30 = vpop.f32.mrf.mxu1 }
  0xb4   :  { %v446_v25 = vpop.f32.mrf.mxu2  ;;  %v489_v27 = vpop.f32.mrf.mxu3  ;;  %v368_v31 = vadd.f32 %v367_v26, %v366_v28 }
  0xb5   :  { %v490_v36 = vadd.f32 %v489_v27, %v446_v25 }
  0xb6   :  { %v385_v32 = vsel %vm363_vm2, %v368_v31, 0.0  ;;  %v369_v33 = vadd.f32 1e-20, %v368_v31 }
  0xb7   :  { %386 = vadd.xlane.f32.xlu1 %v385_v32 }
  0xb8   :  { %2153 = vrsqrt.f32 %v369_v33  ;;  %vm376_vm4 = vweird.f32 %v369_v33 }
  0xbc   :  { %v448_v34 = vpop.f32.mrf.mxu2  ;;  %v491_v35 = vpop.f32.mrf.mxu3 }
  0xbe   :  { %v2154_v38 = vpop.eup %2153 }
  0xbf   :  { %v542_v37 = vpop.f32.mrf.mxu0  ;;  %v605_v40 = vpop.f32.mrf.mxu1  ;;  %v371_v41 = vmul.f32 %v2154_v38, %v369_v33  ;;  %vm377_vm3 = vweird.f32 %v2154_v38 }
  0xc0   :  { %v546_v39 = vadd.f32 %v542_v37, %v490_v36  ;;  %vm378_vm5 = vmor %vm376_vm4, %vm377_vm3 }
  0xc1   :  { %v372_v43 = vmul.f32 %v2154_v38, %v371_v41 }
  0xc2   :  { %v547_v42 = vadd.f32 %v546_v39, %v2647_v14 }
  0xc3   :  { %v373_v45 = vmul.f32 0.5, %v372_v43 }
  0xc4   :  { %1736 = vst.msk [vmem:[%s2707_s4 + $0x8] sm:$0xff] %vm363_vm2, %v547_v42  ;;  %v711_v58 = vmul.f32 %v547_v42, %v547_v42 }
  0xc5   :  { %v374_v49 = vsub.f32 1.5, %v373_v45 }
  0xc7   :  { %v544_v48 = vpop.f32.mrf.mxu0  ;;  %v607_v53 = vpop.f32.mrf.mxu1  ;;  %v375_v55 = vmul.f32 %v2154_v38, %v374_v49 }
  0xc8   :  { %v648_v44 = vpop.f32.mrf.mxu2  ;;  %v701_v47 = vpop.f32.mrf.mxu3 }
  0xc9   :  { %v649_v46 = vadd.f32 %v648_v44, %v605_v40  ;;  %v379_v57 = vsel %vm378_vm5, %v2154_v38, %v375_v55 }
  0xca   :  { %v380_v60 = vmul.f32 %v379_v57, %v368_v31 }
  0xcb   :  { %v705_v52 = vadd.f32 %v701_v47, %v649_v46 }
  0xcc   :  { %v381_v63 = vsel %vm363_vm2, %v380_v60, 0.0 }
  0xcd   :  { %v706_v56 = vadd.f32 %v705_v52, %v2647_v14  ;;  %382 = vadd.xlane.f32.xlu0 %v381_v63 }
  0xcf   :  { %1737 = vst.msk [vmem:[%s2708_s5 + $0x8] sm:$0xff] %vm363_vm2, %v706_v56  ;;  %v712_v59 = vmul.f32 %v706_v56, %v706_v56 }
  0xd0   :  { %v650_v61 = vpop.f32.mrf.mxu2  ;;  %v703_v62 = vpop.f32.mrf.mxu3 }
  0xd1   :  { %v713_v0 = vadd.f32 %v712_v59, %v711_v58 }
  0xd3   :  { %v730_v1 = vsel %vm363_vm2, %v713_v0, 0.0  ;;  %v714_v2 = vadd.f32 1e-20, %v713_v0  ;;  %v834_v3 = vpop.f32.mrf.mxu1  ;;  %v791_v4 = vpop.f32.mrf.mxu0 }
  0xd4   :  { %731 = vadd.xlane.f32.xlu2 %v730_v1  ;;  %v835_v5 = vadd.f32 %v834_v3, %v791_v4 }
  0xd5   :  { %2155 = vrsqrt.f32 %v714_v2  ;;  %vm721_vm7 = vweird.f32 %v714_v2 }
  0xdb   :  { %v2156_v7 = vpop.eup %2155  ;;  %v836_v10 = vpop.f32.mrf.mxu1 }
  0xdc   :  { %v887_v6 = vpop.f32.mrf.mxu2  ;;  %v950_v9 = vpop.f32.mrf.mxu3  ;;  %v716_v11 = vmul.f32 %v2156_v7, %v714_v2  ;;  %vm722_vm6 = vweird.f32 %v2156_v7 }
  0xdd   :  { %v891_v8 = vadd.f32 %v887_v6, %v835_v5  ;;  %v793_v13 = vpop.f32.mrf.mxu0  ;;  %vm723_vm8 = vmor %vm721_vm7, %vm722_vm6 }
  0xde   :  { %v717_v15 = vmul.f32 %v2156_v7, %v716_v11 }
  0xdf   :  { %v892_v12 = vadd.f32 %v891_v8, %v2647_v14 }
  0xe0   :  { %v718_v16 = vmul.f32 0.5, %v717_v15 }
  0xe1   :  { %1894 = vst.msk [vmem:[%s2707_s4 + $0x10] sm:$0xff] %vm363_vm2, %v892_v12  ;;  %v1056_v26 = vmul.f32 %v892_v12, %v892_v12 }
  0xe2   :  { %v719_v18 = vsub.f32 1.5, %v718_v16 }
  0xe4   :  { %v889_v17 = vpop.f32.mrf.mxu2  ;;  %v952_v19 = vpop.f32.mrf.mxu3  ;;  %v720_v20 = vmul.f32 %v2156_v7, %v719_v18 }
  0xe6   :  { %v724_v54 = vsel %vm723_vm8, %v2156_v7, %v720_v20 }
  0xe7   :  { %v993_v51 = vpop.f32.mrf.mxu0  ;;  %v1046_v50 = vpop.f32.mrf.mxu1  ;;  %v725_v22 = vmul.f32 %v724_v54, %v713_v0 }
  0xe8   :  { %v994_v21 = vadd.f32 %v993_v51, %v950_v9 }
  0xe9   :  { %v726_v24 = vsel %vm363_vm2, %v725_v22, 0.0 }
  0xea   :  { %v1050_v23 = vadd.f32 %v1046_v50, %v994_v21  ;;  %727 = vadd.xlane.f32.xlu1 %v726_v24 }
  0xec   :  { %v1051_v25 = vadd.f32 %v1050_v23, %v2647_v14 }
  0xee   :  { %1895 = vst.msk [vmem:[%s2708_s5 + $0x10] sm:$0xff] %vm363_vm2, %v1051_v25  ;;  %v1057_v27 = vmul.f32 %v1051_v25, %v1051_v25 }
  0xef   :  { %v1048_v30 = vpop.f32.mrf.mxu1  ;;  %v995_v31 = vpop.f32.mrf.mxu0 }
  0xf0   :  { %v1136_v28 = vpop.f32.mrf.mxu2  ;;  %v1179_v29 = vpop.f32.mrf.mxu3  ;;  %v1058_v32 = vadd.f32 %v1057_v27, %v1056_v26 }
  0xf1   :  { %v1180_v37 = vadd.f32 %v1179_v29, %v1136_v28 }
  0xf2   :  { %v1059_v33 = vadd.f32 1e-20, %v1058_v32  ;;  %v1075_v34 = vsel %vm363_vm2, %v1058_v32, 0.0 }
  0xf3   :  { %1076 = vadd.xlane.f32.xlu1 %v1075_v34 }
  0xf4   :  { %2157 = vrsqrt.f32 %v1059_v33  ;;  %vm1066_vm10 = vweird.f32 %v1059_v33 }
  0xf8   :  { %v1138_v35 = vpop.f32.mrf.mxu2  ;;  %v1181_v36 = vpop.f32.mrf.mxu3 }
  0xfa   :  { %v2158_v41 = vpop.eup %2157 }
  0xfb   :  { %v1232_v38 = vpop.f32.mrf.mxu0  ;;  %v1295_v39 = vpop.f32.mrf.mxu1  ;;  %v1061_v43 = vmul.f32 %v2158_v41, %v1059_v33  ;;  %vm1067_vm9 = vweird.f32 %v2158_v41 }
  0xfc   :  { %v1236_v40 = vadd.f32 %v1232_v38, %v1180_v37  ;;  %vm1068_vm11 = vmor %vm1066_vm10, %vm1067_vm9 }
  0xfd   :  { %v1062_v44 = vmul.f32 %v2158_v41, %v1061_v43 }
  0xfe   :  { %v1237_v42 = vadd.f32 %v1236_v40, %v2647_v14 }
  0xff   :  { %v1063_v47 = vmul.f32 0.5, %v1062_v44 }
 0x100   :  { %2052 = vst.msk [vmem:[%s2707_s4 + $0x18] sm:$0xff] %vm363_vm2, %v1237_v42  ;;  %v1401_v59 = vmul.f32 %v1237_v42, %v1237_v42 }
 0x101   :  { %v1064_v53 = vsub.f32 1.5, %v1063_v47 }
 0x102   :  { %v1338_v45 = vpop.f32.mrf.mxu2  ;;  %v1391_v46 = vpop.f32.mrf.mxu3 }
 0x103   :  { %v1339_v48 = vadd.f32 %v1338_v45, %v1295_v39  ;;  %v1234_v49 = vpop.f32.mrf.mxu0  ;;  %v1297_v52 = vpop.f32.mrf.mxu1  ;;  %v1065_v56 = vmul.f32 %v2158_v41, %v1064_v53 }
 0x105   :  { %v1395_v55 = vadd.f32 %v1391_v46, %v1339_v48  ;;  %v1069_v58 = vsel %vm1068_vm11, %v2158_v41, %v1065_v56 }
 0x106   :  { %v1070_v61 = vmul.f32 %v1069_v58, %v1058_v32 }
 0x107   :  { %v1396_v57 = vadd.f32 %v1395_v55, %v2647_v14 }
 0x108   :  { %v1071_v0 = vsel %vm363_vm2, %v1070_v61, 0.0 }
 0x109   :  { %2053 = vst.msk [vmem:[%s2708_s5 + $0x18] sm:$0xff] %vm363_vm2, %v1396_v57  ;;  %v1402_v60 = vmul.f32 %v1396_v57, %v1396_v57  ;;  %1072 = vadd.xlane.f32.xlu2 %v1071_v0 }
 0x10a   :  { %v1340_v62 = vpop.f32.mrf.mxu2  ;;  %v1393_v63 = vpop.f32.mrf.mxu3 }
 0x10b   :  { %v1403_v1 = vadd.f32 %v1402_v60, %v1401_v59 }
 0x10d   :  { %v1404_v2 = vadd.f32 1e-20, %v1403_v1  ;;  %v1420_v3 = vsel %vm363_vm2, %v1403_v1, 0.0 }
 0x10e   :  { %1421 = vadd.xlane.f32.xlu1 %v1420_v3 }
 0x10f   :  { %2159 = vrsqrt.f32 %v1404_v2  ;;  %vm1411_vm13 = vweird.f32 %v1404_v2 }
 0x115   :  { %v2160_v14 = vpop.eup %2159 }
 0x116   :  { %v1406_v4 = vmul.f32 %v2160_v14, %v1404_v2  ;;  %vm1412_vm12 = vweird.f32 %v2160_v14 }
 0x117   :  { %vm1413_vm14 = vmor %vm1411_vm13, %vm1412_vm12 }
 0x118   :  { %v1407_v5 = vmul.f32 %v2160_v14, %v1406_v4 }
 0x11a   :  { %v1408_v6 = vmul.f32 0.5, %v1407_v5 }
 0x11c   :  { %v1409_v7 = vsub.f32 1.5, %v1408_v6 }
 0x11e   :  { %v1410_v8 = vmul.f32 %v2160_v14, %v1409_v7 }
 0x120   :  { %v1414_v9 = vsel %vm1413_vm14, %v2160_v14, %v1410_v8 }
 0x121   :  { %v1415_v10 = vmul.f32 %v1414_v9, %v1403_v1 }
 0x123   :  { %v1416_v11 = vsel %vm363_vm2, %v1415_v10, 0.0 }
 0x124   :  { %1417 = vadd.xlane.f32.xlu2 %v1416_v11 }
 0x12a   :  { %v387_v12 = vpop.xlane.xlu1 %386 }
 0x140   :  { %v383_v50 = vpop.xlane.xlu0 %382 }
 0x147   :  { %v732_v16 = vpop.xlane.xlu2 %731 }
 0x148   :  { %v733_v17 = vadd.f32 %v732_v16, %v387_v12 }
 0x15d   :  { %v728_v13 = vpop.xlane.xlu1 %727 }
 0x15e   :  { %v729_v54 = vadd.f32 %v728_v13, %v383_v50 }
 0x166   :  { %v1077_v15 = vpop.xlane.xlu1 %1076 }
 0x167   :  { %v1078_v18 = vadd.f32 %v1077_v15, %v733_v17 }
 0x17c   :  { %v1073_v51 = vpop.xlane.xlu2 %1072 }
 0x17d   :  { %v1074_v21 = vadd.f32 %v1073_v51, %v729_v54 }
 0x181   :  { %v1422_v19 = vpop.xlane.xlu1 %1421 }
 0x182   :  { %v1423_v20 = vadd.f32 %v1422_v19, %v1078_v18 }
 0x184   :  { %2054 = vst.msk [vmem:[%s2709_s6 + $0x8] sm:$0xff] %vm1424_vm15, %v1423_v20 }
 0x197   :  { %v1418_v22 = vpop.xlane.xlu2 %1417 }
 0x198   :  { %v1419_v23 = vadd.f32 %v1418_v22, %v1074_v21 }
 0x19a   :  { %1425 = vst.msk [vmem:[%s2709_s6] sm:$0xff] %vm1424_vm15, %v1419_v23 }

</bundles_post_ra>
